<compile_context>
chip_gen: v5e
topology: v5e:2x2
jax: 0.10.0
libtpu: 0.0.40
codegen_flags: <defaults>
</compile_context>

<pallas_src>
import functools

import jax
import jax.numpy as jnp
from jax.experimental import pallas as pl
from jax.experimental.pallas import tpu as pltpu

LANE = 128
SUBLANE = 8


def _round_up(n, m):
    return ((n + m - 1) // m) * m


def _leaky_relu(v):
    return jnp.where(v >= 0.0, v, 0.01 * v)


def _relu(v):
    return jnp.maximum(v, 0.0)


def model_forward_kernel(
    x_ref,
    w1_ref, b1_ref, w2_ref, b2_ref, w3_ref, b3_ref,   # encoder
    w4_ref, b4_ref, w5_ref, b5_ref, w6_ref, b6_ref,   # decoder
    z_ref, xr_ref,
):
    """Full encoder + decoder chain on one batch tile.

    Weights are bf16 (HBM-bandwidth bound kernel); all matmuls accumulate in f32.
    """
    x = x_ref[...].astype(jnp.bfloat16)

    # ----- Encoder -----
    h = jnp.dot(x, w1_ref[...], preferred_element_type=jnp.float32) + b1_ref[...]
    h = _leaky_relu(h)
    h = jnp.dot(h.astype(jnp.bfloat16), w2_ref[...],
                preferred_element_type=jnp.float32) + b2_ref[...]
    h = _leaky_relu(h)
    z = jnp.dot(h.astype(jnp.bfloat16), w3_ref[...],
                preferred_element_type=jnp.float32) + b3_ref[...]

    # ----- Decoder -----
    d = jnp.dot(z.astype(jnp.bfloat16), w4_ref[...],
                preferred_element_type=jnp.float32) + b4_ref[...]
    d = _relu(d)
    d = jnp.dot(d.astype(jnp.bfloat16), w5_ref[...],
                preferred_element_type=jnp.float32) + b5_ref[...]
    d = _relu(d)
    xr = jnp.dot(d.astype(jnp.bfloat16), w6_ref[...],
                 preferred_element_type=jnp.float32) + b6_ref[...]
    xr = _relu(xr)

    z_ref[...] = z.astype(z_ref.dtype)
    xr_ref[...] = xr.astype(xr_ref.dtype)


def init_model_params(key, input_dim, z_dim):
    """Deterministic f32 parameter init mimicking torch.nn.Linear default
    (U[-1/sqrt(in), 1/sqrt(in)]). Weights stored as (in, out); bias as (1, out)."""
    dims = [
        (input_dim, 2048),  # enc fc1
        (2048, 256),        # enc fc2
        (256, z_dim),       # enc fc3
        (z_dim, 256),       # dec fc1
        (256, 2048),        # dec fc2
        (2048, input_dim),  # dec fc3
    ]
    params = []
    keys = jax.random.split(key, 2 * len(dims))
    for i, (din, dout) in enumerate(dims):
        bound = 1.0 / jnp.sqrt(jnp.float32(din))
        w = jax.random.uniform(keys[2 * i], (din, dout), jnp.float32, -bound, bound)
        b = jax.random.uniform(keys[2 * i + 1], (1, dout), jnp.float32, -bound, bound)
        params.append((w, b))
    return params


def pack_params_for_kernel(params, input_dim, z_dim):
    """Pad the z-dim and reconstruction-dim layers to lane-dense (128) widths with
    zeros (exact math) and cast weights to bf16 (biases stay f32)."""
    zp = _round_up(z_dim, LANE)
    dp = _round_up(input_dim, LANE)
    (w1, b1), (w2, b2), (w3, b3), (w4, b4), (w5, b5), (w6, b6) = params

    def pad_cols(w, b, to):
        dout = w.shape[1]
        if to > dout:
            w = jnp.pad(w, ((0, 0), (0, to - dout)))
            b = jnp.pad(b, ((0, 0), (0, to - dout)))
        return w, b

    def pad_rows(w, to):
        din = w.shape[0]
        if to > din:
            w = jnp.pad(w, ((0, to - din), (0, 0)))
        return w

    w3, b3 = pad_cols(w3, b3, zp)   # z output -> zp lanes (extra cols are exactly 0)
    w4 = pad_rows(w4, zp)           # consume padded z (zero rows -> no contribution)
    w6, b6 = pad_cols(w6, b6, dp)   # x_recon output -> dp lanes

    packed = []
    for w, b in [(w1, b1), (w2, b2), (w3, b3), (w4, b4), (w5, b5), (w6, b6)]:
        packed.append((w.astype(jnp.bfloat16), b.astype(jnp.float32)))
    return packed


def model_forward(x, kparams, *, z_dim, input_dim):
    """Single Model forward via one batch-tiled Pallas call."""
    batch, d_in = x.shape
    zp = kparams[2][0].shape[1]   # padded z width
    dp = kparams[5][0].shape[1]   # padded reconstruction width

    # Batch tile: multiple of the f32 sublane (8), capped at 128.
    tb = min(128, _round_up(batch, SUBLANE))
    batch_p = _round_up(batch, tb)
    if batch_p != batch:
        x = jnp.pad(x, ((0, batch_p - batch), (0, 0)))

    flat = [x]
    for w, b in kparams:
        flat.extend([w, b])

    # x / outputs tiled on batch; weights & biases are whole-array blocks pinned at
    # block (0, 0) so they stay VMEM-resident across the batch grid.
    in_specs = [pl.BlockSpec((tb, d_in), lambda i: (i, 0))]
    for w, b in kparams:
        in_specs.append(pl.BlockSpec(w.shape, lambda i: (0, 0)))
        in_specs.append(pl.BlockSpec(b.shape, lambda i: (0, 0)))
    out_specs = (
        pl.BlockSpec((tb, zp), lambda i: (i, 0)),
        pl.BlockSpec((tb, dp), lambda i: (i, 0)),
    )

    z_p, xr_p = pl.pallas_call(
        model_forward_kernel,
        out_shape=(
            jax.ShapeDtypeStruct((batch_p, zp), jnp.float32),
            jax.ShapeDtypeStruct((batch_p, dp), jnp.float32),
        ),
        grid=(batch_p // tb,),
        in_specs=in_specs,
        out_specs=out_specs,
        compiler_params=pltpu.CompilerParams(
            dimension_semantics=("parallel",),
            vmem_limit_bytes=32 * 1024 * 1024,
        ),
    )(*flat)

    # Strip batch / lane padding back to logical shapes.
    return z_p[:batch, :z_dim], xr_p[:batch, :input_dim]


@functools.partial(jax.jit, static_argnames=("z_dim", "input_dim", "n_models"))
def ensemble_forward(x, kparams, *, z_dim, input_dim, n_models):
    """Ensemble.forward: every member is the SAME Model instance (shared weights),
    so mean over n_models identical forwards == one forward. Run the kernel once."""
    del n_models  # mathematically a no-op on shared-weight members
    return model_forward(x, kparams, z_dim=z_dim, input_dim=input_dim)


if __name__ == "__main__":
    key = jax.random.PRNGKey(0)
    k_param, k_x = jax.random.split(key)

    batch = 8
    input_dim = 32   # data.shape[1] analogue (small)
    z_dim = 20       # as in the reference script
    n_models = 4     # small ensemble for the test

    params = init_model_params(k_param, input_dim, z_dim)
    kparams = pack_params_for_kernel(params, input_dim, z_dim)
    x = jax.random.normal(k_x, (batch, input_dim), jnp.float32)

    z, x_recon = ensemble_forward(
        x, kparams, z_dim=z_dim, input_dim=input_dim, n_models=n_models
    )
    jax.block_until_ready((z, x_recon))

    assert z.shape == (batch, z_dim)
    assert x_recon.shape == (batch, input_dim)
    assert bool(jnp.all(jnp.isfinite(z))) and bool(jnp.all(jnp.isfinite(x_recon)))

    print("KERNEL_OK")
</pallas_src>

<mosaic_0001>
module attributes {stable_mosaic.version = 11 : i64} {
  func.func @model_forward_kernel(%arg0: i32, %arg1: memref<8x32xf32, #tpu.memory_space<vmem>>, %arg2: memref<32x2048xbf16, #tpu.memory_space<vmem>>, %arg3: memref<1x2048xf32, #tpu.memory_space<vmem>>, %arg4: memref<2048x256xbf16, #tpu.memory_space<vmem>>, %arg5: memref<1x256xf32, #tpu.memory_space<vmem>>, %arg6: memref<256x128xbf16, #tpu.memory_space<vmem>>, %arg7: memref<1x128xf32, #tpu.memory_space<vmem>>, %arg8: memref<128x256xbf16, #tpu.memory_space<vmem>>, %arg9: memref<1x256xf32, #tpu.memory_space<vmem>>, %arg10: memref<256x2048xbf16, #tpu.memory_space<vmem>>, %arg11: memref<1x2048xf32, #tpu.memory_space<vmem>>, %arg12: memref<2048x128xbf16, #tpu.memory_space<vmem>>, %arg13: memref<1x128xf32, #tpu.memory_space<vmem>>, %arg14: memref<8x128xf32, #tpu.memory_space<vmem>>, %arg15: memref<8x128xf32, #tpu.memory_space<vmem>>) attributes {dimension_semantics = [#tpu.dimension_semantics<parallel>], iteration_bounds = array<i64: 1>, scalar_prefetch = 0 : i64, scratch_operands = 0 : i64, tpu.core_type = #tpu.core_type<tc>, window_params = [{transform_indices = @transform_0, window_bounds = array<i64: 8, 32>}, {pipeline_mode = #tpu.pipeline_mode<synchronous>, transform_indices = @transform_1, window_bounds = array<i64: 32, 2048>}, {pipeline_mode = #tpu.pipeline_mode<synchronous>, transform_indices = @transform_2, window_bounds = array<i64: 1, 2048>}, {pipeline_mode = #tpu.pipeline_mode<synchronous>, transform_indices = @transform_3, window_bounds = array<i64: 2048, 256>}, {pipeline_mode = #tpu.pipeline_mode<synchronous>, transform_indices = @transform_4, window_bounds = array<i64: 1, 256>}, {pipeline_mode = #tpu.pipeline_mode<synchronous>, transform_indices = @transform_5, window_bounds = array<i64: 256, 128>}, {pipeline_mode = #tpu.pipeline_mode<synchronous>, transform_indices = @transform_6, window_bounds = array<i64: 1, 128>}, {pipeline_mode = #tpu.pipeline_mode<synchronous>, transform_indices = @transform_7, window_bounds = array<i64: 128, 256>}, {pipeline_mode = #tpu.pipeline_mode<synchronous>, transform_indices = @transform_8, window_bounds = array<i64: 1, 256>}, {pipeline_mode = #tpu.pipeline_mode<synchronous>, transform_indices = @transform_9, window_bounds = array<i64: 256, 2048>}, {pipeline_mode = #tpu.pipeline_mode<synchronous>, transform_indices = @transform_10, window_bounds = array<i64: 1, 2048>}, {pipeline_mode = #tpu.pipeline_mode<synchronous>, transform_indices = @transform_11, window_bounds = array<i64: 2048, 128>}, {pipeline_mode = #tpu.pipeline_mode<synchronous>, transform_indices = @transform_12, window_bounds = array<i64: 1, 128>}, {transform_indices = @transform_13, window_bounds = array<i64: 8, 128>}, {transform_indices = @transform_14, window_bounds = array<i64: 8, 128>}]} {
    %c0 = arith.constant 0 : index
    %c0_0 = arith.constant 0 : index
    %0 = vector.load %arg1[%c0, %c0_0] : memref<8x32xf32, #tpu.memory_space<vmem>>, vector<8x32xf32>
    %1 = arith.truncf %0 : vector<8x32xf32> to vector<8x32xbf16>
    %c0_1 = arith.constant 0 : index
    %c0_2 = arith.constant 0 : index
    %2 = vector.load %arg2[%c0_1, %c0_2] : memref<32x2048xbf16, #tpu.memory_space<vmem>>, vector<32x2048xbf16>
    %cst = arith.constant dense<0.000000e+00> : vector<8x2048xf32>
    %3 = tpu.matmul %1, %2, %cst {dimension_numbers = #tpu.dot_dimension_numbers<[1], [0], [0], [1], [0, 0, 1, 1], [], []>} : vector<8x32xbf16>, vector<32x2048xbf16>, vector<8x2048xf32> -> vector<8x2048xf32>
    %c0_3 = arith.constant 0 : index
    %c0_4 = arith.constant 0 : index
    %4 = vector.load %arg3[%c0_3, %c0_4] : memref<1x2048xf32, #tpu.memory_space<vmem>>, vector<1x2048xf32>
    %5 = vector.broadcast %4 : vector<1x2048xf32> to vector<8x2048xf32>
    %6 = arith.addf %3, %5 : vector<8x2048xf32>
    %cst_5 = arith.constant 0.000000e+00 : f32
    %7 = vector.broadcast %cst_5 : f32 to vector<8x2048xf32>
    %8 = arith.cmpf oge, %6, %7 : vector<8x2048xf32>
    %cst_6 = arith.constant 0.00999999977 : f32
    %9 = vector.broadcast %cst_6 : f32 to vector<8x2048xf32>
    %10 = arith.mulf %9, %6 : vector<8x2048xf32>
    %11 = arith.select %8, %6, %10 : vector<8x2048xi1>, vector<8x2048xf32>
    %12 = arith.truncf %11 : vector<8x2048xf32> to vector<8x2048xbf16>
    %c0_7 = arith.constant 0 : index
    %c0_8 = arith.constant 0 : index
    %13 = vector.load %arg4[%c0_7, %c0_8] : memref<2048x256xbf16, #tpu.memory_space<vmem>>, vector<2048x256xbf16>
    %cst_9 = arith.constant dense<0.000000e+00> : vector<8x256xf32>
    %14 = tpu.matmul %12, %13, %cst_9 {dimension_numbers = #tpu.dot_dimension_numbers<[1], [0], [0], [1], [0, 0, 1, 1], [], []>} : vector<8x2048xbf16>, vector<2048x256xbf16>, vector<8x256xf32> -> vector<8x256xf32>
    %c0_10 = arith.constant 0 : index
    %c0_11 = arith.constant 0 : index
    %15 = vector.load %arg5[%c0_10, %c0_11] : memref<1x256xf32, #tpu.memory_space<vmem>>, vector<1x256xf32>
    %16 = vector.broadcast %15 : vector<1x256xf32> to vector<8x256xf32>
    %17 = arith.addf %14, %16 : vector<8x256xf32>
    %cst_12 = arith.constant 0.000000e+00 : f32
    %18 = vector.broadcast %cst_12 : f32 to vector<8x256xf32>
    %19 = arith.cmpf oge, %17, %18 : vector<8x256xf32>
    %cst_13 = arith.constant 0.00999999977 : f32
    %20 = vector.broadcast %cst_13 : f32 to vector<8x256xf32>
    %21 = arith.mulf %20, %17 : vector<8x256xf32>
    %22 = arith.select %19, %17, %21 : vector<8x256xi1>, vector<8x256xf32>
    %23 = arith.truncf %22 : vector<8x256xf32> to vector<8x256xbf16>
    %c0_14 = arith.constant 0 : index
    %c0_15 = arith.constant 0 : index
    %24 = vector.load %arg6[%c0_14, %c0_15] : memref<256x128xbf16, #tpu.memory_space<vmem>>, vector<256x128xbf16>
    %cst_16 = arith.constant dense<0.000000e+00> : vector<8x128xf32>
    %25 = tpu.matmul %23, %24, %cst_16 {dimension_numbers = #tpu.dot_dimension_numbers<[1], [0], [0], [1], [0, 0, 1, 1], [], []>} : vector<8x256xbf16>, vector<256x128xbf16>, vector<8x128xf32> -> vector<8x128xf32>
    %c0_17 = arith.constant 0 : index
    %c0_18 = arith.constant 0 : index
    %26 = vector.load %arg7[%c0_17, %c0_18] : memref<1x128xf32, #tpu.memory_space<vmem>>, vector<1x128xf32>
    %27 = vector.broadcast %26 : vector<1x128xf32> to vector<8x128xf32>
    %28 = arith.addf %25, %27 : vector<8x128xf32>
    %29 = arith.truncf %28 : vector<8x128xf32> to vector<8x128xbf16>
    %c0_19 = arith.constant 0 : index
    %c0_20 = arith.constant 0 : index
    %30 = vector.load %arg8[%c0_19, %c0_20] : memref<128x256xbf16, #tpu.memory_space<vmem>>, vector<128x256xbf16>
    %cst_21 = arith.constant dense<0.000000e+00> : vector<8x256xf32>
    %31 = tpu.matmul %29, %30, %cst_21 {dimension_numbers = #tpu.dot_dimension_numbers<[1], [0], [0], [1], [0, 0, 1, 1], [], []>} : vector<8x128xbf16>, vector<128x256xbf16>, vector<8x256xf32> -> vector<8x256xf32>
    %c0_22 = arith.constant 0 : index
    %c0_23 = arith.constant 0 : index
    %32 = vector.load %arg9[%c0_22, %c0_23] : memref<1x256xf32, #tpu.memory_space<vmem>>, vector<1x256xf32>
    %33 = vector.broadcast %32 : vector<1x256xf32> to vector<8x256xf32>
    %34 = arith.addf %31, %33 : vector<8x256xf32>
    %cst_24 = arith.constant 0.000000e+00 : f32
    %35 = vector.broadcast %cst_24 : f32 to vector<8x256xf32>
    %36 = arith.maximumf %34, %35 : vector<8x256xf32>
    %37 = arith.truncf %36 : vector<8x256xf32> to vector<8x256xbf16>
    %c0_25 = arith.constant 0 : index
    %c0_26 = arith.constant 0 : index
    %38 = vector.load %arg10[%c0_25, %c0_26] : memref<256x2048xbf16, #tpu.memory_space<vmem>>, vector<256x2048xbf16>
    %cst_27 = arith.constant dense<0.000000e+00> : vector<8x2048xf32>
    %39 = tpu.matmul %37, %38, %cst_27 {dimension_numbers = #tpu.dot_dimension_numbers<[1], [0], [0], [1], [0, 0, 1, 1], [], []>} : vector<8x256xbf16>, vector<256x2048xbf16>, vector<8x2048xf32> -> vector<8x2048xf32>
    %c0_28 = arith.constant 0 : index
    %c0_29 = arith.constant 0 : index
    %40 = vector.load %arg11[%c0_28, %c0_29] : memref<1x2048xf32, #tpu.memory_space<vmem>>, vector<1x2048xf32>
    %41 = vector.broadcast %40 : vector<1x2048xf32> to vector<8x2048xf32>
    %42 = arith.addf %39, %41 : vector<8x2048xf32>
    %cst_30 = arith.constant 0.000000e+00 : f32
    %43 = vector.broadcast %cst_30 : f32 to vector<8x2048xf32>
    %44 = arith.maximumf %42, %43 : vector<8x2048xf32>
    %45 = arith.truncf %44 : vector<8x2048xf32> to vector<8x2048xbf16>
    %c0_31 = arith.constant 0 : index
    %c0_32 = arith.constant 0 : index
    %46 = vector.load %arg12[%c0_31, %c0_32] : memref<2048x128xbf16, #tpu.memory_space<vmem>>, vector<2048x128xbf16>
    %cst_33 = arith.constant dense<0.000000e+00> : vector<8x128xf32>
    %47 = tpu.matmul %45, %46, %cst_33 {dimension_numbers = #tpu.dot_dimension_numbers<[1], [0], [0], [1], [0, 0, 1, 1], [], []>} : vector<8x2048xbf16>, vector<2048x128xbf16>, vector<8x128xf32> -> vector<8x128xf32>
    %c0_34 = arith.constant 0 : index
    %c0_35 = arith.constant 0 : index
    %48 = vector.load %arg13[%c0_34, %c0_35] : memref<1x128xf32, #tpu.memory_space<vmem>>, vector<1x128xf32>
    %49 = vector.broadcast %48 : vector<1x128xf32> to vector<8x128xf32>
    %50 = arith.addf %47, %49 : vector<8x128xf32>
    %cst_36 = arith.constant 0.000000e+00 : f32
    %51 = vector.broadcast %cst_36 : f32 to vector<8x128xf32>
    %52 = arith.maximumf %50, %51 : vector<8x128xf32>
    %c0_37 = arith.constant 0 : index
    %c0_38 = arith.constant 0 : index
    %53 = vector.load %arg14[%c0_37, %c0_38] : memref<8x128xf32, #tpu.memory_space<vmem>>, vector<8x128xf32>
    tpu.vector_store %arg14[%c0_37, %c0_38], %28 {strides = array<i32>} : memref<8x128xf32, #tpu.memory_space<vmem>>, vector<8x128xf32>,
    %c0_39 = arith.constant 0 : index
    %c0_40 = arith.constant 0 : index
    %54 = vector.load %arg15[%c0_39, %c0_40] : memref<8x128xf32, #tpu.memory_space<vmem>>, vector<8x128xf32>
    tpu.vector_store %arg15[%c0_39, %c0_40], %52 {strides = array<i32>} : memref<8x128xf32, #tpu.memory_space<vmem>>, vector<8x128xf32>,
    return
  }
  func.func @transform_0(%arg0: i32) -> (i32, i32) {
    %c0_i32 = arith.constant 0 : i32
    %c0_i32_0 = arith.constant 0 : i32
    return %arg0, %c0_i32 : i32, i32
  }
  func.func @transform_1(%arg0: i32) -> (i32, i32) {
    %c0_i32 = arith.constant 0 : i32
    %c0_i32_0 = arith.constant 0 : i32
    %c0_i32_1 = arith.constant 0 : i32
    return %c0_i32, %c0_i32_0 : i32, i32
  }
  func.func @transform_2(%arg0: i32) -> (i32, i32) {
    %c0_i32 = arith.constant 0 : i32
    %c0_i32_0 = arith.constant 0 : i32
    %c0_i32_1 = arith.constant 0 : i32
    return %c0_i32, %c0_i32_0 : i32, i32
  }
  func.func @transform_3(%arg0: i32) -> (i32, i32) {
    %c0_i32 = arith.constant 0 : i32
    %c0_i32_0 = arith.constant 0 : i32
    %c0_i32_1 = arith.constant 0 : i32
    return %c0_i32, %c0_i32_0 : i32, i32
  }
  func.func @transform_4(%arg0: i32) -> (i32, i32) {
    %c0_i32 = arith.constant 0 : i32
    %c0_i32_0 = arith.constant 0 : i32
    %c0_i32_1 = arith.constant 0 : i32
    return %c0_i32, %c0_i32_0 : i32, i32
  }
  func.func @transform_5(%arg0: i32) -> (i32, i32) {
    %c0_i32 = arith.constant 0 : i32
    %c0_i32_0 = arith.constant 0 : i32
    %c0_i32_1 = arith.constant 0 : i32
    return %c0_i32, %c0_i32_0 : i32, i32
  }
  func.func @transform_6(%arg0: i32) -> (i32, i32) {
    %c0_i32 = arith.constant 0 : i32
    %c0_i32_0 = arith.constant 0 : i32
    %c0_i32_1 = arith.constant 0 : i32
    return %c0_i32, %c0_i32_0 : i32, i32
  }
  func.func @transform_7(%arg0: i32) -> (i32, i32) {
    %c0_i32 = arith.constant 0 : i32
    %c0_i32_0 = arith.constant 0 : i32
    %c0_i32_1 = arith.constant 0 : i32
    return %c0_i32, %c0_i32_0 : i32, i32
  }
  func.func @transform_8(%arg0: i32) -> (i32, i32) {
    %c0_i32 = arith.constant 0 : i32
    %c0_i32_0 = arith.constant 0 : i32
    %c0_i32_1 = arith.constant 0 : i32
    return %c0_i32, %c0_i32_0 : i32, i32
  }
  func.func @transform_9(%arg0: i32) -> (i32, i32) {
    %c0_i32 = arith.constant 0 : i32
    %c0_i32_0 = arith.constant 0 : i32
    %c0_i32_1 = arith.constant 0 : i32
    return %c0_i32, %c0_i32_0 : i32, i32
  }
  func.func @transform_10(%arg0: i32) -> (i32, i32) {
    %c0_i32 = arith.constant 0 : i32
    %c0_i32_0 = arith.constant 0 : i32
    %c0_i32_1 = arith.constant 0 : i32
    return %c0_i32, %c0_i32_0 : i32, i32
  }
  func.func @transform_11(%arg0: i32) -> (i32, i32) {
    %c0_i32 = arith.constant 0 : i32
    %c0_i32_0 = arith.constant 0 : i32
    %c0_i32_1 = arith.constant 0 : i32
    return %c0_i32, %c0_i32_0 : i32, i32
  }
  func.func @transform_12(%arg0: i32) -> (i32, i32) {
    %c0_i32 = arith.constant 0 : i32
    %c0_i32_0 = arith.constant 0 : i32
    %c0_i32_1 = arith.constant 0 : i32
    return %c0_i32, %c0_i32_0 : i32, i32
  }
  func.func @transform_13(%arg0: i32) -> (i32, i32) {
    %c0_i32 = arith.constant 0 : i32
    %c0_i32_0 = arith.constant 0 : i32
    return %arg0, %c0_i32 : i32, i32
  }
  func.func @transform_14(%arg0: i32) -> (i32, i32) {
    %c0_i32 = arith.constant 0 : i32
    %c0_i32_0 = arith.constant 0 : i32
    return %arg0, %c0_i32 : i32, i32
  }
}

</mosaic_0001>

<bundles_post_ra>
// kernel: ensemble_forward.1
= control target key start
LH: loop header
LB: loop body
LE: loop exit
PB: predicated region body
PF: predicated region fallthrough
CT: control target
= control target key end

     0   :  { %20 = vsyncpa [#allocation3], 0  ;;  %s10478_s0 = inlined_call_operand.hbm [shape: f32[8,32], index: 0, kind: input, shape index: {}]   ;;  %s10479_s1 = inlined_call_operand.hbm [shape: bf16[32,2048], index: 1, kind: input, shape index: {}]   ;;  %s10480_s2 = inlined_call_operand.hbm [shape: f32[1,2048], index: 2, kind: input, shape index: {}]   ;;  %s10481_s3 = inlined_call_operand.hbm [shape: bf16[2048,256], index: 3, kind: input, shape index: {}]   ;;  %s10482_s4 = inlined_call_operand.vmem [shape: f32[1,256], index: 4, kind: input, shape index: {}]   ;;  %s10483_s5 = inlined_call_operand.hbm [shape: bf16[256,128], index: 5, kind: input, shape index: {}]   ;;  %s10484_s6 = inlined_call_operand.vmem [shape: f32[1,128], index: 6, kind: input, shape index: {}]   ;;  %s10485_s7 = inlined_call_operand.hbm [shape: bf16[128,256], index: 7, kind: input, shape index: {}]   ;;  %s10486_s8 = inlined_call_operand.vmem [shape: f32[1,256], index: 8, kind: input, shape index: {}]   ;;  %s10487_s9 = inlined_call_operand.hbm [shape: bf16[256,2048], index: 9, kind: input, shape index: {}]   ;;  %s10488_s10 = inlined_call_operand.hbm [shape: f32[1,2048], index: 10, kind: input, shape index: {}]   ;;  %s10489_s11 = inlined_call_operand.hbm [shape: bf16[2048,128], index: 11, kind: input, shape index: {}]   ;;  %s10490_s12 = inlined_call_operand.vmem [shape: f32[1,128], index: 12, kind: input, shape index: {}]   ;;  %s10491_s13 = inlined_call_operand.hbm [shape: f32[8,128], index: 13, kind: output, shape index: {0}]   ;;  %s10492_s14 = inlined_call_operand.hbm [shape: f32[8,128], index: 14, kind: output, shape index: {1}]  }
   0x1   :  { %21 = vsyncpa [#allocation6], 0 }
   0x2   :  { %22 = vsyncpa [#allocation9], 0 }
   0x3   :  { %23 = vsyncpa [#allocation12], 0 }
   0x4   :  { %24 = vsyncpa [#allocation15], 0 }
   0x5   :  { %25 = vsyncpa [#allocation4], 0  ;;  %s42_s15 = sshll.u32 %s10479_s1, 4  ;;  %s43_s15 = int_to_ptr.hbm [resolvable:$true] %s42_s15 }
   0x6   :  { %26 = vsyncpa [#allocation19], 0  ;;  %s10074_s16 = smov [#allocation5]   ;;  %s66_s20 = sshll.u32 %s10481_s3, 4  ;;  %s67_s20 = int_to_ptr.hbm [resolvable:$true] %s66_s20 }
   0x7   :  { %s44_s17 = sshll.u32 %s10074_s16, 4  ;;  %s10075_s21 = smov 1024   ;;  %s45_s17 = int_to_ptr.vmem [resolvable:$true] %s44_s17 }
   0x8   :  { %s10076_s22 = smov 64   ;;  %s10077_s23 = smov [#allocation8]  }
   0x9   :  { %50 = dma.hbm_to_vmem [thread:$0]  %s43_s15, 4096, %s45_s17, [#allocation6], %s10075_s21, %s10075_s21, %s10076_s22  }
   0xa   :  { %s68_s24 = sshll.u32 %s10077_s23, 4  ;;  %s10078_s1 = smov 128   ;;  %s69_s24 = int_to_ptr.vmem [resolvable:$true] %s68_s24 }
   0xb   :  { %s10079_s25 = smov 8   ;;  %s96_s28 = sshll.u32 %s10485_s7, 4  ;;  %s97_s28 = int_to_ptr.hbm [resolvable:$true] %s96_s28 }
   0xc   :  { %74 = dma.hbm_to_vmem [thread:$0]  %s67_s20, 32768, %s69_s24, [#allocation9], %s10078_s1, %s10078_s1, %s10079_s25  }
   0xd   :  { %s10080_s29 = smov [#allocation11]   ;;  %s125_s18 = sshll.u32 %s10488_s10, 4  ;;  %s126_s18 = int_to_ptr.hbm [resolvable:$true] %s125_s18 }
   0xe   :  { %s98_s3 = sshll.u32 %s10080_s29, 4  ;;  %s10081_s15 = smov [#allocation14]   ;;  %s99_s3 = int_to_ptr.vmem [resolvable:$true] %s98_s3 }
   0xf   :  { %104 = dma.hbm_to_vmem [thread:$0]  %s97_s28, 2048, %s99_s3, [#allocation12], %s10078_s1, %s10078_s1, %s10079_s25  }
  0x10   :  { %s127_s17 = sshll.u32 %s10081_s15, 4  ;;  %s32_s20 = sshll.u32 %s10478_s0, 4  ;;  %s128_s17 = int_to_ptr.vmem [resolvable:$true] %s127_s17  ;;  %s33_s20 = int_to_ptr.hbm [resolvable:$true] %s32_s20 }
  0x11   :  { %130 = dma.hbm_to_vmem [thread:$0]  %s126_s18, 256, %s128_s17, [#allocation15]  }
  0x12   :  { %s56_s26 = sshll.u32 %s10480_s2, 4  ;;  %s10082_s27 = smov [#allocation2]   ;;  %s57_s26 = int_to_ptr.hbm [resolvable:$true] %s56_s26 }
  0x13   :  { %s34_s29 = sshll.u32 %s10082_s27, 4  ;;  %s10083_s10 = smov [#allocation7]   ;;  %s35_s29 = int_to_ptr.vmem [resolvable:$true] %s34_s29 }
  0x14   :  { %37 = dma.hbm_to_vmem [thread:$0]  %s33_s20, 128, %s35_s29, [#allocation3]  }
  0x15   :  { %s58_s1 = sshll.u32 %s10083_s10, 4  ;;  %s81_s3 = sshll.u32 %s10483_s5, 4  ;;  %s59_s1 = int_to_ptr.vmem [resolvable:$true] %s58_s1  ;;  %s82_s3 = int_to_ptr.hbm [resolvable:$true] %s81_s3 }
  0x16   :  { %61 = dma.hbm_to_vmem [thread:$0]  %s57_s26, 256, %s59_s1, [#allocation6]  }
  0x17   :  { %s10084_s0 = smov [#allocation10]   ;;  %s111_s2 = sshll.u32 %s10487_s9, 4  ;;  %s112_s2 = int_to_ptr.hbm [resolvable:$true] %s111_s2 }
  0x18   :  { %s83_s30 = sshll.u32 %s10084_s0, 4  ;;  %s10085_s15 = smov 4   ;;  %s84_s30 = int_to_ptr.vmem [resolvable:$true] %s83_s30 }
  0x19   :  { %89 = dma.hbm_to_vmem [thread:$0]  %s82_s3, 2048, %s84_s30, [#allocation9], %s10076_s22, %s10076_s22, %s10085_s15  }
  0x1a   :  { %s135_s23 = sshll.u32 %s10489_s11, 4  ;;  %s10086_s5 = smov [#allocation13]   ;;  %s136_s23 = int_to_ptr.hbm [resolvable:$true] %s135_s23 }
  0x1b   :  { %s113_s20 = sshll.u32 %s10086_s5, 4  ;;  %s10087_s7 = smov [#allocation16]   ;;  %s114_s20 = int_to_ptr.vmem [resolvable:$true] %s113_s20 }
  0x1c   :  { %119 = dma.hbm_to_vmem [thread:$0]  %s112_s2, 32768, %s114_s20, [#allocation12], %s10075_s21, %s10075_s21, %s10076_s22  }
  0x1d   :  { %s137_s9 = sshll.u32 %s10087_s7, 4  ;;  %s138_s9 = int_to_ptr.vmem [resolvable:$true] %s137_s9 }
  0x1e   :  { %143 = dma.hbm_to_vmem [thread:$0]  %s136_s23, 16384, %s138_s9, [#allocation15], %s10076_s22, %s10076_s22, %s10085_s15  }
  0x1f   :  { %10060 = dma.done.wait [#allocation3], 128  }
  0x20   :  { %10061 = vsyncadd [#allocation3], 4294967168 }
  0x21   :  { %10062 = dma.done.wait [#allocation6], 4352  }
  0x22   :  { %10063 = vsyncadd [#allocation6], 4294962944 }
  0x23   :  { %10064 = dma.done.wait [#allocation9], 34816  }
  0x24   :  { %10065 = vsyncadd [#allocation9], 4294932480 }
  0x25   :  { %10066 = dma.done.wait [#allocation12], 34816  }
  0x26   :  { %10067 = vsyncadd [#allocation12], 4294932480 }
  0x27   :  { %10068 = dma.done.wait [#allocation15], 16640  }
  0x28   :  { %10069 = vsyncadd [#allocation15], 4294950656  ;;  %v6308_v0 = vld [vmem:[#allocation5 + $0x80] sm:$0xf]  ;;  %v9090_v2 = vld [vmem:[#allocation5 + $0x84] sm:$0xf] }
  0x29   :  { %v9098_v1 = vld [vmem:[#allocation5 + $0xbc] sm:$0xf0]  ;;  %v6310_v4 = vld [vmem:[#allocation5 + $0xc0] sm:$0xf0]  ;;  %v6316_v5 = vld [vmem:[#allocation5 + $0x88] sm:$0xf] }
  0x2a   :  { %v6309_v3 = vor.u32 %v9098_v1, %v6308_v0  ;;  %v9099_v6 = vld [vmem:[#allocation5 + $0xc4] sm:$0xf0]  ;;  %v6313_v7 = vor.u32 %v9090_v2, %v6310_v4  ;;  %v9091_v9 = vld [vmem:[#allocation5 + $0x8c] sm:$0xf]  ;;  %v6244_v11 = vld [vmem:[#allocation5] sm:$0xf] }
  0x2b   :  { %v6317_v8 = vor.u32 %v9099_v6, %v6316_v5  ;;  %v6318_v10 = vld [vmem:[#allocation5 + $0xc8] sm:$0xf0]  ;;  %v9082_v13 = vld [vmem:[#allocation5 + $0x3c] sm:$0xf0]  ;;  %v9074_v14 = vld [vmem:[#allocation5 + $0x4] sm:$0xf] }
  0x2c   :  { %423 = vmatpush.bf16.msra.mxu0 %v6309_v3  ;;  %v6321_v12 = vor.u32 %v9091_v9, %v6318_v10  ;;  %v6246_v15 = vld [vmem:[#allocation5 + $0x40] sm:$0xf0]  ;;  %436 = vmatpush.bf16.msra.mxu1 %v6313_v7  ;;  %v6245_v16 = vor.u32 %v9082_v13, %v6244_v11  ;;  %v6252_v18 = vld [vmem:[#allocation5 + $0x8] sm:$0xf]  ;;  %v9075_v20 = vld [vmem:[#allocation5 + $0xc] sm:$0xf] }
  0x2d   :  { %449 = vmatpush.bf16.msra.mxu2 %v6317_v8  ;;  %v6249_v17 = vor.u32 %v9074_v14, %v6246_v15  ;;  %v9083_v19 = vld [vmem:[#allocation5 + $0x44] sm:$0xf0]  ;;  %v6254_v22 = vld [vmem:[#allocation5 + $0x48] sm:$0xf0]  ;;  %v183_v23 = vld [vmem:[#allocation2] sm:$0xff]  ;;  %vm413_vm0 = vcmask 261120  }
  0x2e   :  { %462 = vmatpush.bf16.msra.mxu3 %v6321_v12  ;;  %v6253_v21 = vor.u32 %v9083_v19, %v6252_v18  ;;  %v6324_v24 = vld [vmem:[#allocation5 + $0x90] sm:$0xf]  ;;  %v6257_v25 = vor.u32 %v9075_v20, %v6254_v22  ;;  %v10202_v26 = vpack.c.bf16 %v183_v23, %v183_v23  ;;  %v6332_v28 = vld [vmem:[#allocation5 + $0x98] sm:$0xf]  ;;  %v9092_v32 = vld [vmem:[#allocation5 + $0x94] sm:$0xf] }
  0x2f   :  { %v9100_v27 = vld [vmem:[#allocation5 + $0xcc] sm:$0xf0]  ;;  %v9101_v29 = vld [vmem:[#allocation5 + $0xd4] sm:$0xf0]  ;;  %v6326_v33 = vld [vmem:[#allocation5 + $0xd0] sm:$0xf0] }
  0x30   :  { %424 = vmatpush.bf16.msra.mxu0 %v6245_v16  ;;  %v6325_v30 = vor.u32 %v9100_v27, %v6324_v24  ;;  %v6333_v31 = vor.u32 %v9101_v29, %v6332_v28  ;;  %v9093_v34 = vld [vmem:[#allocation5 + $0x9c] sm:$0xf]  ;;  %437 = vmatpush.bf16.msra.mxu1 %v6249_v17  ;;  %v6329_v35 = vor.u32 %v9092_v32, %v6326_v33  ;;  %v6260_v37 = vld [vmem:[#allocation5 + $0x10] sm:$0xf]  ;;  %v6268_v41 = vld [vmem:[#allocation5 + $0x18] sm:$0xf] }
  0x31   :  { %450 = vmatpush.bf16.msra.mxu2 %v6253_v21  ;;  %v6334_v36 = vld [vmem:[#allocation5 + $0xd8] sm:$0xf0]  ;;  %v9084_v38 = vld [vmem:[#allocation5 + $0x4c] sm:$0xf0]  ;;  %v9085_v42 = vld [vmem:[#allocation5 + $0x54] sm:$0xf0] }
  0x32   :  { %463 = vmatpush.bf16.msra.mxu3 %v6257_v25  ;;  %v6337_v39 = vor.u32 %v9093_v34, %v6334_v36  ;;  %v6261_v40 = vor.u32 %v9084_v38, %v6260_v37  ;;  %v9076_v43 = vld [vmem:[#allocation5 + $0x14] sm:$0xf]  ;;  %v6269_v44 = vor.u32 %v9085_v42, %v6268_v41  ;;  %v9077_v46 = vld [vmem:[#allocation5 + $0x1c] sm:$0xf]  ;;  %v6340_v48 = vld [vmem:[#allocation5 + $0xa0] sm:$0xf] }
  0x33   :  { %6370 = vmatmul.msk.bf16.vlgmr.msra.gmra.mxu0 %vm413_vm0, %v10202_v26  ;;  %v6262_v45 = vld [vmem:[#allocation5 + $0x50] sm:$0xf0]  ;;  %v6270_v47 = vld [vmem:[#allocation5 + $0x58] sm:$0xf0]  ;;  %6371 = vmatmul.msk.bf16.vlgmr.msra.gmra.mxu1 %vm413_vm0, %v10202_v26  ;;  %v9102_v49 = vld [vmem:[#allocation5 + $0xdc] sm:$0xf0] }
  0x34   :  { %475 = vmatpush.bf16.msrb.mxu0 %v6325_v30  ;;  %6372 = vmatmul.msk.bf16.vlgmr.msra.gmra.mxu2 %vm413_vm0, %v10202_v26  ;;  %v6348_v50 = vld [vmem:[#allocation5 + $0xa8] sm:$0xf]  ;;  %v6265_v51 = vor.u32 %v9076_v43, %v6262_v45  ;;  %v6341_v52 = vor.u32 %v9102_v49, %v6340_v48  ;;  %v9094_v54 = vld [vmem:[#allocation5 + $0xa4] sm:$0xf]  ;;  %v6273_v56 = vor.u32 %v9077_v46, %v6270_v47  ;;  %v9095_v59 = vld [vmem:[#allocation5 + $0xac] sm:$0xf] }
  0x35   :  { %501 = vmatpush.bf16.msrb.mxu2 %v6333_v31  ;;  %6373 = vmatmul.msk.bf16.vlgmr.msra.gmra.mxu3 %vm413_vm0, %v10202_v26  ;;  %v9103_v53 = vld [vmem:[#allocation5 + $0xe4] sm:$0xf0]  ;;  %v6342_v55 = vld [vmem:[#allocation5 + $0xe0] sm:$0xf0]  ;;  %v6350_v60 = vld [vmem:[#allocation5 + $0xe8] sm:$0xf0] }
  0x36   :  { %488 = vmatpush.bf16.msrb.mxu1 %v6329_v35  ;;  %514 = vmatpush.bf16.msrb.mxu3 %v6337_v39  ;;  %v6349_v57 = vor.u32 %v9103_v53, %v6348_v50  ;;  %v6345_v58 = vor.u32 %v9094_v54, %v6342_v55  ;;  %v6276_v61 = vld [vmem:[#allocation5 + $0x20] sm:$0xf]  ;;  %v6353_v62 = vor.u32 %v9095_v59, %v6350_v60  ;;  %v6284_v0 = vld [vmem:[#allocation5 + $0x28] sm:$0xf]  ;;  %v9078_v4 = vld [vmem:[#allocation5 + $0x24] sm:$0xf] }
  0x37   :  { %v9086_v63 = vld [vmem:[#allocation5 + $0x5c] sm:$0xf0]  ;;  %v9087_v1 = vld [vmem:[#allocation5 + $0x64] sm:$0xf0]  ;;  %v6278_v5 = vld [vmem:[#allocation5 + $0x60] sm:$0xf0] }
  0x38   :  { %476 = vmatpush.bf16.msrb.mxu0 %v6261_v40  ;;  %v6277_v2 = vor.u32 %v9086_v63, %v6276_v61  ;;  %v6285_v3 = vor.u32 %v9087_v1, %v6284_v0  ;;  %v9079_v6 = vld [vmem:[#allocation5 + $0x2c] sm:$0xf]  ;;  %v6281_v8 = vor.u32 %v9078_v4, %v6278_v5  ;;  %v6356_v10 = vld [vmem:[#allocation5 + $0xb0] sm:$0xf]  ;;  %v6364_v12 = vld [vmem:[#allocation5 + $0xb8] sm:$0xf] }
  0x39   :  { %502 = vmatpush.bf16.msrb.mxu2 %v6269_v44  ;;  %v6286_v7 = vld [vmem:[#allocation5 + $0x68] sm:$0xf0]  ;;  %v9104_v11 = vld [vmem:[#allocation5 + $0xec] sm:$0xf0]  ;;  %v9105_v13 = vld [vmem:[#allocation5 + $0xf4] sm:$0xf0] }
  0x3a   :  { %489 = vmatpush.bf16.msrb.mxu1 %v6265_v51  ;;  %515 = vmatpush.bf16.msrb.mxu3 %v6273_v56  ;;  %v6289_v9 = vor.u32 %v9079_v6, %v6286_v7  ;;  %v9096_v14 = vld [vmem:[#allocation5 + $0xb4] sm:$0xf]  ;;  %v9097_v16 = vld [vmem:[#allocation5 + $0xbc] sm:$0xf]  ;;  %v6357_v18 = vor.u32 %v9104_v11, %v6356_v10  ;;  %v6365_v19 = vor.u32 %v9105_v13, %v6364_v12  ;;  %v6292_v21 = vld [vmem:[#allocation5 + $0x30] sm:$0xf] }
  0x3b   :  { %v6358_v15 = vld [vmem:[#allocation5 + $0xf0] sm:$0xf0]  ;;  %v6366_v17 = vld [vmem:[#allocation5 + $0xf8] sm:$0xf0]  ;;  %v9088_v22 = vld [vmem:[#allocation5 + $0x6c] sm:$0xf0] }
  0x3c   :  { %527 = vmatpush.bf16.msra.mxu0 %v6341_v52  ;;  %v6361_v20 = vor.u32 %v9096_v14, %v6358_v15  ;;  %v6300_v23 = vld [vmem:[#allocation5 + $0x38] sm:$0xf]  ;;  %v6369_v24 = vor.u32 %v9097_v16, %v6366_v17  ;;  %v9080_v27 = vld [vmem:[#allocation5 + $0x34] sm:$0xf]  ;;  %v9081_v29 = vld [vmem:[#allocation5 + $0x3c] sm:$0xf]  ;;  %v6293_v31 = vor.u32 %v9088_v22, %v6292_v21 }
  0x3d   :  { %553 = vmatpush.bf16.msra.mxu2 %v6349_v57  ;;  %v9089_v25 = vld [vmem:[#allocation5 + $0x74] sm:$0xf0]  ;;  %v6294_v28 = vld [vmem:[#allocation5 + $0x70] sm:$0xf0]  ;;  %v6302_v30 = vld [vmem:[#allocation5 + $0x78] sm:$0xf0] }
  0x3e   :  { %540 = vmatpush.bf16.msra.mxu1 %v6345_v58  ;;  %566 = vmatpush.bf16.msra.mxu3 %v6353_v62  ;;  %v6301_v32 = vor.u32 %v9089_v25, %v6300_v23  ;;  %v6297_v33 = vor.u32 %v9080_v27, %v6294_v28  ;;  %v6305_v34 = vor.u32 %v9081_v29, %v6302_v30  ;;  %v6444_v35 = vld [vmem:[#allocation8 + $0x70] sm:$0xf]  ;;  %v9121_v36 = vld [vmem:[#allocation8 + $0x74] sm:$0xf0]  ;;  %v6436_v45 = vld [vmem:[#allocation8 + $0x60] sm:$0xf] }
  0x3f   :  { %v6508_v37 = vld [vmem:[#allocation8 + $0xf0] sm:$0xf]  ;;  %v9137_v38 = vld [vmem:[#allocation8 + $0xf4] sm:$0xf0]  ;;  %v6445_v43 = vor.u32 %v9121_v36, %v6444_v35  ;;  %v9119_v46 = vld [vmem:[#allocation8 + $0x64] sm:$0xf0] }
  0x40   :  { %528 = vmatpush.bf16.msra.mxu0 %v6277_v2  ;;  %v6572_v39 = vld [vmem:[#allocation8 + $0x170] sm:$0xf]  ;;  %v9153_v40 = vld [vmem:[#allocation8 + $0x174] sm:$0xf0]  ;;  %v6509_v44 = vor.u32 %v9137_v38, %v6508_v37  ;;  %v6500_v47 = vld [vmem:[#allocation8 + $0xe0] sm:$0xf]  ;;  %v6437_v55 = vor.u32 %v9119_v46, %v6436_v45 }
  0x41   :  { %554 = vmatpush.bf16.msra.mxu2 %v6285_v3  ;;  %v6636_v41 = vld [vmem:[#allocation8 + $0x1f0] sm:$0xf]  ;;  %v9169_v42 = vld [vmem:[#allocation8 + $0x1f4] sm:$0xf0]  ;;  %v6573_v48 = vor.u32 %v9153_v40, %v6572_v39  ;;  %v9135_v49 = vld [vmem:[#allocation8 + $0xe4] sm:$0xf0] }
  0x42   :  { %541 = vmatpush.bf16.msra.mxu1 %v6281_v8  ;;  %567 = vmatpush.bf16.msra.mxu3 %v6289_v9  ;;  %v6637_v50 = vor.u32 %v9169_v42, %v6636_v41  ;;  %v6564_v51 = vld [vmem:[#allocation8 + $0x160] sm:$0xf]  ;;  %v9151_v52 = vld [vmem:[#allocation8 + $0x164] sm:$0xf0]  ;;  %v6501_v56 = vor.u32 %v9135_v49, %v6500_v47  ;;  %v6428_v57 = vld [vmem:[#allocation8 + $0x50] sm:$0xf] }
  0x43   :  { %6374 = vmatmul.msk.bf16.vlgmr.msrb.gmra.mxu0 %vm413_vm0, %v10202_v26  ;;  %6375 = vmatmul.msk.bf16.vlgmr.msrb.gmra.mxu1 %vm413_vm0, %v10202_v26  ;;  %v6628_v53 = vld [vmem:[#allocation8 + $0x1e0] sm:$0xf]  ;;  %v9167_v54 = vld [vmem:[#allocation8 + $0x1e4] sm:$0xf0]  ;;  %v9117_v58 = vld [vmem:[#allocation8 + $0x54] sm:$0xf0]  ;;  %v6565_v60 = vor.u32 %v9151_v52, %v6564_v51 }
  0x44   :  { %6376 = vmatmul.msk.bf16.vlgmr.msrb.gmra.mxu2 %vm413_vm0, %v10202_v26  ;;  %579 = vmatpush.bf16.msrb.mxu0 %v6357_v18  ;;  %v6492_v59 = vld [vmem:[#allocation8 + $0xd0] sm:$0xf]  ;;  %v9133_v61 = vld [vmem:[#allocation8 + $0xd4] sm:$0xf0]  ;;  %v6629_v62 = vor.u32 %v9167_v54, %v6628_v53  ;;  %v6429_v3 = vor.u32 %v9117_v58, %v6428_v57  ;;  %v6420_v5 = vld [vmem:[#allocation8 + $0x40] sm:$0xf] }
  0x45   :  { %6377 = vmatmul.msk.bf16.vlgmr.msrb.gmra.mxu3 %vm413_vm0, %v10202_v26  ;;  %605 = vmatpush.bf16.msrb.mxu2 %v6365_v19  ;;  %v6556_v63 = vld [vmem:[#allocation8 + $0x150] sm:$0xf]  ;;  %v9149_v0 = vld [vmem:[#allocation8 + $0x154] sm:$0xf0]  ;;  %v6493_v4 = vor.u32 %v9133_v61, %v6492_v59  ;;  %v9115_v6 = vld [vmem:[#allocation8 + $0x44] sm:$0xf0] }
  0x46   :  { %592 = vmatpush.bf16.msrb.mxu1 %v6361_v20  ;;  %618 = vmatpush.bf16.msrb.mxu3 %v6369_v24  ;;  %v6620_v1 = vld [vmem:[#allocation8 + $0x1d0] sm:$0xf]  ;;  %v9165_v2 = vld [vmem:[#allocation8 + $0x1d4] sm:$0xf0]  ;;  %v6484_v7 = vld [vmem:[#allocation8 + $0xc0] sm:$0xf]  ;;  %v6557_v8 = vor.u32 %v9149_v0, %v6556_v63  ;;  %v6421_v15 = vor.u32 %v9115_v6, %v6420_v5 }
  0x47   :  { %v9131_v9 = vld [vmem:[#allocation8 + $0xc4] sm:$0xf0]  ;;  %v6621_v10 = vor.u32 %v9165_v2, %v6620_v1  ;;  %v6548_v11 = vld [vmem:[#allocation8 + $0x140] sm:$0xf]  ;;  %v6412_v17 = vld [vmem:[#allocation8 + $0x30] sm:$0xf] }
  0x48   :  { %580 = vmatpush.bf16.msrb.mxu0 %v6293_v31  ;;  %v9147_v12 = vld [vmem:[#allocation8 + $0x144] sm:$0xf0]  ;;  %v6612_v13 = vld [vmem:[#allocation8 + $0x1c0] sm:$0xf]  ;;  %v6485_v16 = vor.u32 %v9131_v9, %v6484_v7  ;;  %v9113_v18 = vld [vmem:[#allocation8 + $0x34] sm:$0xf0] }
  0x49   :  { %606 = vmatpush.bf16.msrb.mxu2 %v6301_v32  ;;  %v9163_v14 = vld [vmem:[#allocation8 + $0x1c4] sm:$0xf0]  ;;  %v6476_v19 = vld [vmem:[#allocation8 + $0xb0] sm:$0xf]  ;;  %v6549_v20 = vor.u32 %v9147_v12, %v6548_v11  ;;  %v9129_v21 = vld [vmem:[#allocation8 + $0xb4] sm:$0xf0]  ;;  %v6413_v28 = vor.u32 %v9113_v18, %v6412_v17 }
  0x4a   :  { %593 = vmatpush.bf16.msrb.mxu1 %v6297_v33  ;;  %619 = vmatpush.bf16.msrb.mxu3 %v6305_v34  ;;  %v6613_v22 = vor.u32 %v9163_v14, %v6612_v13  ;;  %v6540_v23 = vld [vmem:[#allocation8 + $0x130] sm:$0xf]  ;;  %v9145_v24 = vld [vmem:[#allocation8 + $0x134] sm:$0xf0]  ;;  %v6477_v29 = vor.u32 %v9129_v21, %v6476_v19  ;;  %v6404_v30 = vld [vmem:[#allocation8 + $0x20] sm:$0xf] }
  0x4b   :  { %v6604_v25 = vld [vmem:[#allocation8 + $0x1b0] sm:$0xf]  ;;  %v9161_v27 = vld [vmem:[#allocation8 + $0x1b4] sm:$0xf0]  ;;  %v9111_v31 = vld [vmem:[#allocation8 + $0x24] sm:$0xf0]  ;;  %v6541_v33 = vor.u32 %v9145_v24, %v6540_v23 }
  0x4c   :  { %v6468_v32 = vld [vmem:[#allocation8 + $0xa0] sm:$0xf]  ;;  %v9127_v34 = vld [vmem:[#allocation8 + $0xa4] sm:$0xf0]  ;;  %v6605_v35 = vor.u32 %v9161_v27, %v6604_v25  ;;  %v6405_v40 = vor.u32 %v9111_v31, %v6404_v30  ;;  %v6396_v42 = vld [vmem:[#allocation8 + $0x10] sm:$0xf] }
  0x4d   :  { %v6532_v36 = vld [vmem:[#allocation8 + $0x120] sm:$0xf]  ;;  %v9143_v37 = vld [vmem:[#allocation8 + $0x124] sm:$0xf0]  ;;  %v6469_v41 = vor.u32 %v9127_v34, %v6468_v32  ;;  %v9125_v46 = vld [vmem:[#allocation8 + $0x94] sm:$0xf0] }
  0x4e   :  { %v6596_v38 = vld [vmem:[#allocation8 + $0x1a0] sm:$0xf]  ;;  %v9159_v39 = vld [vmem:[#allocation8 + $0x1a4] sm:$0xf0]  ;;  %v6533_v45 = vor.u32 %v9143_v37, %v6532_v36  ;;  %v9141_v49 = vld [vmem:[#allocation8 + $0x114] sm:$0xf0] }
  0x4f   :  { %v6597_v47 = vor.u32 %v9159_v39, %v6596_v38  ;;  %v9157_v51 = vld [vmem:[#allocation8 + $0x194] sm:$0xf0]  ;;  %v6388_v53 = vld [vmem:[#allocation8] sm:$0xf]  ;;  %v6700_v57 = vld [vmem:[#allocation8 + $0x270] sm:$0xf] }
  0x50   :  { %v9185_v59 = vld [vmem:[#allocation8 + $0x274] sm:$0xf0]  ;;  %v6516_v63 = vld [vmem:[#allocation8 + $0x100] sm:$0xf]  ;;  %v9139_v0 = vld [vmem:[#allocation8 + $0x104] sm:$0xf0] }
  0x51   :  { %v9201_v61 = vld [vmem:[#allocation8 + $0x2f4] sm:$0xf0]  ;;  %v6580_v1 = vld [vmem:[#allocation8 + $0x180] sm:$0xf]  ;;  %v6701_v7 = vor.u32 %v9185_v59, %v6700_v57  ;;  %v9183_v12 = vld [vmem:[#allocation8 + $0x264] sm:$0xf0]  ;;  %v6517_v13 = vor.u32 %v9139_v0, %v6516_v63 }
  0x52   :  { %v9217_v5 = vld [vmem:[#allocation8 + $0x374] sm:$0xf0]  ;;  %v6692_v11 = vld [vmem:[#allocation8 + $0x260] sm:$0xf]  ;;  %v9231_v23 = vld [vmem:[#allocation8 + $0x3e4] sm:$0xf0] }
  0x53   :  { %6378 = vmatmul.msk.bf16.vlgmr.msra.gmra.mxu0 %vm413_vm0, %v10202_v26  ;;  %6379 = vmatmul.msk.bf16.vlgmr.msra.gmra.mxu1 %vm413_vm0, %v10202_v26  ;;  %v9233_v9 = vld [vmem:[#allocation8 + $0x3f4] sm:$0xf0]  ;;  %v6756_v14 = vld [vmem:[#allocation8 + $0x2e0] sm:$0xf]  ;;  %v6693_v21 = vor.u32 %v9183_v12, %v6692_v11  ;;  %v6684_v25 = vld [vmem:[#allocation8 + $0x250] sm:$0xf] }
  0x54   :  { %6380 = vmatmul.msk.bf16.vlgmr.msra.gmra.mxu2 %vm413_vm0, %v10202_v26  ;;  %2231 = vmatpush.bf16.msra.mxu0 %v6445_v43  ;;  %v9109_v43 = vld [vmem:[#allocation8 + $0x14] sm:$0xf0]  ;;  %v6820_v19 = vld [vmem:[#allocation8 + $0x360] sm:$0xf]  ;;  %v6812_v32 = vld [vmem:[#allocation8 + $0x350] sm:$0xf] }
  0x55   :  { %6381 = vmatmul.msk.bf16.vlgmr.msra.gmra.mxu3 %vm413_vm0, %v10202_v26  ;;  %2244 = vmatpush.bf16.msra.mxu1 %v6509_v44  ;;  %v6460_v44 = vld [vmem:[#allocation8 + $0x90] sm:$0xf]  ;;  %v6397_v52 = vor.u32 %v9109_v43, %v6396_v42  ;;  %v9181_v27 = vld [vmem:[#allocation8 + $0x254] sm:$0xf0]  ;;  %v6676_v38 = vld [vmem:[#allocation8 + $0x240] sm:$0xf] }
  0x56   :  { %2257 = vmatpush.bf16.msra.mxu2 %v6573_v48  ;;  %2270 = vmatpush.bf16.msra.mxu3 %v6637_v50  ;;  %v6524_v48 = vld [vmem:[#allocation8 + $0x110] sm:$0xf]  ;;  %v6461_v54 = vor.u32 %v9125_v46, %v6460_v44  ;;  %v6685_v34 = vor.u32 %v9181_v27, %v6684_v25  ;;  %v9229_v36 = vld [vmem:[#allocation8 + $0x3d4] sm:$0xf0]  ;;  %v9179_v39 = vld [vmem:[#allocation8 + $0x244] sm:$0xf0] }
  0x57   :  { %v6588_v50 = vld [vmem:[#allocation8 + $0x190] sm:$0xf]  ;;  %v6525_v58 = vor.u32 %v9141_v49, %v6524_v48  ;;  %v6804_v44 = vld [vmem:[#allocation8 + $0x340] sm:$0xf]  ;;  %v6677_v46 = vor.u32 %v9179_v39, %v6676_v38  ;;  %v9227_v48 = vld [vmem:[#allocation8 + $0x3c4] sm:$0xf0] }
  0x58   :  { %2232 = vmatpush.bf16.msra.mxu0 %v6437_v55  ;;  %v6452_v55 = vld [vmem:[#allocation8 + $0x80] sm:$0xf]  ;;  %v6796_v63 = vld [vmem:[#allocation8 + $0x330] sm:$0xf]  ;;  %v9209_v0 = vld [vmem:[#allocation8 + $0x334] sm:$0xf0] }
  0x59   :  { %2245 = vmatpush.bf16.msra.mxu1 %v6501_v56  ;;  %v9123_v56 = vld [vmem:[#allocation8 + $0x84] sm:$0xf0]  ;;  %v6660_v57 = vld [vmem:[#allocation8 + $0x220] sm:$0xf]  ;;  %v6844_v25 = vld [vmem:[#allocation8 + $0x390] sm:$0xf] }
  0x5a   :  { %2258 = vmatpush.bf16.msra.mxu2 %v6565_v60  ;;  %2271 = vmatpush.bf16.msra.mxu3 %v6629_v62  ;;  %v6764_v60 = vld [vmem:[#allocation8 + $0x2f0] sm:$0xf]  ;;  %v6589_v62 = vor.u32 %v9157_v51, %v6588_v50  ;;  %v6453_v6 = vor.u32 %v9123_v56, %v6452_v55  ;;  %v9177_v51 = vld [vmem:[#allocation8 + $0x234] sm:$0xf0]  ;;  %v6724_v59 = vld [vmem:[#allocation8 + $0x2a0] sm:$0xf] }
  0x5b   :  { %v6668_v50 = vld [vmem:[#allocation8 + $0x230] sm:$0xf]  ;;  %v6788_v11 = vld [vmem:[#allocation8 + $0x320] sm:$0xf]  ;;  %v9207_v12 = vld [vmem:[#allocation8 + $0x324] sm:$0xf0] }
  0x5c   :  { %2233 = vmatpush.bf16.msra.mxu0 %v6429_v3  ;;  %v9155_v3 = vld [vmem:[#allocation8 + $0x184] sm:$0xf0]  ;;  %v6669_v55 = vor.u32 %v9177_v51, %v6668_v50  ;;  %s10088_s27 = smov [#allocation17]   ;;  %s6212_s25 = sshll.u32 %s10491_s13, 4  ;;  %s6213_s25 = int_to_ptr.hbm [resolvable:$true] %s6212_s25 }
  0x5d   :  { %2246 = vmatpush.bf16.msra.mxu1 %v6493_v4  ;;  %v6828_v4 = vld [vmem:[#allocation8 + $0x370] sm:$0xf]  ;;  %s6210_s29 = sshll.u32 %s10088_s27, 4  ;;  %s6223_s0 = sshll.u32 %s10492_s14, 4  ;;  %s6211_s29 = int_to_ptr.vmem [resolvable:$true] %s6210_s29  ;;  %s6224_s0 = int_to_ptr.hbm [resolvable:$true] %s6223_s0 }
  0x5e   :  { %2259 = vmatpush.bf16.msra.mxu2 %v6557_v8  ;;  %2272 = vmatpush.bf16.msra.mxu3 %v6621_v10  ;;  %v6892_v8 = vld [vmem:[#allocation8 + $0x3f0] sm:$0xf]  ;;  %v6765_v10 = vor.u32 %v9201_v61, %v6764_v60  ;;  %v6829_v17 = vor.u32 %v9217_v5, %v6828_v4  ;;  %v9191_v60 = vld [vmem:[#allocation8 + $0x2a4] sm:$0xf0] }
  0x5f   :  { %v6893_v18 = vor.u32 %v9233_v9, %v6892_v8  ;;  %v6652_v5 = vld [vmem:[#allocation8 + $0x210] sm:$0xf]  ;;  %v9189_v9 = vld [vmem:[#allocation8 + $0x294] sm:$0xf0] }
  0x60   :  { %2234 = vmatpush.bf16.msra.mxu0 %v6421_v15  ;;  %v9199_v15 = vld [vmem:[#allocation8 + $0x2e4] sm:$0xf0] }
  0x61   :  { %2247 = vmatpush.bf16.msra.mxu1 %v6485_v16  ;;  %v6581_v16 = vor.u32 %v9155_v3, %v6580_v1  ;;  %v6757_v24 = vor.u32 %v9199_v15, %v6756_v14  ;;  %v6860_v1 = vld [vmem:[#allocation8 + $0x3b0] sm:$0xf]  ;;  %v9225_v3 = vld [vmem:[#allocation8 + $0x3b4] sm:$0xf0]  ;;  %v6789_v14 = vor.u32 %v9207_v12, %v6788_v11  ;;  %v9223_v15 = vld [vmem:[#allocation8 + $0x3a4] sm:$0xf0] }
  0x62   :  { %2260 = vmatpush.bf16.msra.mxu2 %v6549_v20  ;;  %2273 = vmatpush.bf16.msra.mxu3 %v6613_v22  ;;  %v9215_v20 = vld [vmem:[#allocation8 + $0x364] sm:$0xf0]  ;;  %v6884_v22 = vld [vmem:[#allocation8 + $0x3e0] sm:$0xf]  ;;  %v6861_v4 = vor.u32 %v9225_v3, %v6860_v1  ;;  %v9281_v1 = vld [vmem:[#allocation8 + $0x574] sm:$0xf0] }
  0x63   :  { %6382 = vmatmul.msk.bf16.vlgmr.msrb.gmra.mxu0 %vm413_vm0, %v10202_v26  ;;  %6383 = vmatmul.msk.bf16.vlgmr.msrb.gmra.mxu1 %vm413_vm0, %v10202_v26  ;;  %v6821_v30 = vor.u32 %v9215_v20, %v6820_v19  ;;  %v6885_v31 = vor.u32 %v9231_v23, %v6884_v22  ;;  %v6708_v19 = vld [vmem:[#allocation8 + $0x280] sm:$0xf]  ;;  %v6780_v23 = vld [vmem:[#allocation8 + $0x310] sm:$0xf] }
  0x64   :  { %6384 = vmatmul.msk.bf16.vlgmr.msrb.gmra.mxu2 %vm413_vm0, %v10202_v26  ;;  %2235 = vmatpush.bf16.msra.mxu0 %v6413_v28  ;;  %v6748_v28 = vld [vmem:[#allocation8 + $0x2d0] sm:$0xf] }
  0x65   :  { %6385 = vmatmul.msk.bf16.vlgmr.msrb.gmra.mxu3 %vm413_vm0, %v10202_v26  ;;  %2248 = vmatpush.bf16.msra.mxu1 %v6477_v29  ;;  %v9107_v26 = vld [vmem:[#allocation8 + $0x4] sm:$0xf0]  ;;  %v9197_v29 = vld [vmem:[#allocation8 + $0x2d4] sm:$0xf0]  ;;  %v7004_v11 = vld [vmem:[#allocation8 + $0x4d0] sm:$0xf] }
  0x66   :  { %2261 = vmatpush.bf16.msra.mxu2 %v6541_v33  ;;  %2274 = vmatpush.bf16.msra.mxu3 %v6605_v35  ;;  %v6389_v2 = vor.u32 %v9107_v26, %v6388_v53  ;;  %v9213_v33 = vld [vmem:[#allocation8 + $0x354] sm:$0xf0]  ;;  %v6876_v35 = vld [vmem:[#allocation8 + $0x3d0] sm:$0xf]  ;;  %v6749_v37 = vor.u32 %v9197_v29, %v6748_v28 }
  0x67   :  { %v6813_v42 = vor.u32 %v9213_v33, %v6812_v32  ;;  %v6877_v43 = vor.u32 %v9229_v36, %v6876_v35  ;;  %v9193_v53 = vld [vmem:[#allocation8 + $0x2b4] sm:$0xf0]  ;;  %v6836_v33 = vld [vmem:[#allocation8 + $0x380] sm:$0xf]  ;;  %v10236_v36 = vld [vmem:[#allocation7] sm:$0xff] }
  0x68   :  { %2236 = vmatpush.bf16.msra.mxu0 %v6405_v40  ;;  %v6740_v40 = vld [vmem:[#allocation8 + $0x2c0] sm:$0xf]  ;;  %v9221_v28 = vld [vmem:[#allocation8 + $0x394] sm:$0xf0]  ;;  %v222_v38 = vperm.slane %v10236_v36, 1  ;;  %v224_v51 = vperm.slane %v10236_v36, 3 }
  0x69   :  { %2249 = vmatpush.bf16.msra.mxu1 %v6469_v41  ;;  %v9195_v41 = vld [vmem:[#allocation8 + $0x2c4] sm:$0xf0]  ;;  %v6845_v29 = vor.u32 %v9221_v28, %v6844_v25  ;;  %v226_v28 = vperm.slane %v10236_v36, 5 }
  0x6a   :  { %2262 = vmatpush.bf16.msra.mxu2 %v6533_v45  ;;  %2275 = vmatpush.bf16.msra.mxu3 %v6597_v47  ;;  %v9211_v45 = vld [vmem:[#allocation8 + $0x344] sm:$0xf0]  ;;  %v6868_v47 = vld [vmem:[#allocation8 + $0x3c0] sm:$0xf]  ;;  %v6741_v49 = vor.u32 %v9195_v41, %v6740_v40 }
  0x6b   :  { %v6805_v26 = vor.u32 %v9211_v45, %v6804_v44  ;;  %v9249_v44 = vld [vmem:[#allocation8 + $0x474] sm:$0xf0]  ;;  %v7020_v45 = vld [vmem:[#allocation8 + $0x4f0] sm:$0xf] }
  0x6c   :  { %2237 = vmatpush.bf16.msra.mxu0 %v6397_v52  ;;  %v6732_v52 = vld [vmem:[#allocation8 + $0x2b0] sm:$0xf] }
  0x6d   :  { %2250 = vmatpush.bf16.msra.mxu1 %v6461_v54  ;;  %v6869_v54 = vor.u32 %v9227_v48, %v6868_v47  ;;  %v6733_v56 = vor.u32 %v9193_v53, %v6732_v52  ;;  %v9265_v47 = vld [vmem:[#allocation8 + $0x4f4] sm:$0xf0] }
  0x6e   :  { %2263 = vmatpush.bf16.msra.mxu2 %v6525_v58  ;;  %2276 = vmatpush.bf16.msra.mxu3 %v6589_v62  ;;  %v9175_v58 = vld [vmem:[#allocation8 + $0x224] sm:$0xf0]  ;;  %v6725_v62 = vor.u32 %v9191_v60, %v6724_v59  ;;  %v7012_v59 = vld [vmem:[#allocation8 + $0x4e0] sm:$0xf] }
  0x6f   :  { %v6661_v61 = vor.u32 %v9175_v58, %v6660_v57  ;;  %v9263_v60 = vld [vmem:[#allocation8 + $0x4e4] sm:$0xf0] }
  0x70   :  { %2238 = vmatpush.bf16.msra.mxu0 %v6389_v2  ;;  %v6797_v2 = vor.u32 %v9209_v0, %v6796_v63  ;;  %v7084_v0 = vld [vmem:[#allocation8 + $0x570] sm:$0xf] }
  0x71   :  { %2251 = vmatpush.bf16.msra.mxu1 %v6453_v6  ;;  %v9173_v6 = vld [vmem:[#allocation8 + $0x214] sm:$0xf0] }
  0x72   :  { %2264 = vmatpush.bf16.msra.mxu2 %v6517_v13  ;;  %2277 = vmatpush.bf16.msra.mxu3 %v6581_v16  ;;  %v6653_v8 = vor.u32 %v9173_v6, %v6652_v5  ;;  %v6852_v13 = vld [vmem:[#allocation8 + $0x3a0] sm:$0xf]  ;;  %v9297_v6 = vld [vmem:[#allocation8 + $0x5f4] sm:$0xf0] }
  0x73   :  { %v6853_v16 = vor.u32 %v9223_v15, %v6852_v13  ;;  %v9261_v13 = vld [vmem:[#allocation8 + $0x4d4] sm:$0xf0]  ;;  %v7085_v15 = vor.u32 %v9281_v1, %v7084_v0 }
  0x74   :  { %2283 = vmatpush.bf16.msrb.mxu0 %v6701_v7  ;;  %v6716_v7 = vld [vmem:[#allocation8 + $0x290] sm:$0xf] }
  0x75   :  { %2296 = vmatpush.bf16.msrb.mxu1 %v6765_v10  ;;  %v6717_v10 = vor.u32 %v9189_v9, %v6716_v7  ;;  %v6940_v7 = vld [vmem:[#allocation8 + $0x450] sm:$0xf] }
  0x76   :  { %2309 = vmatpush.bf16.msrb.mxu2 %v6829_v17  ;;  %2322 = vmatpush.bf16.msrb.mxu3 %v6893_v18  ;;  %v6644_v17 = vld [vmem:[#allocation8 + $0x200] sm:$0xf]  ;;  %v9171_v18 = vld [vmem:[#allocation8 + $0x204] sm:$0xf0] }
  0x77   :  { %v6645_v20 = vor.u32 %v9171_v18, %v6644_v17  ;;  %v7076_v17 = vld [vmem:[#allocation8 + $0x560] sm:$0xf] }
  0x78   :  { %2284 = vmatpush.bf16.msrb.mxu0 %v6693_v21  ;;  %v9187_v21 = vld [vmem:[#allocation8 + $0x284] sm:$0xf0] }
  0x79   :  { %2297 = vmatpush.bf16.msrb.mxu1 %v6757_v24  ;;  %v6709_v22 = vor.u32 %v9187_v21, %v6708_v19  ;;  %v9205_v24 = vld [vmem:[#allocation8 + $0x314] sm:$0xf0] }
  0x7a   :  { %2310 = vmatpush.bf16.msrb.mxu2 %v6821_v30  ;;  %2323 = vmatpush.bf16.msrb.mxu3 %v6885_v31  ;;  %v6781_v27 = vor.u32 %v9205_v24, %v6780_v23  ;;  %v6772_v30 = vld [vmem:[#allocation8 + $0x300] sm:$0xf]  ;;  %v9203_v31 = vld [vmem:[#allocation8 + $0x304] sm:$0xf0] }
  0x7b   :  { %v6773_v32 = vor.u32 %v9203_v31, %v6772_v30  ;;  %v7140_v23 = vld [vmem:[#allocation8 + $0x5e0] sm:$0xf]  ;;  %v9295_v24 = vld [vmem:[#allocation8 + $0x5e4] sm:$0xf0] }
  0x7c   :  { %2285 = vmatpush.bf16.msrb.mxu0 %v6685_v34  ;;  %v9219_v34 = vld [vmem:[#allocation8 + $0x384] sm:$0xf0] }
  0x7d   :  { %2298 = vmatpush.bf16.msrb.mxu1 %v6749_v37  ;;  %v6837_v35 = vor.u32 %v9219_v34, %v6836_v33  ;;  %v221_v37 = vperm.slane %v10236_v36, 0  ;;  %v9243_v30 = vld [vmem:[#allocation8 + $0x444] sm:$0xf0] }
  0x7e   :  { %2311 = vmatpush.bf16.msrb.mxu2 %v6813_v42  ;;  %2324 = vmatpush.bf16.msrb.mxu3 %v6877_v43  ;;  %v6956_v43 = vld [vmem:[#allocation8 + $0x470] sm:$0xf]  ;;  %v9259_v33 = vld [vmem:[#allocation8 + $0x4c4] sm:$0xf0] }
  0x7f   :  { %v6957_v52 = vor.u32 %v9249_v44, %v6956_v43  ;;  %v9277_v43 = vld [vmem:[#allocation8 + $0x554] sm:$0xf0]  ;;  %v7132_v44 = vld [vmem:[#allocation8 + $0x5d0] sm:$0xf] }
  0x80   :  { %2286 = vmatpush.bf16.msrb.mxu0 %v6677_v46 }
  0x81   :  { %2299 = vmatpush.bf16.msrb.mxu1 %v6741_v49  ;;  %v223_v49 = vperm.slane %v10236_v36, 2 }
  0x82   :  { %2312 = vmatpush.bf16.msrb.mxu2 %v6805_v26  ;;  %2325 = vmatpush.bf16.msrb.mxu3 %v6869_v54  ;;  %v7021_v54 = vor.u32 %v9265_v47, %v7020_v45  ;;  %v9293_v45 = vld [vmem:[#allocation8 + $0x5d4] sm:$0xf0] }
  0x84   :  { %2287 = vmatpush.bf16.msrb.mxu0 %v6669_v55  ;;  %v6948_v55 = vld [vmem:[#allocation8 + $0x460] sm:$0xf] }
  0x85   :  { %2300 = vmatpush.bf16.msrb.mxu1 %v6733_v56  ;;  %v9247_v56 = vld [vmem:[#allocation8 + $0x464] sm:$0xf0] }
  0x86   :  { %2313 = vmatpush.bf16.msrb.mxu2 %v6797_v2  ;;  %2326 = vmatpush.bf16.msrb.mxu3 %v6861_v4  ;;  %v7148_v2 = vld [vmem:[#allocation8 + $0x5f0] sm:$0xf]  ;;  %v6949_v5 = vor.u32 %v9247_v56, %v6948_v55  ;;  %v228_v56 = vperm.slane %v10236_v36, 7 }
  0x88   :  { %2288 = vmatpush.bf16.msrb.mxu0 %v6661_v61 }
  0x89   :  { %2301 = vmatpush.bf16.msrb.mxu1 %v6725_v62 }
  0x8a   :  { %2314 = vmatpush.bf16.msrb.mxu2 %v6789_v14  ;;  %2327 = vmatpush.bf16.msrb.mxu3 %v6853_v16  ;;  %v225_v16 = vperm.slane %v10236_v36, 4 }
  0x8c   :  { %2289 = vmatpush.bf16.msrb.mxu0 %v6653_v8  ;;  %v9245_v8 = vld [vmem:[#allocation8 + $0x454] sm:$0xf0] }
  0x8d   :  { %2302 = vmatpush.bf16.msrb.mxu1 %v6717_v10  ;;  %v7013_v10 = vor.u32 %v9263_v60, %v7012_v59  ;;  %v6941_v21 = vor.u32 %v9245_v8, %v6940_v7  ;;  %v7133_v59 = vor.u32 %v9293_v45, %v7132_v44  ;;  %v9255_v8 = vld [vmem:[#allocation8 + $0x4a4] sm:$0xf0] }
  0x8e   :  { %2315 = vmatpush.bf16.msrb.mxu2 %v6781_v27  ;;  %2328 = vmatpush.bf16.msrb.mxu3 %v6845_v29  ;;  %v7005_v27 = vor.u32 %v9261_v13, %v7004_v11  ;;  %v6932_v29 = vld [vmem:[#allocation8 + $0x440] sm:$0xf]  ;;  %v7052_v13 = vld [vmem:[#allocation8 + $0x530] sm:$0xf]  ;;  %v9287_v44 = vld [vmem:[#allocation8 + $0x5a4] sm:$0xf0] }
  0x90   :  { %2290 = vmatpush.bf16.msrb.mxu0 %v6645_v20  ;;  %v7149_v20 = vor.u32 %v9297_v6, %v7148_v2 }
  0x91   :  { %2303 = vmatpush.bf16.msrb.mxu1 %v6709_v22  ;;  %v9279_v22 = vld [vmem:[#allocation8 + $0x564] sm:$0xf0] }
  0x92   :  { %2316 = vmatpush.bf16.msrb.mxu2 %v6773_v32  ;;  %2329 = vmatpush.bf16.msrb.mxu3 %v6837_v35  ;;  %v6996_v32 = vld [vmem:[#allocation8 + $0x4c0] sm:$0xf] }
  0x93   :  { %v6997_v47 = vor.u32 %v9259_v33, %v6996_v32 }
  0xb0   :  { %v426_v39 = vpop.f32.mrf.mxu0  ;;  %v439_v41 = vpop.f32.mrf.mxu1 }
  0xb1   :  { %v427_v40 = vadd.f32 %v426_v39, %v221_v37  ;;  %v440_v42 = vadd.f32 %v439_v41, %v222_v38  ;;  %v7077_v37 = vor.u32 %v9279_v22, %v7076_v17  ;;  %v7068_v38 = vld [vmem:[#allocation8 + $0x550] sm:$0xf]  ;;  %v7141_v41 = vor.u32 %v9295_v24, %v7140_v23  ;;  %v9237_v23 = vld [vmem:[#allocation8 + $0x414] sm:$0xf0] }
  0xb2   :  { %v7069_v55 = vor.u32 %v9277_v43, %v7068_v38  ;;  %v6908_v22 = vld [vmem:[#allocation8 + $0x410] sm:$0xf]  ;;  %v9271_v38 = vld [vmem:[#allocation8 + $0x524] sm:$0xf0]  ;;  %v7108_v43 = vld [vmem:[#allocation8 + $0x5a0] sm:$0xf] }
  0xb3   :  { %vm625_vm1 = vcmp.ge.f32.partialorder %v427_v40, 0.0  ;;  %v641_v46 = vmul.f32 0.01, %v427_v40  ;;  %vm626_vm2 = vcmp.ge.f32.partialorder %v440_v42, 0.0  ;;  %v642_v48 = vmul.f32 0.01, %v440_v42 }
  0xb5   :  { %v657_v50 = vsel %vm625_vm1, %v427_v40, %v641_v46  ;;  %v658_v26 = vsel %vm626_vm2, %v440_v42, %v642_v48  ;;  %v6933_v42 = vor.u32 %v9243_v30, %v6932_v29  ;;  %v6924_v48 = vld [vmem:[#allocation8 + $0x430] sm:$0xf] }
  0xb6   :  { %v10242_v53 = vpack.c.bf16 %v657_v50, %v657_v50  ;;  %v10244_v57 = vpack.c.bf16 %v658_v26, %v658_v26  ;;  %v6988_v50 = vld [vmem:[#allocation8 + $0x4b0] sm:$0xf]  ;;  %v9257_v26 = vld [vmem:[#allocation8 + $0x4b4] sm:$0xf0] }
  0xb7   :  { %v452_v58 = vpop.f32.mrf.mxu2  ;;  %v6989_v2 = vor.u32 %v9257_v26, %v6988_v50  ;;  %v6972_v29 = vld [vmem:[#allocation8 + $0x490] sm:$0xf]  ;;  %v9313_v26 = vld [vmem:[#allocation8 + $0x674] sm:$0xf0] }
  0xb8   :  { %v453_v61 = vadd.f32 %v452_v58, %v223_v49  ;;  %v465_v62 = vpop.f32.mrf.mxu3  ;;  %v428_v63 = vpop.f32.mrf.mxu0  ;;  %2239 = vmatmul.bf16.vlgmr.msra.gmra.mxu0 %v10242_v53  ;;  %2252 = vmatmul.bf16.vlgmr.msra.gmra.mxu1 %v10244_v57  ;;  %v9241_v49 = vld [vmem:[#allocation8 + $0x434] sm:$0xf0] }
  0xb9   :  { %v466_v3 = vadd.f32 %v465_v62, %v224_v51  ;;  %2335 = vmatpush.bf16.msra.mxu0 %v6957_v52  ;;  %v441_v4 = vpop.f32.mrf.mxu1  ;;  %2348 = vmatpush.bf16.msra.mxu1 %v7021_v54  ;;  %v227_v52 = vperm.slane %v10236_v36, 6  ;;  %v6925_v60 = vor.u32 %v9241_v49, %v6924_v48  ;;  %v9275_v62 = vld [vmem:[#allocation8 + $0x544] sm:$0xf0]  ;;  %v7124_v63 = vld [vmem:[#allocation8 + $0x5c0] sm:$0xf] }
  0xba   :  { %vm627_vm3 = vcmp.ge.f32.partialorder %v453_v61, 0.0  ;;  %v643_v9 = vmul.f32 0.01, %v453_v61  ;;  %v6916_v4 = vld [vmem:[#allocation8 + $0x420] sm:$0xf] }
  0xbb   :  { %vm628_vm4 = vcmp.ge.f32.partialorder %v466_v3, 0.0  ;;  %v644_v12 = vmul.f32 0.01, %v466_v3  ;;  %v6980_v36 = vld [vmem:[#allocation8 + $0x4a0] sm:$0xf] }
  0xbc   :  { %v659_v14 = vsel %vm627_vm3, %v453_v61, %v643_v9  ;;  %v7060_v61 = vld [vmem:[#allocation8 + $0x540] sm:$0xf]  ;;  %v9235_v48 = vld [vmem:[#allocation8 + $0x404] sm:$0xf0] }
  0xbd   :  { %v10249_v18 = vpack.c.bf16 %v659_v14, %v659_v14  ;;  %v660_v19 = vsel %vm628_vm4, %v466_v3, %v644_v12  ;;  %2336 = vmatpush.bf16.msra.mxu0 %v6949_v5  ;;  %2349 = vmatpush.bf16.msra.mxu1 %v7013_v10  ;;  %v9291_v3 = vld [vmem:[#allocation8 + $0x5c4] sm:$0xf0]  ;;  %v7061_v12 = vor.u32 %v9275_v62, %v7060_v61  ;;  %v9273_v14 = vld [vmem:[#allocation8 + $0x534] sm:$0xf0]  ;;  %v6964_v49 = vld [vmem:[#allocation8 + $0x480] sm:$0xf] }
  0xbe   :  { %v10251_v25 = vpack.c.bf16 %v660_v19, %v660_v19  ;;  %v9239_v5 = vld [vmem:[#allocation8 + $0x424] sm:$0xf0]  ;;  %v7125_v19 = vor.u32 %v9291_v3, %v7124_v63  ;;  %v7053_v33 = vor.u32 %v9273_v14, %v7052_v13  ;;  %v7109_v63 = vor.u32 %v9287_v44, %v7108_v43  ;;  %v7100_v3 = vld [vmem:[#allocation8 + $0x590] sm:$0xf] }
  0xbf   :  { %v454_v31 = vpop.f32.mrf.mxu2  ;;  %2265 = vmatmul.bf16.vlgmr.msra.gmra.mxu2 %v10249_v18  ;;  %v9327_v14 = vld [vmem:[#allocation8 + $0x6e4] sm:$0xf0] }
  0xc0   :  { %v467_v34 = vpop.f32.mrf.mxu3  ;;  %2278 = vmatmul.bf16.vlgmr.msra.gmra.mxu3 %v10251_v25  ;;  %2361 = vmatpush.bf16.msra.mxu2 %v7085_v15  ;;  %v478_v35 = vpop.f32.mrf.mxu0  ;;  %v7116_v15 = vld [vmem:[#allocation8 + $0x5b0] sm:$0xf]  ;;  %v9253_v31 = vld [vmem:[#allocation8 + $0x494] sm:$0xf0] }
  0xc1   :  { %2374 = vmatpush.bf16.msra.mxu3 %v7149_v20  ;;  %v479_v39 = vadd.f32 %v478_v35, %v225_v16  ;;  %2337 = vmatpush.bf16.msra.mxu0 %v6941_v21  ;;  %v491_v40 = vpop.f32.mrf.mxu1  ;;  %v6917_v20 = vor.u32 %v9239_v5, %v6916_v4  ;;  %v9289_v21 = vld [vmem:[#allocation8 + $0x5b4] sm:$0xf0]  ;;  %v6909_v35 = vor.u32 %v9237_v23, %v6908_v22  ;;  %v9267_v22 = vld [vmem:[#allocation8 + $0x504] sm:$0xf0]  ;;  %v7092_v23 = vld [vmem:[#allocation8 + $0x580] sm:$0xf] }
  0xc2   :  { %2350 = vmatpush.bf16.msra.mxu1 %v7005_v27  ;;  %v492_v46 = vadd.f32 %v491_v40, %v226_v28  ;;  %v6981_v27 = vor.u32 %v9255_v8, %v6980_v36  ;;  %v10263_v28 = vld [vmem:[#allocation7 + $0x8] sm:$0xff]  ;;  %v7117_v34 = vor.u32 %v9289_v21, %v7116_v15  ;;  %v7204_v8 = vld [vmem:[#allocation8 + $0x660] sm:$0xf] }
  0xc3   :  { %vm629_vm5 = vcmp.ge.f32.partialorder %v479_v39, 0.0  ;;  %v645_v51 = vmul.f32 0.01, %v479_v39  ;;  %v9285_v4 = vld [vmem:[#allocation8 + $0x594] sm:$0xf0]  ;;  %v231_v13 = vperm.slane %v10263_v28, 2 }
  0xc4   :  { %vm630_vm6 = vcmp.ge.f32.partialorder %v492_v46, 0.0  ;;  %v646_v54 = vmul.f32 0.01, %v492_v46  ;;  %2362 = vmatpush.bf16.msra.mxu2 %v7077_v37  ;;  %v7044_v37 = vld [vmem:[#allocation8 + $0x520] sm:$0xf]  ;;  %v7101_v21 = vor.u32 %v9285_v4, %v7100_v3 }
  0xc5   :  { %v661_v58 = vsel %vm629_vm5, %v479_v39, %v645_v51  ;;  %2375 = vmatpush.bf16.msra.mxu3 %v7141_v41  ;;  %2338 = vmatpush.bf16.msra.mxu0 %v6933_v42  ;;  %v229_v41 = vperm.slane %v10263_v28, 0  ;;  %v230_v42 = vperm.slane %v10263_v28, 1  ;;  %v9251_v51 = vld [vmem:[#allocation8 + $0x484] sm:$0xf0]  ;;  %v7252_v3 = vld [vmem:[#allocation8 + $0x6c0] sm:$0xf] }
  0xc6   :  { %v10258_v0 = vpack.c.bf16 %v661_v58, %v661_v58  ;;  %v662_v1 = vsel %vm630_vm6, %v492_v46, %v646_v54  ;;  %2351 = vmatpush.bf16.msra.mxu1 %v6997_v47  ;;  %v6973_v46 = vor.u32 %v9253_v31, %v6972_v29  ;;  %v6900_v47 = vld [vmem:[#allocation8 + $0x400] sm:$0xf]  ;;  %v7276_v58 = vld [vmem:[#allocation8 + $0x6f0] sm:$0xf]  ;;  %v9323_v4 = vld [vmem:[#allocation8 + $0x6c4] sm:$0xf0] }
  0xc7   :  { %v10260_v6 = vpack.c.bf16 %v662_v1, %v662_v1  ;;  %v504_v7 = vpop.f32.mrf.mxu2  ;;  %v6901_v1 = vor.u32 %v9235_v48, %v6900_v47  ;;  %v7340_v31 = vld [vmem:[#allocation8 + $0x770] sm:$0xf]  ;;  %v9325_v47 = vld [vmem:[#allocation8 + $0x6d4] sm:$0xf0]  ;;  %v7332_v48 = vld [vmem:[#allocation8 + $0x760] sm:$0xf] }
  0xc8   :  { %v505_v9 = vadd.f32 %v504_v7, %v227_v52  ;;  %2363 = vmatpush.bf16.msra.mxu2 %v7069_v55  ;;  %v480_v10 = vpop.f32.mrf.mxu0  ;;  %v517_v11 = vpop.f32.mrf.mxu3  ;;  %2291 = vmatmul.bf16.vlgmr.msrb.gmra.mxu0 %v10258_v0  ;;  %v7212_v52 = vld [vmem:[#allocation8 + $0x670] sm:$0xf]  ;;  %v6965_v7 = vor.u32 %v9251_v51, %v6964_v49 }
  0xc9   :  { %2376 = vmatpush.bf16.msra.mxu3 %v7133_v59  ;;  %v518_v16 = vadd.f32 %v517_v11, %v228_v56  ;;  %2339 = vmatpush.bf16.msra.mxu0 %v6925_v60  ;;  %v493_v17 = vpop.f32.mrf.mxu1  ;;  %v7045_v56 = vor.u32 %v9271_v38, %v7044_v37  ;;  %v9329_v59 = vld [vmem:[#allocation8 + $0x6f4] sm:$0xf0]  ;;  %v7036_v60 = vld [vmem:[#allocation8 + $0x510] sm:$0xf]  ;;  %v7213_v36 = vor.u32 %v9313_v26, %v7212_v52  ;;  %v7268_v10 = vld [vmem:[#allocation8 + $0x6e0] sm:$0xf] }
  0xca   :  { %vm631_vm7 = vcmp.ge.f32.partialorder %v505_v9, 0.0  ;;  %v647_v24 = vmul.f32 0.01, %v505_v9  ;;  %2352 = vmatpush.bf16.msra.mxu1 %v6989_v2  ;;  %v9269_v2 = vld [vmem:[#allocation8 + $0x514] sm:$0xf0]  ;;  %v232_v17 = vperm.slane %v10263_v28, 3 }
  0xcb   :  { %vm632_vm8 = vcmp.ge.f32.partialorder %v518_v16, 0.0  ;;  %v648_v30 = vmul.f32 0.01, %v518_v16  ;;  %2304 = vmatmul.bf16.vlgmr.msrb.gmra.mxu1 %v10260_v6  ;;  %v9361_v37 = vld [vmem:[#allocation8 + $0x7f4] sm:$0xf0] }
  0xcc   :  { %v663_v32 = vsel %vm631_vm7, %v505_v9, %v647_v24  ;;  %2364 = vmatpush.bf16.msra.mxu2 %v7061_v12  ;;  %v9311_v9 = vld [vmem:[#allocation8 + $0x664] sm:$0xf0]  ;;  %v7277_v12 = vor.u32 %v9329_v59, %v7276_v58  ;;  %v7196_v38 = vld [vmem:[#allocation8 + $0x650] sm:$0xf] }
  0xcd   :  { %v10266_v39 = vpack.c.bf16 %v663_v32, %v663_v32  ;;  %v664_v40 = vsel %vm632_vm8, %v518_v16, %v648_v30  ;;  %2377 = vmatpush.bf16.msra.mxu3 %v7125_v19  ;;  %2340 = vmatpush.bf16.msra.mxu0 %v6917_v20  ;;  %v7037_v16 = vor.u32 %v9269_v2, %v7036_v60  ;;  %v7028_v19 = vld [vmem:[#allocation8 + $0x500] sm:$0xf]  ;;  %v9283_v24 = vld [vmem:[#allocation8 + $0x584] sm:$0xf0]  ;;  %v9345_v32 = vld [vmem:[#allocation8 + $0x774] sm:$0xf0] }
  0xce   :  { %v10270_v45 = vpack.c.bf16 %v664_v40, %v664_v40  ;;  %2353 = vmatpush.bf16.msra.mxu1 %v6981_v27  ;;  %v7205_v30 = vor.u32 %v9311_v9, %v7204_v8  ;;  %v9309_v40 = vld [vmem:[#allocation8 + $0x654] sm:$0xf0]  ;;  %v7029_v44 = vor.u32 %v9267_v22, %v7028_v19  ;;  %v7093_v51 = vor.u32 %v9283_v24, %v7092_v23  ;;  %v9343_v26 = vld [vmem:[#allocation8 + $0x764] sm:$0xf0] }
  0xcf   :  { %v506_v50 = vpop.f32.mrf.mxu2  ;;  %2317 = vmatmul.bf16.vlgmr.msrb.gmra.mxu2 %v10266_v39  ;;  %v7341_v52 = vor.u32 %v9345_v32, %v7340_v31  ;;  %v7197_v60 = vor.u32 %v9309_v40, %v7196_v38  ;;  %v7172_v40 = vld [vmem:[#allocation8 + $0x620] sm:$0xf] }
  0xd0   :  { %2365 = vmatpush.bf16.msra.mxu2 %v7053_v33  ;;  %v519_v54 = vpop.f32.mrf.mxu3  ;;  %v530_v55 = vpop.f32.mrf.mxu0  ;;  %2330 = vmatmul.bf16.vlgmr.msrb.gmra.mxu3 %v10270_v45  ;;  %v7404_v33 = vld [vmem:[#allocation8 + $0x7f0] sm:$0xf] }
  0xd1   :  { %2378 = vmatpush.bf16.msra.mxu3 %v7117_v34  ;;  %v531_v61 = vadd.f32 %v530_v55, %v229_v41  ;;  %2341 = vmatpush.bf16.msra.mxu0 %v6909_v35  ;;  %v543_v62 = vpop.f32.mrf.mxu1  ;;  %v7269_v35 = vor.u32 %v9327_v14, %v7268_v10  ;;  %v7396_v54 = vld [vmem:[#allocation8 + $0x7e0] sm:$0xf]  ;;  %v9359_v55 = vld [vmem:[#allocation8 + $0x7e4] sm:$0xf0]  ;;  %v7405_v59 = vor.u32 %v9361_v37, %v7404_v33  ;;  %v233_v37 = vperm.slane %v10263_v28, 4 }
  0xd2   :  { %2354 = vmatpush.bf16.msra.mxu1 %v6973_v46  ;;  %v544_v5 = vadd.f32 %v543_v62, %v230_v42  ;;  %v7260_v46 = vld [vmem:[#allocation8 + $0x6d0] sm:$0xf]  ;;  %v7397_v9 = vor.u32 %v9359_v55, %v7396_v54  ;;  %v7253_v14 = vor.u32 %v9323_v4, %v7252_v3  ;;  %v9351_v3 = vld [vmem:[#allocation8 + $0x7a4] sm:$0xf0] }
  0xd3   :  { %vm633_vm9 = vcmp.ge.f32.partialorder %v531_v61, 0.0  ;;  %v649_v11 = vmul.f32 0.01, %v531_v61  ;;  %v7164_v55 = vld [vmem:[#allocation8 + $0x610] sm:$0xf] }
  0xd4   :  { %vm634_vm10 = vcmp.ge.f32.partialorder %v544_v5, 0.0  ;;  %v650_v15 = vmul.f32 0.01, %v544_v5  ;;  %2366 = vmatpush.bf16.msra.mxu2 %v7045_v56 }
  0xd5   :  { %v665_v20 = vsel %vm633_vm9, %v531_v61, %v649_v11  ;;  %2379 = vmatpush.bf16.msra.mxu3 %v7109_v63  ;;  %2342 = vmatpush.bf16.msra.mxu0 %v6901_v1  ;;  %v7188_v61 = vld [vmem:[#allocation8 + $0x640] sm:$0xf]  ;;  %v7261_v63 = vor.u32 %v9325_v47, %v7260_v46  ;;  %v9307_v1 = vld [vmem:[#allocation8 + $0x644] sm:$0xf0]  ;;  %v7324_v11 = vld [vmem:[#allocation8 + $0x750] sm:$0xf] }
  0xd6   :  { %v10276_v27 = vpack.c.bf16 %v665_v20, %v665_v20  ;;  %v666_v29 = vsel %vm634_vm10, %v544_v5, %v650_v15  ;;  %2355 = vmatpush.bf16.msra.mxu1 %v6965_v7  ;;  %v7189_v10 = vor.u32 %v9307_v1, %v7188_v61  ;;  %v9357_v15 = vld [vmem:[#allocation8 + $0x7d4] sm:$0xf0]  ;;  %v7244_v20 = vld [vmem:[#allocation8 + $0x6b0] sm:$0xf]  ;;  %v9319_v46 = vld [vmem:[#allocation8 + $0x6a4] sm:$0xf0] }
  0xd7   :  { %v556_v34 = vpop.f32.mrf.mxu2  ;;  %v10278_v41 = vpack.c.bf16 %v666_v29, %v666_v29  ;;  %v7316_v29 = vld [vmem:[#allocation8 + $0x740] sm:$0xf]  ;;  %v9335_v1 = vld [vmem:[#allocation8 + $0x724] sm:$0xf0] }
  0xd8   :  { %v557_v42 = vadd.f32 %v556_v34, %v231_v13  ;;  %2367 = vmatpush.bf16.msra.mxu2 %v7037_v16  ;;  %v569_v43 = vpop.f32.mrf.mxu3  ;;  %2343 = vmatmul.bf16.vlgmr.msra.gmra.mxu0 %v10276_v27  ;;  %v532_v49 = vpop.f32.mrf.mxu0  ;;  %v7388_v13 = vld [vmem:[#allocation8 + $0x7d0] sm:$0xf]  ;;  %v7380_v34 = vld [vmem:[#allocation8 + $0x7c0] sm:$0xf] }
  0xd9   :  { %2387 = vmatpush.bf16.msrb.mxu0 %v7213_v36  ;;  %2380 = vmatpush.bf16.msra.mxu3 %v7101_v21  ;;  %v570_v50 = vadd.f32 %v569_v43, %v232_v17  ;;  %v545_v56 = vpop.f32.mrf.mxu1  ;;  %v7333_v36 = vor.u32 %v9343_v26, %v7332_v48  ;;  %v7180_v16 = vld [vmem:[#allocation8 + $0x630] sm:$0xf]  ;;  %v9305_v17 = vld [vmem:[#allocation8 + $0x634] sm:$0xf0]  ;;  %v7389_v32 = vor.u32 %v9357_v15, %v7388_v13  ;;  %v234_v43 = vperm.slane %v10263_v28, 5 }
  0xda   :  { %2400 = vmatpush.bf16.msrb.mxu1 %v7277_v12  ;;  %vm635_vm11 = vcmp.ge.f32.partialorder %v557_v42, 0.0  ;;  %v651_v58 = vmul.f32 0.01, %v557_v42  ;;  %v9341_v12 = vld [vmem:[#allocation8 + $0x754] sm:$0xf0]  ;;  %v7181_v33 = vor.u32 %v9305_v17, %v7180_v16  ;;  %v236_v17 = vperm.slane %v10263_v28, 7 }
  0xdb   :  { %vm636_vm12 = vcmp.ge.f32.partialorder %v570_v50, 0.0  ;;  %v652_v62 = vmul.f32 0.01, %v570_v50  ;;  %2356 = vmatmul.bf16.vlgmr.msra.gmra.mxu1 %v10278_v41  ;;  %v9321_v21 = vld [vmem:[#allocation8 + $0x6b4] sm:$0xf0]  ;;  %v7325_v24 = vor.u32 %v9341_v12, %v7324_v11  ;;  %v235_v11 = vperm.slane %v10263_v28, 6 }
  0xdc   :  { %v667_v2 = vsel %vm635_vm11, %v557_v42, %v651_v58  ;;  %2368 = vmatpush.bf16.msra.mxu2 %v7029_v44  ;;  %v7245_v38 = vor.u32 %v9321_v21, %v7244_v20  ;;  %v9303_v42 = vld [vmem:[#allocation8 + $0x624] sm:$0xf0]  ;;  %v7236_v44 = vld [vmem:[#allocation8 + $0x6a0] sm:$0xf]  ;;  %v7308_v48 = vld [vmem:[#allocation8 + $0x730] sm:$0xf] }
  0xdd   :  { %2388 = vmatpush.bf16.msrb.mxu0 %v7205_v30  ;;  %v10282_v5 = vpack.c.bf16 %v667_v2, %v667_v2  ;;  %v668_v7 = vsel %vm636_vm12, %v570_v50, %v652_v62  ;;  %2381 = vmatpush.bf16.msra.mxu3 %v7093_v51  ;;  %v9339_v30 = vld [vmem:[#allocation8 + $0x744] sm:$0xf0]  ;;  %v9337_v49 = vld [vmem:[#allocation8 + $0x734] sm:$0xf0]  ;;  %v7173_v51 = vor.u32 %v9303_v42, %v7172_v40  ;;  %v7364_v2 = vld [vmem:[#allocation8 + $0x7a0] sm:$0xf] }
  0xde   :  { %2401 = vmatpush.bf16.msrb.mxu1 %v7269_v35  ;;  %v10284_v8 = vpack.c.bf16 %v668_v7, %v668_v7  ;;  %v9355_v35 = vld [vmem:[#allocation8 + $0x7c4] sm:$0xf0]  ;;  %v7317_v47 = vor.u32 %v9339_v30, %v7316_v29  ;;  %v9353_v26 = vld [vmem:[#allocation8 + $0x7b4] sm:$0xf0]  ;;  %v7237_v56 = vor.u32 %v9319_v46, %v7236_v44  ;;  %v7220_v16 = vld [vmem:[#allocation8 + $0x680] sm:$0xf]  ;;  %v7365_v29 = vor.u32 %v9351_v3, %v7364_v2 }
  0xdf   :  { %2369 = vmatmul.bf16.vlgmr.msra.gmra.mxu2 %v10282_v5  ;;  %v558_v19 = vpop.f32.mrf.mxu2  ;;  %v7381_v50 = vor.u32 %v9355_v35, %v7380_v34  ;;  %v9301_v58 = vld [vmem:[#allocation8 + $0x614] sm:$0xf0]  ;;  %v9315_v21 = vld [vmem:[#allocation8 + $0x684] sm:$0xf0]  ;;  %v9118_v46 = vld [vmem:[#allocation8 + $0x64] sm:$0xf] }
  0xe0   :  { %2413 = vmatpush.bf16.msrb.mxu2 %v7341_v52  ;;  %2382 = vmatmul.bf16.vlgmr.msra.gmra.mxu3 %v10284_v8  ;;  %v571_v22 = vpop.f32.mrf.mxu3  ;;  %v582_v23 = vpop.f32.mrf.mxu0  ;;  %v7372_v52 = vld [vmem:[#allocation8 + $0x7b0] sm:$0xf]  ;;  %v7165_v15 = vor.u32 %v9301_v58, %v7164_v55  ;;  %v9333_v28 = vld [vmem:[#allocation8 + $0x714] sm:$0xf0]  ;;  %v6574_v3 = vld [vmem:[#allocation8 + $0x178] sm:$0xf0] }
  0xe1   :  { %2426 = vmatpush.bf16.msrb.mxu3 %v7405_v59  ;;  %2389 = vmatpush.bf16.msrb.mxu0 %v7197_v60  ;;  %v595_v31 = vpop.f32.mrf.mxu1  ;;  %v583_v54 = vadd.f32 %v582_v23, %v233_v37  ;;  %v7228_v59 = vld [vmem:[#allocation8 + $0x690] sm:$0xf]  ;;  %v9317_v60 = vld [vmem:[#allocation8 + $0x694] sm:$0xf0]  ;;  %v7373_v13 = vor.u32 %v9353_v26, %v7372_v52  ;;  %v9120_v22 = vld [vmem:[#allocation8 + $0x74] sm:$0xf] }
  0xe2   :  { %2402 = vmatpush.bf16.msrb.mxu1 %v7261_v63  ;;  %v596_v61 = vadd.f32 %v595_v31, %v234_v43  ;;  %v7300_v63 = vld [vmem:[#allocation8 + $0x720] sm:$0xf]  ;;  %v7229_v19 = vor.u32 %v9317_v60, %v7228_v59  ;;  %v6446_v23 = vld [vmem:[#allocation8 + $0x78] sm:$0xf0]  ;;  %v9136_v31 = vld [vmem:[#allocation8 + $0xf4] sm:$0xf]  ;;  %v7221_v43 = vor.u32 %v9315_v21, %v7220_v16 }
  0xe3   :  { %vm637_vm13 = vcmp.ge.f32.partialorder %v583_v54, 0.0  ;;  %v7356_v37 = vld [vmem:[#allocation8 + $0x790] sm:$0xf]  ;;  %v6449_v44 = vor.u32 %v9120_v22, %v6446_v23  ;;  %v7284_v52 = vld [vmem:[#allocation8 + $0x700] sm:$0xf] }
  0xe4   :  { %2414 = vmatpush.bf16.msrb.mxu2 %v7333_v36  ;;  %v7309_v36 = vor.u32 %v9337_v49, %v7308_v48  ;;  %v654_v20 = vmul.f32 0.01, %v596_v61  ;;  %vm638_vm14 = vcmp.ge.f32.partialorder %v596_v61, 0.0  ;;  %v9134_v48 = vld [vmem:[#allocation8 + $0xe4] sm:$0xf] }
  0xe5   :  { %2427 = vmatpush.bf16.msrb.mxu3 %v7397_v9  ;;  %2390 = vmatpush.bf16.msrb.mxu0 %v7189_v10  ;;  %v7156_v9 = vld [vmem:[#allocation8 + $0x600] sm:$0xf]  ;;  %v9299_v10 = vld [vmem:[#allocation8 + $0x604] sm:$0xf0]  ;;  %v9150_v21 = vld [vmem:[#allocation8 + $0x164] sm:$0xf] }
  0xe6   :  { %2403 = vmatpush.bf16.msrb.mxu1 %v7253_v14  ;;  %v653_v14 = vmul.f32 0.01, %v583_v54  ;;  %v7157_v35 = vor.u32 %v9299_v10, %v7156_v9  ;;  %v670_v42 = vsel %vm638_vm14, %v596_v61, %v654_v20  ;;  %v9331_v26 = vld [vmem:[#allocation8 + $0x704] sm:$0xf0]  ;;  %v7348_v59 = vld [vmem:[#allocation8 + $0x780] sm:$0xf] }
  0xe7   :  { %v608_v62 = vpop.f32.mrf.mxu2  ;;  %v9347_v60 = vld [vmem:[#allocation8 + $0x784] sm:$0xf0]  ;;  %v9116_v9 = vld [vmem:[#allocation8 + $0x54] sm:$0xf]  ;;  %v6430_v10 = vld [vmem:[#allocation8 + $0x58] sm:$0xf0] }
  0xe8   :  { %2415 = vmatpush.bf16.msrb.mxu2 %v7325_v24  ;;  %v621_v4 = vpop.f32.mrf.mxu3  ;;  %v584_v7 = vpop.f32.mrf.mxu0  ;;  %v7301_v24 = vor.u32 %v9335_v1, %v7300_v63  ;;  %v609_v30 = vadd.f32 %v608_v62, %v235_v11  ;;  %v669_v34 = vsel %vm637_vm13, %v583_v54, %v653_v14  ;;  %v10295_v62 = vpack.c.bf16 %v670_v42, %v670_v42  ;;  %v9152_v1 = vld [vmem:[#allocation8 + $0x174] sm:$0xf]  ;;  %v6494_v14 = vld [vmem:[#allocation8 + $0xd8] sm:$0xf0]  ;;  %v6566_v22 = vld [vmem:[#allocation8 + $0x168] sm:$0xf0] }
  0xe9   :  { %2428 = vmatpush.bf16.msrb.mxu3 %v7389_v32  ;;  %2391 = vmatpush.bf16.msrb.mxu0 %v7181_v33  ;;  %v597_v12 = vpop.f32.mrf.mxu1  ;;  %v6510_v32 = vld [vmem:[#allocation8 + $0xf8] sm:$0xf0]  ;;  %v7292_v33 = vld [vmem:[#allocation8 + $0x710] sm:$0xf]  ;;  %v622_v40 = vadd.f32 %v621_v4, %v236_v17  ;;  %v10293_v55 = vpack.c.bf16 %v669_v34, %v669_v34  ;;  %v9168_v4 = vld [vmem:[#allocation8 + $0x1f4] sm:$0xf]  ;;  %v7349_v16 = vor.u32 %v9347_v60, %v7348_v59 }
  0xea   :  { %2404 = vmatpush.bf16.msrb.mxu1 %v7245_v38  ;;  %v9349_v38 = vld [vmem:[#allocation8 + $0x794] sm:$0xf0]  ;;  %v7293_v58 = vor.u32 %v9333_v28, %v7292_v33  ;;  %vm639_vm15 = vcmp.ge.f32.partialorder %v609_v30, 0.0  ;;  %v7285_v12 = vor.u32 %v9331_v26, %v7284_v52  ;;  %v6577_v17 = vor.u32 %v9152_v1, %v6574_v3  ;;  %v9166_v23 = vld [vmem:[#allocation8 + $0x1e4] sm:$0xf] }
  0xeb   :  { %v7357_v61 = vor.u32 %v9349_v38, %v7356_v37  ;;  %v656_v63 = vmul.f32 0.01, %v622_v40  ;;  %vm640_vm0 = vcmp.ge.f32.partialorder %v622_v40, 0.0  ;;  %v6433_v20 = vor.u32 %v9116_v9, %v6430_v10  ;;  %v9130_v34 = vld [vmem:[#allocation8 + $0xc4] sm:$0xf] }
  0xec   :  { %2416 = vmatpush.bf16.msrb.mxu2 %v7317_v47  ;;  %v6438_v47 = vld [vmem:[#allocation8 + $0x68] sm:$0xf0]  ;;  %v6569_v28 = vor.u32 %v9150_v21, %v6566_v22  ;;  %v6558_v42 = vld [vmem:[#allocation8 + $0x158] sm:$0xf0]  ;;  %v9126_v1 = vld [vmem:[#allocation8 + $0xa4] sm:$0xf] }
  0xed   :  { %2429 = vmatpush.bf16.msrb.mxu3 %v7381_v50  ;;  %2392 = vmatpush.bf16.msrb.mxu0 %v7173_v51  ;;  %v6513_v50 = vor.u32 %v9136_v31, %v6510_v32  ;;  %v6502_v51 = vld [vmem:[#allocation8 + $0xe8] sm:$0xf0]  ;;  %v6441_v2 = vor.u32 %v9118_v46, %v6438_v47  ;;  %v9114_v31 = vld [vmem:[#allocation8 + $0x44] sm:$0xf]  ;;  %v6622_v46 = vld [vmem:[#allocation8 + $0x1d8] sm:$0xf0] }
  0xee   :  { %2405 = vmatpush.bf16.msrb.mxu1 %v7237_v56  ;;  %v655_v56 = vmul.f32 0.01, %v609_v30  ;;  %v6505_v7 = vor.u32 %v9134_v48, %v6502_v51  ;;  %v6422_v32 = vld [vmem:[#allocation8 + $0x48] sm:$0xf0]  ;;  %v9112_v47 = vld [vmem:[#allocation8 + $0x34] sm:$0xf] }
  0xef   :  { %v610_v49 = vpop.f32.mrf.mxu2  ;;  %v6425_v38 = vor.u32 %v9114_v31, %v6422_v32  ;;  %v6414_v48 = vld [vmem:[#allocation8 + $0x38] sm:$0xf0]  ;;  %v6614_v60 = vld [vmem:[#allocation8 + $0x1c8] sm:$0xf0]  ;;  %v9160_v10 = vld [vmem:[#allocation8 + $0x1b4] sm:$0xf] }
  0xf0   :  { %2417 = vmatpush.bf16.msrb.mxu2 %v7309_v36  ;;  %v623_v54 = vpop.f32.mrf.mxu3  ;;  %v6638_v36 = vld [vmem:[#allocation8 + $0x1f8] sm:$0xf0]  ;;  %v671_v11 = vsel %vm639_vm15, %v609_v30, %v655_v56  ;;  %v6630_v30 = vld [vmem:[#allocation8 + $0x1e8] sm:$0xf0]  ;;  %v9128_v49 = vld [vmem:[#allocation8 + $0xb4] sm:$0xf]  ;;  %v6417_v26 = vor.u32 %v9112_v47, %v6414_v48 }
  0xf1   :  { %2430 = vmatpush.bf16.msrb.mxu3 %v7373_v13  ;;  %2393 = vmatpush.bf16.msrb.mxu0 %v7165_v15  ;;  %v9132_v13 = vld [vmem:[#allocation8 + $0xd4] sm:$0xf]  ;;  %v672_v15 = vsel %vm640_vm0, %v622_v40, %v656_v63  ;;  %v6633_v37 = vor.u32 %v9166_v23, %v6630_v30  ;;  %v9146_v54 = vld [vmem:[#allocation8 + $0x144] sm:$0xf]  ;;  %v6550_v56 = vld [vmem:[#allocation8 + $0x148] sm:$0xf0] }
  0xf2   :  { %2406 = vmatpush.bf16.msrb.mxu1 %v7229_v19  ;;  %v6641_v19 = vor.u32 %v9168_v4, %v6638_v36  ;;  %v10302_v33 = vpack.c.bf16 %v672_v15, %v672_v15  ;;  %v9148_v40 = vld [vmem:[#allocation8 + $0x154] sm:$0xf]  ;;  %v6406_v63 = vld [vmem:[#allocation8 + $0x28] sm:$0xf0]  ;;  %v6553_v3 = vor.u32 %v9146_v54, %v6550_v56  ;;  %v6542_v9 = vld [vmem:[#allocation8 + $0x138] sm:$0xf0] }
  0xf3   :  { %v6561_v51 = vor.u32 %v9148_v40, %v6558_v42  ;;  %v9144_v36 = vld [vmem:[#allocation8 + $0x134] sm:$0xf]  ;;  %v6534_v22 = vld [vmem:[#allocation8 + $0x128] sm:$0xf0]  ;;  %v9158_v23 = vld [vmem:[#allocation8 + $0x1a4] sm:$0xf] }
  0xf4   :  { %2418 = vmatpush.bf16.msrb.mxu2 %v7301_v24  ;;  %v10300_v24 = vpack.c.bf16 %v671_v11, %v671_v11  ;;  %v9124_v15 = vld [vmem:[#allocation8 + $0x94] sm:$0xf]  ;;  %v9106_v31 = vld [vmem:[#allocation8 + $0x4] sm:$0xf]  ;;  %v6390_v32 = vld [vmem:[#allocation8 + $0x8] sm:$0xf0] }
  0xf5   :  { %2431 = vmatpush.bf16.msrb.mxu3 %v7365_v29  ;;  %2394 = vmatpush.bf16.msrb.mxu0 %v7157_v35  ;;  %v6497_v29 = vor.u32 %v9132_v13, %v6494_v14  ;;  %v6486_v35 = vld [vmem:[#allocation8 + $0xc8] sm:$0xf0]  ;;  %v9108_v13 = vld [vmem:[#allocation8 + $0x14] sm:$0xf]  ;;  %v6398_v14 = vld [vmem:[#allocation8 + $0x18] sm:$0xf0] }
  0xf6   :  { %2407 = vmatpush.bf16.msrb.mxu1 %v7221_v43  ;;  %v9164_v43 = vld [vmem:[#allocation8 + $0x1d4] sm:$0xf]  ;;  %v6401_v21 = vor.u32 %v9108_v13, %v6398_v14  ;;  %v6766_v42 = vld [vmem:[#allocation8 + $0x2f8] sm:$0xf0]  ;;  %v6694_v54 = vld [vmem:[#allocation8 + $0x268] sm:$0xf0] }
  0xf7   :  { %v6625_v52 = vor.u32 %v9164_v43, %v6622_v46  ;;  %v9200_v40 = vld [vmem:[#allocation8 + $0x2f4] sm:$0xf]  ;;  %v6526_v47 = vld [vmem:[#allocation8 + $0x118] sm:$0xf0] }
  0xf8   :  { %2419 = vmatpush.bf16.msrb.mxu2 %v7293_v58  ;;  %2395 = vmatmul.bf16.vlgmr.msrb.gmra.mxu0 %v10293_v55  ;;  %v9162_v58 = vld [vmem:[#allocation8 + $0x1c4] sm:$0xf]  ;;  %v9140_v46 = vld [vmem:[#allocation8 + $0x114] sm:$0xf] }
  0xf9   :  { %2439 = vmatpush.bf16.msra.mxu0 %v6449_v44  ;;  %2432 = vmatpush.bf16.msrb.mxu3 %v7357_v61  ;;  %v6489_v44 = vor.u32 %v9130_v34, %v6486_v35  ;;  %v9110_v61 = vld [vmem:[#allocation8 + $0x24] sm:$0xf]  ;;  %v6617_v4 = vor.u32 %v9162_v58, %v6614_v60  ;;  %v6454_v35 = vld [vmem:[#allocation8 + $0x88] sm:$0xf0]  ;;  %v6529_v56 = vor.u32 %v9140_v46, %v6526_v47  ;;  %v9196_v14 = vld [vmem:[#allocation8 + $0x2d4] sm:$0xf] }
  0xfa   :  { %2452 = vmatpush.bf16.msra.mxu1 %v6513_v50  ;;  %v6478_v50 = vld [vmem:[#allocation8 + $0xb8] sm:$0xf0]  ;;  %v9122_v34 = vld [vmem:[#allocation8 + $0x84] sm:$0xf]  ;;  %v9192_v47 = vld [vmem:[#allocation8 + $0x2b4] sm:$0xf] }
  0xfb   :  { %2408 = vmatmul.bf16.vlgmr.msrb.gmra.mxu1 %v10295_v62  ;;  %v6481_v59 = vor.u32 %v9128_v49, %v6478_v50  ;;  %v6457_v48 = vor.u32 %v9122_v34, %v6454_v35  ;;  %v9156_v50 = vld [vmem:[#allocation8 + $0x194] sm:$0xf]  ;;  %v9198_v58 = vld [vmem:[#allocation8 + $0x2e4] sm:$0xf]  ;;  %v6742_v34 = vld [vmem:[#allocation8 + $0x2c8] sm:$0xf0] }
  0xfc   :  { %2420 = vmatpush.bf16.msrb.mxu2 %v7285_v12  ;;  %v6606_v12 = vld [vmem:[#allocation8 + $0x1b8] sm:$0xf0]  ;;  %v9138_v60 = vld [vmem:[#allocation8 + $0x104] sm:$0xf] }
  0xfd   :  { %2440 = vmatpush.bf16.msra.mxu0 %v6441_v2  ;;  %2433 = vmatpush.bf16.msrb.mxu3 %v7349_v16  ;;  %v6470_v2 = vld [vmem:[#allocation8 + $0xa8] sm:$0xf0]  ;;  %v6462_v16 = vld [vmem:[#allocation8 + $0x98] sm:$0xf0] }
  0xfe   :  { %2453 = vmatpush.bf16.msra.mxu1 %v6505_v7  ;;  %v6409_v7 = vor.u32 %v9110_v61, %v6406_v63  ;;  %v6473_v11 = vor.u32 %v9126_v1, %v6470_v2  ;;  %v6465_v30 = vor.u32 %v9124_v15, %v6462_v16  ;;  %v6518_v63 = vld [vmem:[#allocation8 + $0x108] sm:$0xf0]  ;;  %v9154_v1 = vld [vmem:[#allocation8 + $0x184] sm:$0xf]  ;;  %v6750_v15 = vld [vmem:[#allocation8 + $0x2d8] sm:$0xf0] }
  0xff   :  { %2421 = vmatmul.bf16.vlgmr.msrb.gmra.mxu2 %v10300_v24  ;;  %v6582_v2 = vld [vmem:[#allocation8 + $0x188] sm:$0xf0]  ;;  %v6521_v13 = vor.u32 %v9138_v60, %v6518_v63  ;;  %v6670_v46 = vld [vmem:[#allocation8 + $0x238] sm:$0xf0]  ;;  %v9190_v60 = vld [vmem:[#allocation8 + $0x2a4] sm:$0xf] }
 0x100   :  { %2465 = vmatpush.bf16.msra.mxu2 %v6577_v17  ;;  %2434 = vmatmul.bf16.vlgmr.msrb.gmra.mxu3 %v10302_v33  ;;  %v6545_v17 = vor.u32 %v9144_v36, %v6542_v9  ;;  %v9232_v36 = vld [vmem:[#allocation8 + $0x3f4] sm:$0xf]  ;;  %v6585_v16 = vor.u32 %v9154_v1, %v6582_v2 }
 0x101   :  { %2478 = vmatpush.bf16.msra.mxu3 %v6641_v19  ;;  %2441 = vmatpush.bf16.msra.mxu0 %v6433_v20  ;;  %v9142_v19 = vld [vmem:[#allocation8 + $0x124] sm:$0xf]  ;;  %v6609_v20 = vor.u32 %v9160_v10, %v6606_v12  ;;  %v6894_v10 = vld [vmem:[#allocation8 + $0x3f8] sm:$0xf0]  ;;  %v9208_v2 = vld [vmem:[#allocation8 + $0x334] sm:$0xf] }
 0x102   :  { %2454 = vmatpush.bf16.msra.mxu1 %v6497_v29  ;;  %v6598_v29 = vld [vmem:[#allocation8 + $0x1a8] sm:$0xf0]  ;;  %v6686_v12 = vld [vmem:[#allocation8 + $0x258] sm:$0xf0] }
 0x103   :  { %v6601_v43 = vor.u32 %v9158_v23, %v6598_v29  ;;  %v9230_v23 = vld [vmem:[#allocation8 + $0x3e4] sm:$0xf]  ;;  %v6753_v29 = vor.u32 %v9196_v14, %v6750_v15 }
 0x104   :  { %2466 = vmatpush.bf16.msra.mxu2 %v6569_v28  ;;  %v9184_v28 = vld [vmem:[#allocation8 + $0x274] sm:$0xf]  ;;  %v9206_v14 = vld [vmem:[#allocation8 + $0x324] sm:$0xf] }
 0x105   :  { %2479 = vmatpush.bf16.msra.mxu3 %v6633_v37  ;;  %2442 = vmatpush.bf16.msra.mxu0 %v6425_v38  ;;  %v6702_v37 = vld [vmem:[#allocation8 + $0x278] sm:$0xf0]  ;;  %v6537_v38 = vor.u32 %v9142_v19, %v6534_v22  ;;  %v6897_v19 = vor.u32 %v9232_v36, %v6894_v10  ;;  %v6822_v22 = vld [vmem:[#allocation8 + $0x368] sm:$0xf0] }
 0x106   :  { %2455 = vmatpush.bf16.msra.mxu1 %v6489_v44  ;;  %v6393_v44 = vor.u32 %v9106_v31, %v6390_v32  ;;  %v6705_v49 = vor.u32 %v9184_v28, %v6702_v37  ;;  %v9178_v31 = vld [vmem:[#allocation8 + $0x244] sm:$0xf]  ;;  %v6678_v32 = vld [vmem:[#allocation8 + $0x248] sm:$0xf0]  ;;  %v9212_v37 = vld [vmem:[#allocation8 + $0x354] sm:$0xf] }
 0x107   :  { %v6681_v28 = vor.u32 %v9178_v31, %v6678_v32  ;;  %v6862_v36 = vld [vmem:[#allocation8 + $0x3b8] sm:$0xf0]  ;;  %v9248_v31 = vld [vmem:[#allocation8 + $0x474] sm:$0xf] }
 0x108   :  { %2467 = vmatpush.bf16.msra.mxu2 %v6561_v51  ;;  %v6590_v51 = vld [vmem:[#allocation8 + $0x198] sm:$0xf0] }
 0x109   :  { %2480 = vmatpush.bf16.msra.mxu3 %v6625_v52  ;;  %2443 = vmatpush.bf16.msra.mxu0 %v6417_v26  ;;  %v6769_v52 = vor.u32 %v9200_v40, %v6766_v42  ;;  %v9182_v26 = vld [vmem:[#allocation8 + $0x264] sm:$0xf]  ;;  %v6593_v61 = vor.u32 %v9156_v50, %v6590_v51  ;;  %v9228_v40 = vld [vmem:[#allocation8 + $0x3d4] sm:$0xf]  ;;  %v6654_v10 = vld [vmem:[#allocation8 + $0x218] sm:$0xf0] }
 0x10a   :  { %2456 = vmatpush.bf16.msra.mxu1 %v6481_v59  ;;  %v6758_v59 = vld [vmem:[#allocation8 + $0x2e8] sm:$0xf0]  ;;  %v6958_v32 = vld [vmem:[#allocation8 + $0x478] sm:$0xf0] }
 0x10b   :  { %v6761_v9 = vor.u32 %v9198_v58, %v6758_v59  ;;  %v9174_v58 = vld [vmem:[#allocation8 + $0x224] sm:$0xf]  ;;  %v6662_v59 = vld [vmem:[#allocation8 + $0x228] sm:$0xf0] }
 0x10c   :  { %2468 = vmatpush.bf16.msra.mxu2 %v6553_v3  ;;  %v6697_v3 = vor.u32 %v9182_v26, %v6694_v54  ;;  %v6806_v26 = vld [vmem:[#allocation8 + $0x348] sm:$0xf0]  ;;  %v9226_v54 = vld [vmem:[#allocation8 + $0x3c4] sm:$0xf]  ;;  %v6665_v1 = vor.u32 %v9174_v58, %v6662_v59  ;;  %v9280_v59 = vld [vmem:[#allocation8 + $0x574] sm:$0xf] }
 0x10d   :  { %2481 = vmatpush.bf16.msra.mxu3 %v6617_v4  ;;  %2444 = vmatpush.bf16.msra.mxu0 %v6409_v7  ;;  %v9216_v4 = vld [vmem:[#allocation8 + $0x374] sm:$0xf]  ;;  %v6830_v7 = vld [vmem:[#allocation8 + $0x378] sm:$0xf0] }
 0x10e   :  { %2457 = vmatpush.bf16.msra.mxu1 %v6473_v11  ;;  %v9180_v11 = vld [vmem:[#allocation8 + $0x254] sm:$0xf] }
 0x110   :  { %2469 = vmatpush.bf16.msra.mxu2 %v6545_v17  ;;  %v6833_v17 = vor.u32 %v9216_v4, %v6830_v7  ;;  %v9224_v4 = vld [vmem:[#allocation8 + $0x3b4] sm:$0xf] }
 0x111   :  { %2482 = vmatpush.bf16.msra.mxu3 %v6609_v20  ;;  %2445 = vmatpush.bf16.msra.mxu0 %v6401_v21  ;;  %v6689_v20 = vor.u32 %v9180_v11, %v6686_v12  ;;  %v9214_v21 = vld [vmem:[#allocation8 + $0x364] sm:$0xf]  ;;  %v9188_v11 = vld [vmem:[#allocation8 + $0x294] sm:$0xf]  ;;  %v6718_v12 = vld [vmem:[#allocation8 + $0x298] sm:$0xf0]  ;;  %v6865_v15 = vor.u32 %v9224_v4, %v6862_v36 }
 0x112   :  { %2458 = vmatpush.bf16.msra.mxu1 %v6465_v30  ;;  %v6886_v30 = vld [vmem:[#allocation8 + $0x3e8] sm:$0xf0]  ;;  %v6825_v35 = vor.u32 %v9214_v21, %v6822_v22  ;;  %v6721_v21 = vor.u32 %v9188_v11, %v6718_v12  ;;  %v9170_v22 = vld [vmem:[#allocation8 + $0x204] sm:$0xf]  ;;  %v9260_v4 = vld [vmem:[#allocation8 + $0x4d4] sm:$0xf] }
 0x113   :  { %v9278_v12 = vld [vmem:[#allocation8 + $0x564] sm:$0xf] }
 0x114   :  { %2470 = vmatpush.bf16.msra.mxu2 %v6537_v38  ;;  %v6814_v38 = vld [vmem:[#allocation8 + $0x358] sm:$0xf0] }
 0x115   :  { %2483 = vmatpush.bf16.msra.mxu3 %v6601_v43  ;;  %2446 = vmatpush.bf16.msra.mxu0 %v6393_v44  ;;  %v6878_v43 = vld [vmem:[#allocation8 + $0x3d8] sm:$0xf0]  ;;  %v9176_v44 = vld [vmem:[#allocation8 + $0x234] sm:$0xf] }
 0x116   :  { %2459 = vmatpush.bf16.msra.mxu1 %v6457_v48  ;;  %v6734_v48 = vld [vmem:[#allocation8 + $0x2b8] sm:$0xf0]  ;;  %v6881_v50 = vor.u32 %v9228_v40, %v6878_v43  ;;  %v6673_v51 = vor.u32 %v9176_v44, %v6670_v46  ;;  %v9220_v43 = vld [vmem:[#allocation8 + $0x394] sm:$0xf] }
 0x117   :  { %v6846_v44 = vld [vmem:[#allocation8 + $0x398] sm:$0xf0] }
 0x118   :  { %2471 = vmatpush.bf16.msra.mxu2 %v6529_v56  ;;  %2447 = vmatmul.bf16.vlgmr.msra.gmra.mxu0 %v10242_v53  ;;  %v9194_v53 = vld [vmem:[#allocation8 + $0x2c4] sm:$0xf]  ;;  %v6870_v56 = vld [vmem:[#allocation8 + $0x3c8] sm:$0xf0] }
 0x119   :  { %2491 = vmatpush.bf16.msrb.mxu0 %v6705_v49  ;;  %2484 = vmatpush.bf16.msra.mxu3 %v6593_v61  ;;  %v6745_v42 = vor.u32 %v9194_v53, %v6742_v34  ;;  %v6817_v49 = vor.u32 %v9212_v37, %v6814_v38  ;;  %v6726_v61 = vld [vmem:[#allocation8 + $0x2a8] sm:$0xf0]  ;;  %v6873_v63 = vor.u32 %v9226_v54, %v6870_v56  ;;  %v9264_v34 = vld [vmem:[#allocation8 + $0x4f4] sm:$0xf]  ;;  %v6782_v38 = vld [vmem:[#allocation8 + $0x318] sm:$0xf0] }
 0x11a   :  { %2504 = vmatpush.bf16.msrb.mxu1 %v6769_v52  ;;  %v9210_v52 = vld [vmem:[#allocation8 + $0x344] sm:$0xf]  ;;  %v6729_v7 = vor.u32 %v9190_v60, %v6726_v61  ;;  %v9204_v37 = vld [vmem:[#allocation8 + $0x314] sm:$0xf]  ;;  %v6774_v54 = vld [vmem:[#allocation8 + $0x308] sm:$0xf0] }
 0x11b   :  { %2460 = vmatmul.bf16.vlgmr.msra.gmra.mxu1 %v10244_v57  ;;  %v6889_v57 = vor.u32 %v9230_v23, %v6886_v30  ;;  %v6646_v23 = vld [vmem:[#allocation8 + $0x208] sm:$0xf0]  ;;  %v7086_v60 = vld [vmem:[#allocation8 + $0x578] sm:$0xf0]  ;;  %v9296_v61 = vld [vmem:[#allocation8 + $0x5f4] sm:$0xf] }
 0x11c   :  { %2472 = vmatpush.bf16.msra.mxu2 %v6521_v13  ;;  %v6710_v30 = vld [vmem:[#allocation8 + $0x288] sm:$0xf0] }
 0x11d   :  { %2492 = vmatpush.bf16.msrb.mxu0 %v6697_v3  ;;  %2485 = vmatpush.bf16.msra.mxu3 %v6585_v16  ;;  %v6798_v3 = vld [vmem:[#allocation8 + $0x338] sm:$0xf0]  ;;  %v6838_v56 = vld [vmem:[#allocation8 + $0x388] sm:$0xf0] }
 0x11e   :  { %2505 = vmatpush.bf16.msrb.mxu1 %v6761_v9  ;;  %v9172_v9 = vld [vmem:[#allocation8 + $0x214] sm:$0xf]  ;;  %v6801_v13 = vor.u32 %v9208_v2, %v6798_v3  ;;  %v6942_v2 = vld [vmem:[#allocation8 + $0x458] sm:$0xf0] }
 0x11f   :  { %2473 = vmatmul.bf16.vlgmr.msra.gmra.mxu2 %v10249_v18  ;;  %v6737_v18 = vor.u32 %v9192_v47, %v6734_v48  ;;  %v6657_v16 = vor.u32 %v9172_v9, %v6654_v10  ;;  %v9246_v47 = vld [vmem:[#allocation8 + $0x464] sm:$0xf]  ;;  %v6950_v48 = vld [vmem:[#allocation8 + $0x468] sm:$0xf0]  ;;  %v7089_v9 = vor.u32 %v9280_v59, %v7086_v60 }
 0x120   :  { %2517 = vmatpush.bf16.msrb.mxu2 %v6833_v17  ;;  %2486 = vmatmul.bf16.vlgmr.msra.gmra.mxu3 %v10251_v25  ;;  %v6809_v25 = vor.u32 %v9210_v52, %v6806_v26  ;;  %v6790_v17 = vld [vmem:[#allocation8 + $0x328] sm:$0xf0]  ;;  %v9202_v52 = vld [vmem:[#allocation8 + $0x304] sm:$0xf]  ;;  %v6849_v26 = vor.u32 %v9220_v43, %v6846_v44  ;;  %v6953_v58 = vor.u32 %v9246_v47, %v6950_v48 }
 0x121   :  { %2530 = vmatpush.bf16.msrb.mxu3 %v6897_v19  ;;  %2493 = vmatpush.bf16.msrb.mxu0 %v6689_v20  ;;  %v9222_v19 = vld [vmem:[#allocation8 + $0x3a4] sm:$0xf]  ;;  %v6854_v20 = vld [vmem:[#allocation8 + $0x3a8] sm:$0xf0]  ;;  %v6793_v53 = vor.u32 %v9206_v14, %v6790_v17  ;;  %v6777_v3 = vor.u32 %v9202_v52, %v6774_v54 }
 0x122   :  { %2506 = vmatpush.bf16.msrb.mxu1 %v6753_v29  ;;  %v9186_v29 = vld [vmem:[#allocation8 + $0x284] sm:$0xf]  ;;  %v7062_v44 = vld [vmem:[#allocation8 + $0x548] sm:$0xf0] }
 0x123   :  { %v6713_v40 = vor.u32 %v9186_v29, %v6710_v30  ;;  %v9294_v14 = vld [vmem:[#allocation8 + $0x5e4] sm:$0xf]  ;;  %v9276_v29 = vld [vmem:[#allocation8 + $0x554] sm:$0xf]  ;;  %v7070_v30 = vld [vmem:[#allocation8 + $0x558] sm:$0xf0] }
 0x124   :  { %2518 = vmatpush.bf16.msrb.mxu2 %v6825_v35  ;;  %v7022_v35 = vld [vmem:[#allocation8 + $0x4f8] sm:$0xf0]  ;;  %v9242_v17 = vld [vmem:[#allocation8 + $0x444] sm:$0xf]  ;;  %v7126_v47 = vld [vmem:[#allocation8 + $0x5c8] sm:$0xf0] }
 0x125   :  { %2531 = vmatpush.bf16.msrb.mxu3 %v6889_v57  ;;  %2494 = vmatpush.bf16.msrb.mxu0 %v6681_v28  ;;  %v6857_v57 = vor.u32 %v9222_v19, %v6854_v20  ;;  %v6649_v28 = vor.u32 %v9170_v22, %v6646_v23  ;;  %v7025_v46 = vor.u32 %v9264_v34, %v7022_v35  ;;  %v6934_v19 = vld [vmem:[#allocation8 + $0x448] sm:$0xf0]  ;;  %v7134_v34 = vld [vmem:[#allocation8 + $0x5d8] sm:$0xf0]  ;;  %v9240_v35 = vld [vmem:[#allocation8 + $0x434] sm:$0xf] }
 0x126   :  { %2507 = vmatpush.bf16.msrb.mxu1 %v6745_v42  ;;  %v6961_v42 = vor.u32 %v9248_v31, %v6958_v32  ;;  %v6998_v20 = vld [vmem:[#allocation8 + $0x4c8] sm:$0xf0]  ;;  %v6937_v23 = vor.u32 %v9242_v17, %v6934_v19  ;;  %v9292_v31 = vld [vmem:[#allocation8 + $0x5d4] sm:$0xf]  ;;  %v9274_v43 = vld [vmem:[#allocation8 + $0x544] sm:$0xf] }
 0x127   :  { %v9238_v48 = vld [vmem:[#allocation8 + $0x424] sm:$0xf]  ;;  %v6966_v19 = vld [vmem:[#allocation8 + $0x488] sm:$0xf0] }
 0x128   :  { %2519 = vmatpush.bf16.msrb.mxu2 %v6817_v49  ;;  %v6785_v49 = vor.u32 %v9204_v37, %v6782_v38  ;;  %v6990_v37 = vld [vmem:[#allocation8 + $0x4b8] sm:$0xf0]  ;;  %v7073_v38 = vor.u32 %v9276_v29, %v7070_v30 }
 0x129   :  { %2532 = vmatpush.bf16.msrb.mxu3 %v6881_v50  ;;  %2495 = vmatpush.bf16.msrb.mxu0 %v6673_v51  ;;  %v9262_v50 = vld [vmem:[#allocation8 + $0x4e4] sm:$0xf]  ;;  %v7014_v51 = vld [vmem:[#allocation8 + $0x4e8] sm:$0xf0] }
 0x12a   :  { %2508 = vmatpush.bf16.msrb.mxu1 %v6737_v18  ;;  %v9218_v18 = vld [vmem:[#allocation8 + $0x384] sm:$0xf] }
 0x12b   :  { %v6841_v36 = vor.u32 %v9218_v18, %v6838_v56  ;;  %v9272_v18 = vld [vmem:[#allocation8 + $0x534] sm:$0xf]  ;;  %v7054_v56 = vld [vmem:[#allocation8 + $0x538] sm:$0xf0] }
 0x12c   :  { %2520 = vmatpush.bf16.msrb.mxu2 %v6809_v25  ;;  %v7017_v25 = vor.u32 %v9262_v50, %v7014_v51  ;;  %v9254_v50 = vld [vmem:[#allocation8 + $0x4a4] sm:$0xf]  ;;  %v6982_v51 = vld [vmem:[#allocation8 + $0x4a8] sm:$0xf0] }
 0x12d   :  { %2533 = vmatpush.bf16.msrb.mxu3 %v6873_v63  ;;  %2496 = vmatpush.bf16.msrb.mxu0 %v6665_v1  ;;  %v7150_v63 = vld [vmem:[#allocation8 + $0x5f8] sm:$0xf0]  ;;  %v9244_v1 = vld [vmem:[#allocation8 + $0x454] sm:$0xf]  ;;  %v6985_v60 = vor.u32 %v9254_v50, %v6982_v51  ;;  %v7030_v50 = vld [vmem:[#allocation8 + $0x508] sm:$0xf0] }
 0x12e   :  { %2509 = vmatpush.bf16.msrb.mxu1 %v6729_v7  ;;  %v7006_v7 = vld [vmem:[#allocation8 + $0x4d8] sm:$0xf0]  ;;  %v7153_v10 = vor.u32 %v9296_v61, %v7150_v63  ;;  %v6945_v11 = vor.u32 %v9244_v1, %v6942_v2  ;;  %v9252_v1 = vld [vmem:[#allocation8 + $0x494] sm:$0xf]  ;;  %v9282_v51 = vld [vmem:[#allocation8 + $0x584] sm:$0xf] }
 0x12f   :  { %v7118_v61 = vld [vmem:[#allocation8 + $0x5b8] sm:$0xf0] }
 0x130   :  { %2521 = vmatpush.bf16.msrb.mxu2 %v6801_v13  ;;  %v7078_v13 = vld [vmem:[#allocation8 + $0x568] sm:$0xf0]  ;;  %v6910_v63 = vld [vmem:[#allocation8 + $0x418] sm:$0xf0] }
 0x131   :  { %2534 = vmatpush.bf16.msrb.mxu3 %v6865_v15  ;;  %2497 = vmatpush.bf16.msrb.mxu0 %v6657_v16  ;;  %v7009_v15 = vor.u32 %v9260_v4, %v7006_v7  ;;  %v7142_v16 = vld [vmem:[#allocation8 + $0x5e8] sm:$0xf0]  ;;  %v6974_v2 = vld [vmem:[#allocation8 + $0x498] sm:$0xf0]  ;;  %v9270_v4 = vld [vmem:[#allocation8 + $0x524] sm:$0xf] }
 0x132   :  { %2510 = vmatpush.bf16.msrb.mxu1 %v6721_v21  ;;  %v7081_v21 = vor.u32 %v9278_v12, %v7078_v13  ;;  %v7145_v22 = vor.u32 %v9294_v14, %v7142_v16  ;;  %v6977_v13 = vor.u32 %v9252_v1, %v6974_v2  ;;  %v9234_v14 = vld [vmem:[#allocation8 + $0x404] sm:$0xf]  ;;  %v9324_v1 = vld [vmem:[#allocation8 + $0x6d4] sm:$0xf]  ;;  %v7262_v2 = vld [vmem:[#allocation8 + $0x6d8] sm:$0xf0] }
 0x133   :  { %v9250_v16 = vld [vmem:[#allocation8 + $0x484] sm:$0xf] }
 0x134   :  { %2522 = vmatpush.bf16.msrb.mxu2 %v6793_v53 }
 0x135   :  { %2535 = vmatpush.bf16.msrb.mxu3 %v6857_v57  ;;  %2498 = vmatpush.bf16.msrb.mxu0 %v6649_v28  ;;  %v10315_v32 = vpop.f32.mrf.mxu1  ;;  %v6926_v57 = vld [vmem:[#allocation8 + $0x438] sm:$0xf0]  ;;  %v9256_v28 = vld [vmem:[#allocation8 + $0x4b4] sm:$0xf] }
 0x136   :  { %2511 = vmatpush.bf16.msrb.mxu1 %v6713_v40  ;;  %v7137_v40 = vor.u32 %v9292_v31, %v7134_v34  ;;  %v7038_v34 = vld [vmem:[#allocation8 + $0x518] sm:$0xf0] }
 0x138   :  { %2523 = vmatpush.bf16.msrb.mxu2 %v6785_v49  ;;  %2499 = vmatmul.bf16.vlgmr.msrb.gmra.mxu0 %v10258_v0  ;;  %v9258_v0 = vld [vmem:[#allocation8 + $0x4c4] sm:$0xf]  ;;  %v6918_v49 = vld [vmem:[#allocation8 + $0x428] sm:$0xf0] }
 0x139   :  { %2543 = vmatpush.bf16.msra.mxu0 %v6961_v42  ;;  %2536 = vmatpush.bf16.msrb.mxu3 %v6849_v26  ;;  %v7001_v53 = vor.u32 %v9258_v0, %v6998_v20  ;;  %v6929_v42 = vor.u32 %v9240_v35, %v6926_v57  ;;  %v6921_v54 = vor.u32 %v9238_v48, %v6918_v49  ;;  %v9312_v0 = vld [vmem:[#allocation8 + $0x674] sm:$0xf]  ;;  %v7214_v20 = vld [vmem:[#allocation8 + $0x678] sm:$0xf0]  ;;  %v9266_v48 = vld [vmem:[#allocation8 + $0x504] sm:$0xf] }
 0x13a   :  { %2556 = vmatpush.bf16.msra.mxu1 %v7025_v46  ;;  %v6993_v46 = vor.u32 %v9256_v28, %v6990_v37  ;;  %v6969_v35 = vor.u32 %v9250_v16, %v6966_v19  ;;  %v7217_v57 = vor.u32 %v9312_v0, %v7214_v20  ;;  %v9284_v28 = vld [vmem:[#allocation8 + $0x594] sm:$0xf]  ;;  %v7102_v37 = vld [vmem:[#allocation8 + $0x598] sm:$0xf0]  ;;  %v9306_v16 = vld [vmem:[#allocation8 + $0x644] sm:$0xf] }
 0x13b   :  { %2512 = vmatmul.bf16.vlgmr.msrb.gmra.mxu1 %v10260_v6  ;;  %v10312_v6 = vpop.f32.mrf.mxu0  ;;  %v7105_v49 = vor.u32 %v9284_v28, %v7102_v37  ;;  %v7190_v19 = vld [vmem:[#allocation8 + $0x648] sm:$0xf0]  ;;  %v9322_v20 = vld [vmem:[#allocation8 + $0x6c4] sm:$0xf]  ;;  %v7390_v37 = vld [vmem:[#allocation8 + $0x7d8] sm:$0xf0] }
 0x13c   :  { %2524 = vmatpush.bf16.msrb.mxu2 %v6777_v3  ;;  %v7057_v3 = vor.u32 %v9272_v18, %v7054_v56  ;;  %v7342_v18 = vld [vmem:[#allocation8 + $0x778] sm:$0xf0]  ;;  %v9360_v56 = vld [vmem:[#allocation8 + $0x7f4] sm:$0xf] }
 0x13d   :  { %2544 = vmatpush.bf16.msra.mxu0 %v6953_v58  ;;  %2537 = vmatpush.bf16.msrb.mxu3 %v6841_v36  ;;  %v9288_v58 = vld [vmem:[#allocation8 + $0x5b4] sm:$0xf]  ;;  %v2255_v59 = vpop.f32.mrf.mxu1 }
 0x13e   :  { %2557 = vmatpush.bf16.msra.mxu1 %v7017_v25  ;;  %v9236_v25 = vld [vmem:[#allocation8 + $0x414] sm:$0xf]  ;;  %v7121_v7 = vor.u32 %v9288_v58, %v7118_v61 }
 0x13f   :  { %2525 = vmatmul.bf16.vlgmr.msrb.gmra.mxu2 %v10266_v39  ;;  %v9290_v39 = vld [vmem:[#allocation8 + $0x5c4] sm:$0xf]  ;;  %v6913_v36 = vor.u32 %v9236_v25, %v6910_v63  ;;  %v9308_v61 = vld [vmem:[#allocation8 + $0x654] sm:$0xf]  ;;  %v7198_v25 = vld [vmem:[#allocation8 + $0x658] sm:$0xf0]  ;;  %v7033_v63 = vor.u32 %v9266_v48, %v7030_v50 }
 0x140   :  { %2569 = vmatpush.bf16.msra.mxu2 %v7089_v9  ;;  %2538 = vmatmul.bf16.vlgmr.msrb.gmra.mxu3 %v10270_v45  ;;  %v7065_v45 = vor.u32 %v9274_v43, %v7062_v44  ;;  %v7129_v26 = vor.u32 %v9290_v39, %v7126_v47  ;;  %v7046_v9 = vld [vmem:[#allocation8 + $0x528] sm:$0xf0]  ;;  %v10327_v43 = vld [vmem:[%s10482_s4] sm:$0x3] }
 0x141   :  { %2582 = vmatpush.bf16.msra.mxu3 %v7153_v10  ;;  %2545 = vmatpush.bf16.msra.mxu0 %v6945_v11  ;;  %v9286_v10 = vld [vmem:[#allocation8 + $0x5a4] sm:$0xf]  ;;  %v7110_v11 = vld [vmem:[#allocation8 + $0x5a8] sm:$0xf0] }
 0x142   :  { %2558 = vmatpush.bf16.msra.mxu1 %v7009_v15  ;;  %v10318_v12 = vpop.f32.mrf.mxu2  ;;  %v6902_v15 = vld [vmem:[#allocation8 + $0x408] sm:$0xf0]  ;;  %v7113_v30 = vor.u32 %v9286_v10, %v7110_v11  ;;  %v7201_v10 = vor.u32 %v9308_v61, %v7198_v25  ;;  %v9342_v11 = vld [vmem:[#allocation8 + $0x764] sm:$0xf]  ;;  %v9336_v25 = vld [vmem:[#allocation8 + $0x734] sm:$0xf] }
 0x143   :  { %v2242_v52 = vpop.f32.mrf.mxu0  ;;  %v10320_v17 = vpop.f32.mrf.mxu3  ;;  %v6905_v31 = vor.u32 %v9234_v14, %v6902_v15  ;;  %v7270_v47 = vld [vmem:[#allocation8 + $0x6e8] sm:$0xf0]  ;;  %v9358_v14 = vld [vmem:[#allocation8 + $0x7e4] sm:$0xf]  ;;  %v7265_v15 = vor.u32 %v9324_v1, %v7262_v2  ;;  %v9352_v1 = vld [vmem:[#allocation8 + $0x7b4] sm:$0xf] }
 0x144   :  { %2570 = vmatpush.bf16.msra.mxu2 %v7081_v21  ;;  %v7049_v21 = vor.u32 %v9270_v4, %v7046_v9  ;;  %v7318_v50 = vld [vmem:[#allocation8 + $0x748] sm:$0xf0] }
 0x145   :  { %2583 = vmatpush.bf16.msra.mxu3 %v7145_v22  ;;  %2546 = vmatpush.bf16.msra.mxu0 %v6937_v23  ;;  %v9328_v22 = vld [vmem:[#allocation8 + $0x6f4] sm:$0xf]  ;;  %v7278_v23 = vld [vmem:[#allocation8 + $0x6f8] sm:$0xf0] }
 0x146   :  { %2559 = vmatpush.bf16.msra.mxu1 %v7001_v53  ;;  %v9268_v53 = vld [vmem:[#allocation8 + $0x514] sm:$0xf] }
 0x147   :  { %v7041_v39 = vor.u32 %v9268_v53, %v7038_v34  ;;  %v9340_v53 = vld [vmem:[#allocation8 + $0x754] sm:$0xf]  ;;  %v7326_v34 = vld [vmem:[#allocation8 + $0x758] sm:$0xf0] }
 0x148   :  { %2571 = vmatpush.bf16.msra.mxu2 %v7073_v38  ;;  %v7281_v38 = vor.u32 %v9328_v22, %v7278_v23  ;;  %v10329_v44 = vpop.f32.mrf.mxu1 }
 0x149   :  { %2584 = vmatpush.bf16.msra.mxu3 %v7137_v40  ;;  %2547 = vmatpush.bf16.msra.mxu0 %v6929_v42  ;;  %v9310_v40 = vld [vmem:[#allocation8 + $0x664] sm:$0xf]  ;;  %v7206_v42 = vld [vmem:[#allocation8 + $0x668] sm:$0xf0] }
 0x14a   :  { %2560 = vmatpush.bf16.msra.mxu1 %v6993_v46  ;;  %v9326_v46 = vld [vmem:[#allocation8 + $0x6e4] sm:$0xf]  ;;  %v2268_v52 = vpop.f32.mrf.mxu2 }
 0x14b   :  { %v10322_v29 = vpop.f32.mrf.mxu0  ;;  %v2281_v58 = vpop.f32.mrf.mxu3  ;;  %v7273_v59 = vor.u32 %v9326_v46, %v7270_v47  ;;  %v7329_v46 = vor.u32 %v9340_v53, %v7326_v34  ;;  %v7382_v52 = vld [vmem:[#allocation8 + $0x7c8] sm:$0xf0] }
 0x14c   :  { %2572 = vmatpush.bf16.msra.mxu2 %v7065_v45  ;;  %v7094_v45 = vld [vmem:[#allocation8 + $0x588] sm:$0xf0] }
 0x14d   :  { %2585 = vmatpush.bf16.msra.mxu3 %v7129_v26  ;;  %2548 = vmatpush.bf16.msra.mxu0 %v6921_v54  ;;  %v7209_v26 = vor.u32 %v9310_v40, %v7206_v42  ;;  %v9344_v54 = vld [vmem:[#allocation8 + $0x774] sm:$0xf]  ;;  %v7182_v40 = vld [vmem:[#allocation8 + $0x638] sm:$0xf0] }
 0x14e   :  { %2561 = vmatpush.bf16.msra.mxu1 %v6985_v60  ;;  %v7406_v60 = vld [vmem:[#allocation8 + $0x7f8] sm:$0xf0] }
 0x14f   :  { %v7409_v9 = vor.u32 %v9360_v56, %v7406_v60  ;;  %v7246_v42 = vld [vmem:[#allocation8 + $0x6b8] sm:$0xf0]  ;;  %v7238_v56 = vld [vmem:[#allocation8 + $0x6a8] sm:$0xf0] }
 0x150   :  { %2573 = vmatpush.bf16.msra.mxu2 %v7057_v3  ;;  %v947_v3 = vperm.slane %v10327_v43, 0  ;;  %v2307_v0 = vpop.f32.mrf.mxu1 }
 0x151   :  { %2586 = vmatpush.bf16.msra.mxu3 %v7121_v7  ;;  %2549 = vmatpush.bf16.msra.mxu0 %v6913_v36  ;;  %v7097_v7 = vor.u32 %v9282_v51, %v7094_v45  ;;  %v7345_v36 = vor.u32 %v9344_v54, %v7342_v18  ;;  %v9354_v51 = vld [vmem:[#allocation8 + $0x7c4] sm:$0xf] }
 0x152   :  { %2562 = vmatpush.bf16.msra.mxu1 %v6977_v13  ;;  %v7334_v13 = vld [vmem:[#allocation8 + $0x768] sm:$0xf0]  ;;  %v2241_v22 = vadd.f32 %v10312_v6, %v947_v3  ;;  %v10335_v23 = vpop.f32.mrf.mxu2  ;;  %v9320_v6 = vld [vmem:[#allocation8 + $0x6b4] sm:$0xf]  ;;  %v9318_v18 = vld [vmem:[#allocation8 + $0x6a4] sm:$0xf]  ;;  %v7385_v60 = vor.u32 %v9354_v51, %v7382_v52 }
 0x153   :  { %v2294_v4 = vpop.f32.mrf.mxu0  ;;  %v7249_v45 = vor.u32 %v9320_v6, %v7246_v42  ;;  %v7241_v3 = vor.u32 %v9318_v18, %v7238_v56  ;;  %v9348_v42 = vld [vmem:[#allocation8 + $0x794] sm:$0xf]  ;;  %v7286_v51 = vld [vmem:[#allocation8 + $0x708] sm:$0xf0] }
 0x154   :  { %2574 = vmatpush.bf16.msra.mxu2 %v7049_v21  ;;  %v7254_v21 = vld [vmem:[#allocation8 + $0x6c8] sm:$0xf0]  ;;  %v2254_v47 = vadd.f32 %v10315_v32, %v2241_v22  ;;  %v7374_v4 = vld [vmem:[#allocation8 + $0x7b8] sm:$0xf0] }
 0x155   :  { %2587 = vmatpush.bf16.msra.mxu3 %v7113_v30  ;;  %2550 = vmatpush.bf16.msra.mxu0 %v6905_v31  ;;  %v7193_v31 = vor.u32 %v9306_v16, %v7190_v19  ;;  %v7257_v28 = vor.u32 %v9322_v20, %v7254_v21  ;;  %v7302_v16 = vld [vmem:[#allocation8 + $0x728] sm:$0xf0]  ;;  %v9350_v19 = vld [vmem:[#allocation8 + $0x7a4] sm:$0xf] }
 0x156   :  { %2563 = vmatpush.bf16.msra.mxu1 %v6969_v35  ;;  %v9356_v35 = vld [vmem:[#allocation8 + $0x7d4] sm:$0xf]  ;;  %v2267_v54 = vadd.f32 %v10318_v12, %v2254_v47  ;;  %v7166_v12 = vld [vmem:[#allocation8 + $0x618] sm:$0xf0]  ;;  %v7366_v20 = vld [vmem:[#allocation8 + $0x7a8] sm:$0xf0] }
 0x157   :  { %v9298_v21 = vld [vmem:[#allocation8 + $0x604] sm:$0xf]  ;;  %v9369_v47 = vld [vmem:[#allocation10 + $0x38] sm:$0xff]  ;;  %v7350_v52 = vld [vmem:[#allocation8 + $0x788] sm:$0xf0] }
 0x158   :  { %2575 = vmatpush.bf16.msra.mxu2 %v7041_v39  ;;  %2551 = vmatmul.bf16.vlgmr.msra.gmra.mxu0 %v10276_v27  ;;  %v7398_v27 = vld [vmem:[#allocation8 + $0x7e8] sm:$0xf0]  ;;  %v10345_v58 = vpop.f32.mrf.mxu1 }
 0x159   :  { %2595 = vmatpush.bf16.msrb.mxu0 %v7217_v57  ;;  %2588 = vmatpush.bf16.msra.mxu3 %v7105_v49  ;;  %v7401_v30 = vor.u32 %v9358_v14, %v7398_v27  ;;  %v10338_v57 = vpop.f32.mrf.mxu3  ;;  %v9338_v49 = vld [vmem:[#allocation8 + $0x744] sm:$0xf]  ;;  %v7377_v14 = vor.u32 %v9352_v1, %v7374_v4  ;;  %v9367_v18 = vld [vmem:[#allocation10 + $0x28] sm:$0xff] }
 0x15a   :  { %2608 = vmatpush.bf16.msrb.mxu1 %v7281_v38  ;;  %v9304_v38 = vld [vmem:[#allocation8 + $0x634] sm:$0xf]  ;;  %v7321_v32 = vor.u32 %v9338_v49, %v7318_v50  ;;  %v9334_v27 = vld [vmem:[#allocation8 + $0x724] sm:$0xf] }
 0x15b   :  { %2564 = vmatmul.bf16.vlgmr.msra.gmra.mxu1 %v10278_v41  ;;  %v7337_v41 = vor.u32 %v9342_v11, %v7334_v13  ;;  %v10341_v39 = vpop.f32.mrf.mxu0  ;;  %v7185_v48 = vor.u32 %v9304_v38, %v7182_v40  ;;  %v7294_v38 = vld [vmem:[#allocation8 + $0x718] sm:$0xf0]  ;;  %v9330_v50 = vld [vmem:[#allocation8 + $0x704] sm:$0xf] }
 0x15c   :  { %2576 = vmatpush.bf16.msra.mxu2 %v7033_v63  ;;  %v7310_v63 = vld [vmem:[#allocation8 + $0x738] sm:$0xf0] }
 0x15d   :  { %2596 = vmatpush.bf16.msrb.mxu0 %v7209_v26  ;;  %2589 = vmatpush.bf16.msra.mxu3 %v7097_v7  ;;  %v9302_v26 = vld [vmem:[#allocation8 + $0x624] sm:$0xf]  ;;  %v9300_v7 = vld [vmem:[#allocation8 + $0x614] sm:$0xf]  ;;  %v7313_v11 = vor.u32 %v9336_v25, %v7310_v63 }
 0x15e   :  { %2609 = vmatpush.bf16.msrb.mxu1 %v7273_v59  ;;  %v2320_v59 = vpop.f32.mrf.mxu2  ;;  %v9364_v25 = vld [vmem:[#allocation10 + $0x10] sm:$0xff] }
 0x15f   :  { %2577 = vmatmul.bf16.vlgmr.msra.gmra.mxu2 %v10282_v5  ;;  %v7393_v5 = vor.u32 %v9356_v35, %v7390_v37  ;;  %v7369_v35 = vor.u32 %v9350_v19, %v7366_v20  ;;  %v9332_v37 = vld [vmem:[#allocation8 + $0x714] sm:$0xf]  ;;  %v9366_v59 = vld [vmem:[#allocation10 + $0x20] sm:$0xff] }
 0x160   :  { %2621 = vmatpush.bf16.msrb.mxu2 %v7345_v36  ;;  %2590 = vmatmul.bf16.vlgmr.msra.gmra.mxu3 %v10284_v8  ;;  %v7174_v8 = vld [vmem:[#allocation8 + $0x628] sm:$0xf0]  ;;  %v2280_v36 = vadd.f32 %v10320_v17, %v2267_v54  ;;  %v9314_v17 = vld [vmem:[#allocation8 + $0x684] sm:$0xf]  ;;  %v2359_v53 = vpop.f32.mrf.mxu1 }
 0x161   :  { %2634 = vmatpush.bf16.msrb.mxu3 %v7409_v9  ;;  %2597 = vmatpush.bf16.msrb.mxu0 %v7201_v10  ;;  %v7177_v61 = vor.u32 %v9302_v26, %v7174_v8  ;;  %v2333_v2 = vpop.f32.mrf.mxu3  ;;  %v9316_v9 = vld [vmem:[#allocation8 + $0x694] sm:$0xf]  ;;  %v7230_v10 = vld [vmem:[#allocation8 + $0x698] sm:$0xf0]  ;;  %v7289_v8 = vor.u32 %v9330_v50, %v7286_v51 }
 0x162   :  { %2610 = vmatpush.bf16.msrb.mxu1 %v7265_v15  ;;  %v7169_v15 = vor.u32 %v9300_v7, %v7166_v12  ;;  %v7233_v0 = vor.u32 %v9316_v9, %v7230_v10  ;;  %v2293_v22 = vadd.f32 %v10322_v29, %v2280_v36  ;;  %v9368_v26 = vld [vmem:[#allocation10 + $0x30] sm:$0xff] }
 0x163   :  { %v2346_v13 = vpop.f32.mrf.mxu0 }
 0x164   :  { %2622 = vmatpush.bf16.msrb.mxu2 %v7337_v41  ;;  %v7158_v41 = vld [vmem:[#allocation8 + $0x608] sm:$0xf0]  ;;  %v2306_v29 = vadd.f32 %v10329_v44, %v2293_v22 }
 0x165   :  { %2635 = vmatpush.bf16.msrb.mxu3 %v7401_v30  ;;  %2598 = vmatpush.bf16.msrb.mxu0 %v7193_v31  ;;  %v7222_v30 = vld [vmem:[#allocation8 + $0x688] sm:$0xf0]  ;;  %v7305_v31 = vor.u32 %v9334_v27, %v7302_v16 }
 0x166   :  { %2611 = vmatpush.bf16.msrb.mxu1 %v7257_v28  ;;  %v2370_v34 = vpop.f32.mrf.mxu2  ;;  %v7161_v28 = vor.u32 %v9298_v21, %v7158_v41  ;;  %v7225_v6 = vor.u32 %v9314_v17, %v7222_v30 }
 0x168   :  { %2623 = vmatpush.bf16.msrb.mxu2 %v7329_v46  ;;  %v7358_v46 = vld [vmem:[#allocation8 + $0x798] sm:$0xf0] }
 0x169   :  { %2636 = vmatpush.bf16.msrb.mxu3 %v7393_v5  ;;  %2599 = vmatpush.bf16.msrb.mxu0 %v7185_v48  ;;  %v2383_v40 = vpop.f32.mrf.mxu3  ;;  %v7297_v5 = vor.u32 %v9332_v37, %v7294_v38  ;;  %v2319_v48 = vadd.f32 %v10335_v23, %v2306_v29  ;;  %v7361_v49 = vor.u32 %v9348_v42, %v7358_v46  ;;  %v9375_v46 = vld [vmem:[#allocation10 + $0x68] sm:$0xff]  ;;  %v9374_v29 = vld [vmem:[#allocation10 + $0x60] sm:$0xff] }
 0x16a   :  { %2612 = vmatpush.bf16.msrb.mxu1 %v7249_v45  ;;  %v9346_v45 = vld [vmem:[#allocation8 + $0x784] sm:$0xf] }
 0x16b   :  { %v2332_v44 = vadd.f32 %v10338_v57, %v2319_v48  ;;  %v7353_v23 = vor.u32 %v9346_v45, %v7350_v52  ;;  %v9373_v48 = vld [vmem:[#allocation10 + $0x58] sm:$0xff]  ;;  %v9371_v45 = vld [vmem:[#allocation10 + $0x48] sm:$0xff] }
 0x16c   :  { %2624 = vmatpush.bf16.msrb.mxu2 %v7321_v32 }
 0x16d   :  { %2637 = vmatpush.bf16.msrb.mxu3 %v7385_v60  ;;  %2600 = vmatpush.bf16.msrb.mxu0 %v7177_v61  ;;  %v2345_v32 = vadd.f32 %v10341_v39, %v2332_v44  ;;  %v9363_v39 = vld [vmem:[#allocation10 + $0x8] sm:$0xff]  ;;  %v9370_v44 = vld [vmem:[#allocation10 + $0x40] sm:$0xff] }
 0x16e   :  { %2613 = vmatpush.bf16.msrb.mxu1 %v7241_v3  ;;  %v2372_v54 = vpop.f32.mrf.mxu2 }
 0x170   :  { %2625 = vmatpush.bf16.msrb.mxu2 %v7313_v11 }
 0x171   :  { %2638 = vmatpush.bf16.msrb.mxu3 %v7377_v14  ;;  %2601 = vmatpush.bf16.msrb.mxu0 %v7169_v15  ;;  %v2385_v56 = vpop.f32.mrf.mxu3  ;;  %v948_v14 = vperm.slane %v10327_v43, 1  ;;  %v9376_v43 = vld [vmem:[#allocation10 + $0x70] sm:$0xff] }
 0x172   :  { %2614 = vmatpush.bf16.msrb.mxu1 %v7233_v0 }
 0x174   :  { %2626 = vmatpush.bf16.msrb.mxu2 %v7305_v31 }
 0x175   :  { %2639 = vmatpush.bf16.msrb.mxu3 %v7369_v35  ;;  %2602 = vmatpush.bf16.msrb.mxu0 %v7161_v28  ;;  %v2396_v57 = vpop.f32.mrf.mxu0 }
 0x176   :  { %2615 = vmatpush.bf16.msrb.mxu1 %v7225_v6 }
 0x178   :  { %2627 = vmatpush.bf16.msrb.mxu2 %v7297_v5  ;;  %2603 = vmatmul.bf16.vlgmr.msrb.gmra.mxu0 %v10293_v55  ;;  %v2358_v55 = vadd.f32 %v10345_v58, %v2345_v32  ;;  %v2409_v60 = vpop.f32.mrf.mxu1 }
 0x179   :  { %2787 = vmatpush.bf16.msra.mxu0 %v9369_v47  ;;  %2640 = vmatpush.bf16.msrb.mxu3 %v7361_v49  ;;  %v9372_v49 = vld [vmem:[#allocation10 + $0x50] sm:$0xff] }
 0x17a   :  { %2616 = vmatmul.bf16.vlgmr.msrb.gmra.mxu1 %v10295_v62  ;;  %v9365_v62 = vld [vmem:[#allocation10 + $0x18] sm:$0xff]  ;;  %v2371_v61 = vadd.f32 %v2370_v34, %v2358_v55 }
 0x17c   :  { %2628 = vmatpush.bf16.msrb.mxu2 %v7289_v8  ;;  %v2384_v63 = vadd.f32 %v2383_v40, %v2371_v61  ;;  %v9377_v40 = vld [vmem:[#allocation10 + $0x78] sm:$0xff] }
 0x17d   :  { %2788 = vmatpush.bf16.msra.mxu0 %v9368_v26  ;;  %2641 = vmatpush.bf16.msrb.mxu3 %v7353_v23  ;;  %v2398_v2 = vpop.f32.mrf.mxu0 }
 0x17e   :  { %v2397_v1 = vadd.f32 %v2396_v57, %v2384_v63  ;;  %2800 = vmatpush.bf16.msra.mxu1 %v9377_v40  ;;  %v9393_v2 = vld [vmem:[#allocation11 + $0x74] sm:$0xf0] }
 0x17f   :  { %2629 = vmatmul.bf16.vlgmr.msrb.gmra.mxu2 %v10300_v24  ;;  %v9362_v24 = vld [vmem:[#allocation10] sm:$0xff] }
 0x180   :  { %2642 = vmatmul.bf16.vlgmr.msrb.gmra.mxu3 %v10302_v33  ;;  %v2411_v3 = vpop.f32.mrf.mxu1  ;;  %v2410_v4 = vadd.f32 %v2409_v60, %v2397_v1  ;;  %v7532_v1 = vld [vmem:[#allocation11 + $0x70] sm:$0xf] }
 0x181   :  { %2789 = vmatpush.bf16.msra.mxu0 %v9367_v18 }
 0x182   :  { %v2422_v7 = vpop.f32.mrf.mxu2  ;;  %2801 = vmatpush.bf16.msra.mxu1 %v9376_v43 }
 0x183   :  { %v2423_v33 = vadd.f32 %v2422_v7, %v2410_v4  ;;  %v2435_v12 = vpop.f32.mrf.mxu3  ;;  %v7533_v4 = vor.u32 %v9393_v2, %v7532_v1  ;;  %v7534_v7 = vld [vmem:[#allocation11 + $0x78] sm:$0xf0]  ;;  %v9642_v2 = vld [vmem:[#allocation13 + $0x7bc] sm:$0xf0] }
 0x185   :  { %2790 = vmatpush.bf16.msra.mxu0 %v9366_v59  ;;  %v2436_v58 = vadd.f32 %v2435_v12, %v2423_v33  ;;  %v9391_v33 = vld [vmem:[#allocation11 + $0x64] sm:$0xf0]  ;;  %2916 = vmatpush.bf16.msra.mxu2 %v7533_v4 }
 0x186   :  { %2802 = vmatpush.bf16.msra.mxu1 %v9375_v46 }
 0x187   :  { %vm2647_vm1 = vcmp.ge.f32.partialorder %v2436_v58, 0.0  ;;  %v2649_v36 = vmul.f32 0.01, %v2436_v58 }
 0x189   :  { %2791 = vmatpush.bf16.msra.mxu0 %v9365_v62  ;;  %v2651_v9 = vsel %vm2647_vm1, %v2436_v58, %v2649_v36  ;;  %v9390_v58 = vld [vmem:[#allocation11 + $0x64] sm:$0xf]  ;;  %v7526_v36 = vld [vmem:[#allocation11 + $0x68] sm:$0xf0] }
 0x18a   :  { %v2653_v10 = vpack.c.bf16 %v2651_v9, %v2651_v9  ;;  %v2424_v11 = vpop.f32.mrf.mxu2  ;;  %2803 = vmatpush.bf16.msra.mxu1 %v9374_v29 }
 0x18b   :  { %v2437_v13 = vpop.f32.mrf.mxu3  ;;  %v7529_v11 = vor.u32 %v9390_v58, %v7526_v36  ;;  %v9498_v36 = vld [vmem:[#allocation13 + $0x33c] sm:$0xf0] }
 0x18c   :  { %v7516_v13 = vld [vmem:[#allocation11 + $0x50] sm:$0xf] }
 0x18d   :  { %2792 = vmatpush.bf16.msra.mxu0 %v9364_v25 }
 0x18e   :  { %2804 = vmatpush.bf16.msra.mxu1 %v9373_v48  ;;  %v9383_v48 = vld [vmem:[#allocation11 + $0x24] sm:$0xf0] }
 0x191   :  { %2793 = vmatpush.bf16.msra.mxu0 %v9363_v39  ;;  %v9392_v39 = vld [vmem:[#allocation11 + $0x74] sm:$0xf] }
 0x192   :  { %2805 = vmatpush.bf16.msra.mxu1 %v9372_v49  ;;  %v7537_v12 = vor.u32 %v9392_v39, %v7534_v7  ;;  %v9382_v49 = vld [vmem:[#allocation11 + $0x24] sm:$0xf] }
 0x193   :  { %v9506_v39 = vld [vmem:[#allocation13 + $0x384] sm:$0xf] }
 0x194   :  { %2929 = vmatpush.bf16.msra.mxu3 %v7537_v12  ;;  %v7924_v12 = vld [vmem:[#allocation13 + $0x300] sm:$0xf] }
 0x195   :  { %2794 = vmatpush.bf16.msra.mxu0 %v9362_v24  ;;  %v2448_v15 = vpop.f32.mrf.mxu0  ;;  %v7524_v24 = vld [vmem:[#allocation11 + $0x60] sm:$0xf] }
 0x196   :  { %v2449_v27 = vadd.f32 %v2448_v15, %v948_v14  ;;  %2806 = vmatpush.bf16.msra.mxu1 %v9371_v45  ;;  %v7525_v9 = vor.u32 %v9391_v33, %v7524_v24  ;;  %v9389_v14 = vld [vmem:[#allocation11 + $0x54] sm:$0xf0]  ;;  %v9634_v24 = vld [vmem:[#allocation13 + $0x784] sm:$0xf] }
 0x197   :  { %v8502_v33 = vld [vmem:[#allocation13 + $0x7c0] sm:$0xf0] }
 0x198   :  { %2795 = vmatmul.bf16.vlgmr.msra.gmra.mxu0 %v2653_v10  ;;  %v2461_v16 = vpop.f32.mrf.mxu1  ;;  %2917 = vmatpush.bf16.msra.mxu2 %v7525_v9  ;;  %v8505_v58 = vor.u32 %v9634_v24, %v8502_v33  ;;  %v8436_v9 = vld [vmem:[#allocation13 + $0x700] sm:$0xf] }
 0x199   :  { %v2462_v19 = vadd.f32 %v2461_v16, %v2449_v27  ;;  %v9388_v27 = vld [vmem:[#allocation11 + $0x54] sm:$0xf]  ;;  %v7518_v16 = vld [vmem:[#allocation11 + $0x58] sm:$0xf0]  ;;  %2930 = vmatpush.bf16.msra.mxu3 %v7529_v11  ;;  %v7925_v11 = vor.u32 %v9498_v36, %v7924_v12  ;;  %v7604_v24 = vld [vmem:[#allocation13 + $0x80] sm:$0xf] }
 0x19a   :  { %2807 = vmatpush.bf16.msra.mxu1 %v9370_v44  ;;  %v7486_v44 = vld [vmem:[#allocation11 + $0x18] sm:$0xf0]  ;;  %v9418_v33 = vld [vmem:[#allocation13 + $0xbc] sm:$0xf0] }
 0x19b   :  { %v8116_v12 = vld [vmem:[#allocation13 + $0x480] sm:$0xf] }
 0x19c   :  { %v9546_v36 = vld [vmem:[#allocation13 + $0x4bc] sm:$0xf0] }
 0x19d   :  { %v2450_v0 = vpop.f32.mrf.mxu0 }
 0x1a0   :  { %v2463_v20 = vpop.f32.mrf.mxu1 }
 0x1a1   :  { %v7517_v20 = vor.u32 %v9389_v14, %v7516_v13  ;;  %v9490_v14 = vld [vmem:[#allocation13 + $0x304] sm:$0xf] }
 0x1a2   :  { %v2474_v21 = vpop.f32.mrf.mxu2 }
 0x1a3   :  { %v2475_v41 = vadd.f32 %v2474_v21, %v2462_v19  ;;  %v2487_v22 = vpop.f32.mrf.mxu3  ;;  %2918 = vmatpush.bf16.msra.mxu2 %v7517_v20  ;;  %v9482_v20 = vld [vmem:[#allocation13 + $0x2bc] sm:$0xf0] }
 0x1a5   :  { %v2488_v17 = vadd.f32 %v2487_v22, %v2475_v41  ;;  %v7521_v41 = vor.u32 %v9388_v27, %v7518_v16  ;;  %v7508_v22 = vld [vmem:[#allocation11 + $0x40] sm:$0xf]  ;;  %v9618_v27 = vld [vmem:[#allocation13 + $0x704] sm:$0xf] }
 0x1a7   :  { %2931 = vmatpush.bf16.msra.mxu3 %v7521_v41  ;;  %v8372_v41 = vld [vmem:[#allocation13 + $0x680] sm:$0xf] }
 0x1aa   :  { %v2476_v30 = vpop.f32.mrf.mxu2 }
 0x1ab   :  { %v2489_v31 = vpop.f32.mrf.mxu3  ;;  %v9386_v30 = vld [vmem:[#allocation11 + $0x44] sm:$0xf] }
 0x1ac   :  { %v7510_v31 = vld [vmem:[#allocation11 + $0x48] sm:$0xf0] }
 0x1b5   :  { %v2500_v53 = vpop.f32.mrf.mxu0 }
 0x1b6   :  { %v2501_v52 = vadd.f32 %v2500_v53, %v2488_v17  ;;  %v9387_v17 = vld [vmem:[#allocation11 + $0x44] sm:$0xf0] }
 0x1b8   :  { %v2513_v34 = vpop.f32.mrf.mxu1 }
 0x1b9   :  { %v2514_v23 = vadd.f32 %v2513_v34, %v2501_v52  ;;  %v7509_v34 = vor.u32 %v9387_v17, %v7508_v22  ;;  %v7484_v52 = vld [vmem:[#allocation11 + $0x10] sm:$0xf]  ;;  %v9610_v22 = vld [vmem:[#allocation13 + $0x6bc] sm:$0xf0]  ;;  %v9474_v17 = vld [vmem:[#allocation13 + $0x284] sm:$0xf] }
 0x1bb   :  { %2919 = vmatpush.bf16.msra.mxu2 %v7509_v34  ;;  %v8374_v34 = vld [vmem:[#allocation13 + $0x6c0] sm:$0xf0] }
 0x1bd   :  { %v2502_v35 = vpop.f32.mrf.mxu0 }
 0x1c0   :  { %v2515_v28 = vpop.f32.mrf.mxu1 }
 0x1c1   :  { %v7513_v28 = vor.u32 %v9386_v30, %v7510_v31  ;;  %v7862_v31 = vld [vmem:[#allocation13 + $0x2c0] sm:$0xf0] }
 0x1c2   :  { %v2526_v37 = vpop.f32.mrf.mxu2 }
 0x1c3   :  { %v2539_v38 = vpop.f32.mrf.mxu3  ;;  %v2527_v54 = vadd.f32 %v2526_v37, %v2514_v23  ;;  %v7500_v37 = vld [vmem:[#allocation11 + $0x30] sm:$0xf]  ;;  %2932 = vmatpush.bf16.msra.mxu3 %v7513_v28  ;;  %v7865_v28 = vor.u32 %v9474_v17, %v7862_v31  ;;  %v7542_v17 = vld [vmem:[#allocation13 + $0x40] sm:$0xf0] }
 0x1c4   :  { %v9522_v31 = vld [vmem:[#allocation13 + $0x404] sm:$0xf] }
 0x1c5   :  { %v2540_v32 = vadd.f32 %v2539_v38, %v2527_v54  ;;  %v9385_v38 = vld [vmem:[#allocation11 + $0x34] sm:$0xf0] }
 0x1ca   :  { %v2528_v6 = vpop.f32.mrf.mxu2 }
 0x1cb   :  { %v2541_v42 = vpop.f32.mrf.mxu3  ;;  %v9384_v6 = vld [vmem:[#allocation11 + $0x34] sm:$0xf] }
 0x1cc   :  { %v7502_v42 = vld [vmem:[#allocation11 + $0x38] sm:$0xf0] }
 0x1cd   :  { %v7505_v29 = vor.u32 %v9384_v6, %v7502_v42  ;;  %v9594_v6 = vld [vmem:[#allocation13 + $0x63c] sm:$0xf0]  ;;  %v9458_v42 = vld [vmem:[#allocation13 + $0x204] sm:$0xf] }
 0x1cf   :  { %2933 = vmatpush.bf16.msra.mxu3 %v7505_v29  ;;  %v8310_v29 = vld [vmem:[#allocation13 + $0x640] sm:$0xf0] }
 0x1d5   :  { %v2552_v47 = vpop.f32.mrf.mxu0 }
 0x1d6   :  { %v2553_v59 = vadd.f32 %v2552_v47, %v2540_v32  ;;  %v7501_v47 = vor.u32 %v9385_v38, %v7500_v37  ;;  %v7476_v32 = vld [vmem:[#allocation11] sm:$0xf] }
 0x1d7   :  { %v7796_v37 = vld [vmem:[#allocation13 + $0x200] sm:$0xf] }
 0x1d8   :  { %v2565_v5 = vpop.f32.mrf.mxu1  ;;  %2920 = vmatpush.bf16.msra.mxu2 %v7501_v47  ;;  %v9466_v38 = vld [vmem:[#allocation13 + $0x23c] sm:$0xf0]  ;;  %v9586_v47 = vld [vmem:[#allocation13 + $0x604] sm:$0xf] }
 0x1d9   :  { %v2566_v55 = vadd.f32 %v2565_v5, %v2553_v59  ;;  %v7492_v5 = vld [vmem:[#allocation11 + $0x20] sm:$0xf]  ;;  %v9379_v59 = vld [vmem:[#allocation11 + $0x4] sm:$0xf0] }
 0x1dd   :  { %v2554_v50 = vpop.f32.mrf.mxu0 }
 0x1de   :  { %v7494_v50 = vld [vmem:[#allocation11 + $0x28] sm:$0xf0] }
 0x1df   :  { %v7497_v45 = vor.u32 %v9382_v49, %v7494_v50  ;;  %v7732_v50 = vld [vmem:[#allocation13 + $0x180] sm:$0xf] }
 0x1e0   :  { %v2567_v51 = vpop.f32.mrf.mxu1 }
 0x1e1   :  { %v7493_v51 = vor.u32 %v9383_v48, %v7492_v5  ;;  %2934 = vmatpush.bf16.msra.mxu3 %v7497_v45  ;;  %v7797_v5 = vor.u32 %v9466_v38, %v7796_v37  ;;  %v8244_v45 = vld [vmem:[#allocation13 + $0x580] sm:$0xf]  ;;  %v9643_v37 = vld [vmem:[#allocation13 + $0x7c4] sm:$0xf0] }
 0x1e2   :  { %v2578_v26 = vpop.f32.mrf.mxu2 }
 0x1e3   :  { %v2591_v8 = vpop.f32.mrf.mxu3  ;;  %v2579_v62 = vadd.f32 %v2578_v26, %v2566_v55  ;;  %v9381_v26 = vld [vmem:[#allocation11 + $0x14] sm:$0xf0]  ;;  %2921 = vmatpush.bf16.msra.mxu2 %v7493_v51  ;;  %v9378_v55 = vld [vmem:[#allocation11 + $0x4] sm:$0xf]  ;;  %v9450_v51 = vld [vmem:[#allocation13 + $0x1bc] sm:$0xf0] }
 0x1e4   :  { %v7485_v23 = vor.u32 %v9381_v26, %v7484_v52  ;;  %v8313_v52 = vor.u32 %v9586_v47, %v8310_v29  ;;  %v9578_v26 = vld [vmem:[#allocation13 + $0x5bc] sm:$0xf0]  ;;  %v9635_v47 = vld [vmem:[#allocation13 + $0x78c] sm:$0xf] }
 0x1e5   :  { %v2592_v61 = vadd.f32 %v2591_v8, %v2579_v62  ;;  %v9380_v8 = vld [vmem:[#allocation11 + $0x14] sm:$0xf]  ;;  %v8510_v29 = vld [vmem:[#allocation13 + $0x7c8] sm:$0xf0] }
 0x1e7   :  { %2922 = vmatpush.bf16.msra.mxu2 %v7485_v23  ;;  %v9570_v23 = vld [vmem:[#allocation13 + $0x584] sm:$0xf] }
 0x1ea   :  { %v2580_v18 = vpop.f32.mrf.mxu2 }
 0x1eb   :  { %v2593_v56 = vpop.f32.mrf.mxu3  ;;  %v7489_v18 = vor.u32 %v9380_v8, %v7486_v44  ;;  %v9442_v8 = vld [vmem:[#allocation13 + $0x184] sm:$0xf] }
 0x1ec   :  { %v7734_v44 = vld [vmem:[#allocation13 + $0x1c0] sm:$0xf0] }
 0x1ed   :  { %2935 = vmatpush.bf16.msra.mxu3 %v7489_v18  ;;  %v8246_v18 = vld [vmem:[#allocation13 + $0x5c0] sm:$0xf0] }
 0x1f5   :  { %v2604_v57 = vpop.f32.mrf.mxu0 }
 0x1f6   :  { %v2605_v25 = vadd.f32 %v2604_v57, %v2592_v61  ;;  %v7477_v57 = vor.u32 %v9379_v59, %v7476_v32  ;;  %v7988_v61 = vld [vmem:[#allocation13 + $0x380] sm:$0xf]  ;;  %v8245_v32 = vor.u32 %v9578_v26, %v8244_v45  ;;  %v7737_v59 = vor.u32 %v9442_v8, %v7734_v44  ;;  %v9499_v45 = vld [vmem:[#allocation13 + $0x344] sm:$0xf0]  ;;  %v9491_v44 = vld [vmem:[#allocation13 + $0x30c] sm:$0xf] }
 0x1f7   :  { %v2617_v60 = vpop.f32.mrf.mxu1  ;;  %v9627_v26 = vld [vmem:[#allocation13 + $0x744] sm:$0xf0]  ;;  %v8513_v8 = vor.u32 %v9635_v47, %v8510_v29 }
 0x1f8   :  { %v2618_v10 = vadd.f32 %v2617_v60, %v2605_v25  ;;  %v7478_v60 = vld [vmem:[#allocation11 + $0x8] sm:$0xf0]  ;;  %2923 = vmatpush.bf16.msra.mxu2 %v7477_v57  ;;  %v9514_v25 = vld [vmem:[#allocation13 + $0x3bc] sm:$0xf0] }
 0x1f9   :  { %v7481_v62 = vor.u32 %v9378_v55, %v7478_v60  ;;  %v7989_v1 = vor.u32 %v9514_v25, %v7988_v61  ;;  %v7668_v55 = vld [vmem:[#allocation13 + $0x100] sm:$0xf]  ;;  %v9426_v25 = vld [vmem:[#allocation13 + $0x104] sm:$0xf] }
 0x1fa   :  { %v9434_v57 = vld [vmem:[#allocation13 + $0x13c] sm:$0xf0] }
 0x1fb   :  { %2936 = vmatpush.bf16.msra.mxu3 %v7481_v62  ;;  %4518 = vmatpush.bf16.msrb.mxu0 %v7989_v1  ;;  %v8180_v60 = vld [vmem:[#allocation13 + $0x500] sm:$0xf]  ;;  %v8249_v62 = vor.u32 %v9570_v23, %v8246_v18  ;;  %v9554_v1 = vld [vmem:[#allocation13 + $0x504] sm:$0xf]  ;;  %v7934_v23 = vld [vmem:[#allocation13 + $0x348] sm:$0xf0] }
 0x1fc   :  { %v9562_v61 = vld [vmem:[#allocation13 + $0x53c] sm:$0xf0] }
 0x1fd   :  { %v2606_v63 = vpop.f32.mrf.mxu0 }
 0x1fe   :  { %v8500_v63 = vld [vmem:[#allocation13 + $0x780] sm:$0xf] }
 0x1ff   :  { %v2619_v3 = vpop.f32.mrf.mxu1  ;;  %v8501_v4 = vor.u32 %v9642_v2, %v8500_v63  ;;  %4557 = vmatpush.bf16.msrb.mxu3 %v8505_v58  ;;  %4519 = vmatpush.bf16.msrb.mxu0 %v7925_v11  ;;  %v7670_v63 = vld [vmem:[#allocation13 + $0x140] sm:$0xf0] }
 0x200   :  { %v7990_v3 = vld [vmem:[#allocation13 + $0x3c0] sm:$0xf0] }
 0x201   :  { %v7993_v7 = vor.u32 %v9506_v39, %v7990_v3  ;;  %4531 = vmatpush.bf16.msrb.mxu1 %v8501_v4  ;;  %v8182_v2 = vld [vmem:[#allocation13 + $0x540] sm:$0xf0]  ;;  %v9794_v39 = vld [vmem:[%s10484_s6] ss:$0 sm:$0xff]  ;;  %v7669_v3 = vor.u32 %v9434_v57, %v7668_v55  ;;  %v8181_v4 = vor.u32 %v9562_v61, %v8180_v60  ;;  %v7937_v60 = vor.u32 %v9491_v44, %v7934_v23  ;;  %v7614_v44 = vld [vmem:[#allocation13 + $0xc8] sm:$0xf0] }
 0x202   :  { %v2630_v15 = vpop.f32.mrf.mxu2  ;;  %v8185_v58 = vor.u32 %v9554_v1, %v8182_v2  ;;  %v9538_v11 = vld [vmem:[#allocation13 + $0x484] sm:$0xf]  ;;  %v7868_v57 = vld [vmem:[#allocation13 + $0x288] sm:$0xf]  ;;  %v9475_v1 = vld [vmem:[#allocation13 + $0x28c] sm:$0xf] }
 0x203   :  { %v2631_v19 = vadd.f32 %v2630_v15, %v2618_v10  ;;  %v2643_v0 = vpop.f32.mrf.mxu3  ;;  %v9626_v10 = vld [vmem:[#allocation13 + $0x73c] sm:$0xf0]  ;;  %4544 = vmatpush.bf16.msrb.mxu2 %v7993_v7  ;;  %v7926_v15 = vld [vmem:[#allocation13 + $0x340] sm:$0xf0]  ;;  %v7673_v7 = vor.u32 %v9426_v25, %v7670_v63  ;;  %v8380_v61 = vld [vmem:[#allocation13 + $0x688] sm:$0xf] }
 0x204   :  { %v8437_v13 = vor.u32 %v9626_v10, %v8436_v9  ;;  %v7929_v16 = vor.u32 %v9490_v14, %v7926_v15  ;;  %v9410_v9 = vld [vmem:[#allocation13 + $0x84] sm:$0xf]  ;;  %v7605_v15 = vor.u32 %v9418_v33, %v7604_v24  ;;  %v9611_v25 = vld [vmem:[#allocation13 + $0x6c4] sm:$0xf0]  ;;  %v7870_v2 = vld [vmem:[#allocation13 + $0x2c8] sm:$0xf0] }
 0x205   :  { %v2644_v21 = vadd.f32 %v2643_v0, %v2631_v19  ;;  %v8438_v19 = vld [vmem:[#allocation13 + $0x740] sm:$0xf0]  ;;  %v7860_v0 = vld [vmem:[#allocation13 + $0x280] sm:$0xf]  ;;  %v7804_v24 = vld [vmem:[#allocation13 + $0x208] sm:$0xf]  ;;  %v7873_v33 = vor.u32 %v9475_v1, %v7870_v2 }
 0x206   :  { %v7861_v30 = vor.u32 %v9482_v20, %v7860_v0  ;;  %4532 = vmatpush.bf16.msrb.mxu1 %v8437_v13  ;;  %v7606_v10 = vld [vmem:[#allocation13 + $0xc0] sm:$0xf0]  ;;  %v8117_v20 = vor.u32 %v9546_v36, %v8116_v12  ;;  %v9467_v12 = vld [vmem:[#allocation13 + $0x244] sm:$0xf0]  ;;  %v9539_v23 = vld [vmem:[#allocation13 + $0x48c] sm:$0xf] }
 0x207   :  { %vm2648_vm2 = vcmp.ge.f32.partialorder %v2644_v21, 0.0  ;;  %v2650_v53 = vmul.f32 0.01, %v2644_v21  ;;  %4545 = vmatpush.bf16.msrb.mxu2 %v7929_v16  ;;  %v8118_v13 = vld [vmem:[#allocation13 + $0x4c0] sm:$0xf0] }
 0x208   :  { %4520 = vmatpush.bf16.msrb.mxu0 %v7861_v30  ;;  %v9402_v16 = vld [vmem:[#allocation13 + $0x3c] sm:$0xf0]  ;;  %v9595_v36 = vld [vmem:[#allocation13 + $0x644] sm:$0xf0]  ;;  %v9523_v2 = vld [vmem:[#allocation13 + $0x40c] sm:$0xf] }
 0x209   :  { %v2652_v35 = vsel %vm2648_vm2, %v2644_v21, %v2650_v53  ;;  %v8441_v21 = vor.u32 %v9618_v27, %v8438_v19  ;;  %v9602_v53 = vld [vmem:[#allocation13 + $0x684] sm:$0xf]  ;;  %v7540_v27 = vld [vmem:[#allocation13] sm:$0xf] }
 0x20a   :  { %v2654_v40 = vpack.c.bf16 %v2652_v35, %v2652_v35  ;;  %v2632_v43 = vpop.f32.mrf.mxu2  ;;  %v8373_v35 = vor.u32 %v9610_v22, %v8372_v41  ;;  %v8052_v19 = vld [vmem:[#allocation13 + $0x400] sm:$0xf]  ;;  %v9394_v22 = vld [vmem:[#allocation13 + $0x4] sm:$0xf] }
 0x20b   :  { %v2645_v46 = vpop.f32.mrf.mxu3  ;;  %4558 = vmatpush.bf16.msrb.mxu3 %v8441_v21  ;;  %v8377_v43 = vor.u32 %v9602_v53, %v8374_v34  ;;  %4546 = vmatpush.bf16.msrb.mxu2 %v7865_v28  ;;  %v7609_v21 = vor.u32 %v9410_v9, %v7606_v10  ;;  %v9530_v41 = vld [vmem:[#allocation13 + $0x43c] sm:$0xf0]  ;;  %v8054_v53 = vld [vmem:[#allocation13 + $0x440] sm:$0xf0]  ;;  %v7996_v34 = vld [vmem:[#allocation13 + $0x388] sm:$0xf] }
 0x20c   :  { %2808 = vmatmul.bf16.vlgmr.msra.gmra.mxu1 %v2654_v40  ;;  %v8308_v40 = vld [vmem:[#allocation13 + $0x600] sm:$0xf]  ;;  %v7798_v46 = vld [vmem:[#allocation13 + $0x240] sm:$0xf0]  ;;  %4521 = vmatpush.bf16.msrb.mxu0 %v7797_v5  ;;  %v8508_v28 = vld [vmem:[#allocation13 + $0x788] sm:$0xf] }
 0x20d   :  { %4533 = vmatpush.bf16.msrb.mxu1 %v8373_v35  ;;  %v8309_v48 = vor.u32 %v9594_v6, %v8308_v40  ;;  %v7801_v49 = vor.u32 %v9458_v42, %v7798_v46  ;;  %v8121_v35 = vor.u32 %v9538_v11, %v8118_v13  ;;  %v7541_v40 = vor.u32 %v9402_v16, %v7540_v27  ;;  %v7998_v6 = vld [vmem:[#allocation13 + $0x3c8] sm:$0xf0]  ;;  %v7740_v16 = vld [vmem:[#allocation13 + $0x188] sm:$0xf] }
 0x20e   :  { %v8053_v42 = vor.u32 %v9530_v41, %v8052_v19  ;;  %v7545_v46 = vor.u32 %v9394_v22, %v7542_v17  ;;  %v9459_v10 = vld [vmem:[#allocation13 + $0x20c] sm:$0xf] }
 0x20f   :  { %4559 = vmatpush.bf16.msrb.mxu3 %v8377_v43  ;;  %4547 = vmatpush.bf16.msrb.mxu2 %v7801_v49  ;;  %v9507_v43 = vld [vmem:[#allocation13 + $0x38c] sm:$0xf]  ;;  %v7932_v49 = vld [vmem:[#allocation13 + $0x308] sm:$0xf] }
 0x210   :  { %v7806_v11 = vld [vmem:[#allocation13 + $0x248] sm:$0xf0] }
 0x211   :  { %4534 = vmatpush.bf16.msrb.mxu1 %v8309_v48  ;;  %v8509_v48 = vor.u32 %v9643_v37, %v8508_v28  ;;  %v9587_v13 = vld [vmem:[#allocation13 + $0x60c] sm:$0xf]  ;;  %v7809_v19 = vor.u32 %v9459_v10, %v7806_v11  ;;  %v9435_v28 = vld [vmem:[#allocation13 + $0x144] sm:$0xf0]  ;;  %v9516_v10 = vld [vmem:[#allocation13 + $0x3cc] sm:$0xf0] }
 0x212   :  { %v9443_v22 = vld [vmem:[#allocation13 + $0x18c] sm:$0xf]  ;;  %v8188_v37 = vld [vmem:[#allocation13 + $0x508] sm:$0xf]  ;;  %v8516_v11 = vld [vmem:[#allocation13 + $0x790] sm:$0xf] }
 0x213   :  { %4560 = vmatpush.bf16.msrb.mxu3 %v8313_v52  ;;  %4548 = vmatpush.bf16.msrb.mxu2 %v7737_v59  ;;  %v8444_v52 = vld [vmem:[#allocation13 + $0x708] sm:$0xf]  ;;  %v7933_v59 = vor.u32 %v9499_v45, %v7932_v49  ;;  %v7742_v17 = vld [vmem:[#allocation13 + $0x1c8] sm:$0xf0] }
 0x214   :  { %v8445_v55 = vor.u32 %v9627_v26, %v8444_v52  ;;  %v7612_v49 = vld [vmem:[#allocation13 + $0x88] sm:$0xf]  ;;  %v9411_v26 = vld [vmem:[#allocation13 + $0x8c] sm:$0xf] }
 0x215   :  { %v10359_v54 = vpop.f32.mrf.mxu0  ;;  %4535 = vmatpush.bf16.msrb.mxu1 %v8245_v32  ;;  %v8446_v32 = vld [vmem:[#allocation13 + $0x748] sm:$0xf0]  ;;  %v8124_v45 = vld [vmem:[#allocation13 + $0x488] sm:$0xf] }
 0x216   :  { %v2797_v14 = vadd.f32 %v9794_v39, %v10359_v54  ;;  %v9515_v54 = vld [vmem:[#allocation13 + $0x3c4] sm:$0xf0]  ;;  %v9603_v39 = vld [vmem:[#allocation13 + $0x68c] sm:$0xf] }
 0x217   :  { %4561 = vmatpush.bf16.msrb.mxu3 %v8249_v62  ;;  %4549 = vmatpush.bf16.msrb.mxu2 %v7673_v7  ;;  %v7997_v5 = vor.u32 %v9515_v54, %v7996_v34  ;;  %v9483_v62 = vld [vmem:[#allocation13 + $0x2c4] sm:$0xf0]  ;;  %v8381_v7 = vor.u32 %v9611_v25, %v8380_v61  ;;  %v7745_v54 = vor.u32 %v9443_v22, %v7742_v17  ;;  %v9395_v61 = vld [vmem:[#allocation13 + $0xc] sm:$0xf]  ;;  %v7940_v17 = vld [vmem:[#allocation13 + $0x310] sm:$0xf] }
 0x218   :  { %v9547_v52 = vld [vmem:[#allocation13 + $0x4c4] sm:$0xf0]  ;;  %v7550_v25 = vld [vmem:[#allocation13 + $0x48] sm:$0xf0] }
 0x219   :  { %4536 = vmatpush.bf16.msrb.mxu1 %v8181_v4  ;;  %v7869_v4 = vor.u32 %v9483_v62, %v7868_v57  ;;  %v8060_v57 = vld [vmem:[#allocation13 + $0x408] sm:$0xf]  ;;  %v7553_v1 = vor.u32 %v9395_v61, %v7550_v25 }
 0x21a   :  { %v9531_v62 = vld [vmem:[#allocation13 + $0x444] sm:$0xf0] }
 0x21b   :  { %4562 = vmatpush.bf16.msrb.mxu3 %v8185_v58  ;;  %4550 = vmatpush.bf16.msrb.mxu2 %v7609_v21  ;;  %v8316_v58 = vld [vmem:[#allocation13 + $0x608] sm:$0xf] }
 0x21c   :  { %v8317_v27 = vor.u32 %v9595_v36, %v8316_v58  ;;  %v9579_v21 = vld [vmem:[#allocation13 + $0x5c4] sm:$0xf0] }
 0x21d   :  { %v2798_v56 = vpop.f32.mrf.mxu0  ;;  %4537 = vmatpush.bf16.msrb.mxu1 %v8117_v20  ;;  %v8252_v20 = vld [vmem:[#allocation13 + $0x588] sm:$0xf] }
 0x21e   :  { %v7733_v56 = vor.u32 %v9450_v51, %v7732_v50  ;;  %v8057_v50 = vor.u32 %v9522_v31, %v8054_v53  ;;  %v8001_v51 = vor.u32 %v9507_v43, %v7998_v6  ;;  %v8254_v31 = vld [vmem:[#allocation13 + $0x5c8] sm:$0xf0]  ;;  %v8253_v34 = vor.u32 %v9579_v21, %v8252_v20 }
 0x21f   :  { %4563 = vmatpush.bf16.msrb.mxu3 %v8121_v35  ;;  %4551 = vmatpush.bf16.msrb.mxu2 %v7545_v46  ;;  %v7676_v35 = vld [vmem:[#allocation13 + $0x108] sm:$0xf]  ;;  %v9427_v43 = vld [vmem:[#allocation13 + $0x10c] sm:$0xf] }
 0x220   :  { %4522 = vmatpush.bf16.msrb.mxu0 %v7733_v56  ;;  %v9619_v56 = vld [vmem:[#allocation13 + $0x70c] sm:$0xf]  ;;  %v7677_v47 = vor.u32 %v9435_v28, %v7676_v35  ;;  %v9628_v35 = vld [vmem:[#allocation13 + $0x74c] sm:$0xf0]  ;;  %v7942_v28 = vld [vmem:[#allocation13 + $0x350] sm:$0xf0] }
 0x221   :  { %4538 = vmatpush.bf16.msrb.mxu1 %v8053_v42  ;;  %v8449_v63 = vor.u32 %v9619_v56, %v8446_v32  ;;  %v7678_v6 = vld [vmem:[#allocation13 + $0x148] sm:$0xf0]  ;;  %v7617_v56 = vor.u32 %v9411_v26, %v7614_v44  ;;  %v7812_v44 = vld [vmem:[#allocation13 + $0x210] sm:$0xf] }
 0x222   :  { %v9555_v42 = vld [vmem:[#allocation13 + $0x50c] sm:$0xf] }
 0x223   :  { %4564 = vmatpush.bf16.msrb.mxu3 %v8057_v50  ;;  %v8190_v46 = vld [vmem:[#allocation13 + $0x548] sm:$0xf0]  ;;  %v9419_v50 = vld [vmem:[#allocation13 + $0xc4] sm:$0xf0] }
 0x224   :  { %4523 = vmatpush.bf16.msrb.mxu0 %v7669_v3  ;;  %v8382_v3 = vld [vmem:[#allocation13 + $0x6c8] sm:$0xf0] }
 0x225   :  { %4583 = vmatpush.bf16.msra.mxu1 %v8509_v48  ;;  %v8385_v9 = vor.u32 %v9603_v39, %v8382_v3  ;;  %v8193_v48 = vor.u32 %v9555_v42, %v8190_v46  ;;  %v8062_v39 = vld [vmem:[#allocation13 + $0x448] sm:$0xf0]  ;;  %v7876_v46 = vld [vmem:[#allocation13 + $0x290] sm:$0xf] }
 0x226   :  { %v8065_v3 = vor.u32 %v9523_v2, %v8062_v39 }
 0x228   :  { %4524 = vmatpush.bf16.msrb.mxu0 %v7605_v15  ;;  %v7805_v15 = vor.u32 %v9467_v12, %v7804_v24 }
 0x229   :  { %4584 = vmatpush.bf16.msra.mxu1 %v8445_v55  ;;  %v9403_v55 = vld [vmem:[#allocation13 + $0x44] sm:$0xf0] }
 0x22c   :  { %4525 = vmatpush.bf16.msrb.mxu0 %v7541_v40 }
 0x22d   :  { %4585 = vmatpush.bf16.msra.mxu1 %v8381_v7 }
 0x230   :  { %4570 = vmatpush.bf16.msra.mxu0 %v7997_v5  ;;  %v7681_v5 = vor.u32 %v9427_v43, %v7678_v6 }
 0x231   :  { %4586 = vmatpush.bf16.msra.mxu1 %v8317_v27 }
 0x234   :  { %4571 = vmatpush.bf16.msra.mxu0 %v7933_v59  ;;  %v7548_v59 = vld [vmem:[#allocation13 + $0x8] sm:$0xf] }
 0x235   :  { %4587 = vmatpush.bf16.msra.mxu1 %v8253_v34  ;;  %v8452_v34 = vld [vmem:[#allocation13 + $0x710] sm:$0xf] }
 0x236   :  { %v8453_v42 = vor.u32 %v9628_v35, %v8452_v34  ;;  %v8132_v34 = vld [vmem:[#allocation13 + $0x490] sm:$0xf] }
 0x237   :  { %v9548_v35 = vld [vmem:[#allocation13 + $0x4cc] sm:$0xf0] }
 0x238   :  { %4572 = vmatpush.bf16.msra.mxu0 %v7869_v4  ;;  %v2830_v4 = vld [vmem:[%s10486_s8] sm:$0x3] }
 0x239   :  { %v2832_v7 = vperm.slane %v2830_v4, 0  ;;  %v2833_v24 = vperm.slane %v2830_v4, 1  ;;  %v9580_v4 = vld [vmem:[#allocation13 + $0x5cc] sm:$0xf0] }
 0x23c   :  { %4573 = vmatpush.bf16.msra.mxu0 %v7805_v15  ;;  %v8006_v15 = vld [vmem:[#allocation13 + $0x3d0] sm:$0xf0] }
 0x289   :  { %v2809_v0 = vpop.f32.mrf.mxu1 }
 0x28a   :  { %v2810_v30 = vadd.f32 %v2809_v0, %v2797_v14  ;;  %v8318_v14 = vld [vmem:[#allocation13 + $0x648] sm:$0xf0]  ;;  %v9451_v0 = vld [vmem:[#allocation13 + $0x1c4] sm:$0xf0] }
 0x28b   :  { %v8321_v41 = vor.u32 %v9587_v13, %v8318_v14  ;;  %v7741_v53 = vor.u32 %v9451_v0, %v7740_v16  ;;  %v9644_v13 = vld [vmem:[#allocation13 + $0x7cc] sm:$0xf0]  ;;  %v9508_v14 = vld [vmem:[#allocation13 + $0x394] sm:$0xf] }
 0x28c   :  { %v2813_v38 = vpack.c.bf16 %v2810_v30, %v2810_v30  ;;  %6203 = vst [vmem:[#allocation17] sm:$0xff] %v2810_v30  ;;  %v9571_v30 = vld [vmem:[#allocation13 + $0x58c] sm:$0xf]  ;;  %v8518_v0 = vld [vmem:[#allocation13 + $0x7d0] sm:$0xf0]  ;;  %v8517_v22 = vor.u32 %v9644_v13, %v8516_v11 }
 0x28d   :  { %v8257_v40 = vor.u32 %v9571_v30, %v8254_v31  ;;  %4574 = vmatpush.bf16.msra.mxu0 %v7741_v53  ;;  %v9500_v30 = vld [vmem:[#allocation13 + $0x34c] sm:$0xf0]  ;;  %v8009_v31 = vor.u32 %v9508_v14, %v8006_v15  ;;  %6215 = dma.vmem_to_hbm [thread:$0]  %s6211_s29, 128, %s6213_s25, [#allocation4]  }
 0x28e   :  { %2924 = vmatmul.bf16.vlgmr.msra.gmra.mxu2 %v2813_v38  ;;  %2937 = vmatmul.bf16.vlgmr.msra.gmra.mxu3 %v2813_v38  ;;  %v9563_v38 = vld [vmem:[#allocation13 + $0x544] sm:$0xf0]  ;;  %v7941_v6 = vor.u32 %v9500_v30, %v7940_v17  ;;  %v8196_v14 = vld [vmem:[#allocation13 + $0x510] sm:$0xf] }
 0x28f   :  { %4596 = vmatpush.bf16.msra.mxu2 %v8001_v51  ;;  %4609 = vmatpush.bf16.msra.mxu3 %v8513_v8  ;;  %v8189_v29 = vor.u32 %v9563_v38, %v8188_v37  ;;  %v7613_v51 = vor.u32 %v9419_v50, %v7612_v49  ;;  %v8125_v8 = vor.u32 %v9547_v52, %v8124_v45  ;;  %v9620_v37 = vld [vmem:[#allocation13 + $0x714] sm:$0xf]  ;;  %v9612_v49 = vld [vmem:[#allocation13 + $0x6cc] sm:$0xf0] }
 0x290   :  { %v8454_v38 = vld [vmem:[#allocation13 + $0x750] sm:$0xf0]  ;;  %v9564_v15 = vld [vmem:[#allocation13 + $0x54c] sm:$0xf0] }
 0x291   :  { %v2811_v18 = vpop.f32.mrf.mxu1  ;;  %4575 = vmatpush.bf16.msra.mxu0 %v7677_v47  ;;  %4588 = vmatpush.bf16.msra.mxu1 %v8189_v29  ;;  %v9484_v47 = vld [vmem:[#allocation13 + $0x2cc] sm:$0xf0]  ;;  %v9476_v50 = vld [vmem:[#allocation13 + $0x294] sm:$0xf] }
 0x292   :  { %v8126_v18 = vld [vmem:[#allocation13 + $0x4c8] sm:$0xf0]  ;;  %v9604_v45 = vld [vmem:[#allocation13 + $0x694] sm:$0xf]  ;;  %v7877_v26 = vor.u32 %v9484_v47, %v7876_v46  ;;  %v7620_v17 = vld [vmem:[#allocation13 + $0x90] sm:$0xf] }
 0x293   :  { %4597 = vmatpush.bf16.msra.mxu2 %v7937_v60  ;;  %4610 = vmatpush.bf16.msra.mxu3 %v8449_v63  ;;  %v8129_v32 = vor.u32 %v9539_v23, %v8126_v18  ;;  %v7549_v60 = vor.u32 %v9403_v55, %v7548_v59  ;;  %v8061_v63 = vor.u32 %v9531_v62, %v8060_v57  ;;  %v8390_v52 = vld [vmem:[#allocation13 + $0x6d0] sm:$0xf0]  ;;  %v9468_v23 = vld [vmem:[#allocation13 + $0x24c] sm:$0xf0] }
 0x294   :  { %v9596_v59 = vld [vmem:[#allocation13 + $0x64c] sm:$0xf0]  ;;  %v9460_v55 = vld [vmem:[#allocation13 + $0x214] sm:$0xf]  ;;  %v7813_v61 = vor.u32 %v9468_v23, %v7812_v44  ;;  %v9509_v44 = vld [vmem:[#allocation13 + $0x39c] sm:$0xf] }
 0x295   :  { %4576 = vmatpush.bf16.msra.mxu0 %v7613_v51  ;;  %4589 = vmatpush.bf16.msra.mxu1 %v8125_v8  ;;  %v7878_v51 = vld [vmem:[#allocation13 + $0x2d0] sm:$0xf0]  ;;  %v9420_v30 = vld [vmem:[#allocation13 + $0xcc] sm:$0xf0] }
 0x296   :  { %v7881_v18 = vor.u32 %v9476_v50, %v7878_v51  ;;  %v7814_v57 = vld [vmem:[#allocation13 + $0x250] sm:$0xf0]  ;;  %v8068_v46 = vld [vmem:[#allocation13 + $0x410] sm:$0xf] }
 0x297   :  { %4598 = vmatpush.bf16.msra.mxu2 %v7873_v33  ;;  %4611 = vmatpush.bf16.msra.mxu3 %v8385_v9  ;;  %v8004_v9 = vld [vmem:[#allocation13 + $0x390] sm:$0xf]  ;;  %v8326_v62 = vld [vmem:[#allocation13 + $0x650] sm:$0xf0]  ;;  %v7817_v2 = vor.u32 %v9460_v55, %v7814_v57 }
 0x298   :  { %v9532_v47 = vld [vmem:[#allocation13 + $0x44c] sm:$0xf0]  ;;  %v9524_v50 = vld [vmem:[#allocation13 + $0x414] sm:$0xf] }
 0x299   :  { %4577 = vmatpush.bf16.msra.mxu0 %v7549_v60  ;;  %4590 = vmatpush.bf16.msra.mxu1 %v8061_v63  ;;  %v9588_v60 = vld [vmem:[#allocation13 + $0x614] sm:$0xf]  ;;  %v7748_v63 = vld [vmem:[#allocation13 + $0x190] sm:$0xf] }
 0x29a   :  { %v8329_v39 = vor.u32 %v9588_v60, %v8326_v62  ;;  %v8070_v51 = vld [vmem:[#allocation13 + $0x450] sm:$0xf0] }
 0x29b   :  { %4599 = vmatpush.bf16.msra.mxu2 %v7809_v19  ;;  %4612 = vmatpush.bf16.msra.mxu3 %v8321_v41  ;;  %v9636_v19 = vld [vmem:[#allocation13 + $0x794] sm:$0xf]  ;;  %v8005_v41 = vor.u32 %v9516_v10, %v8004_v9  ;;  %v7684_v9 = vld [vmem:[#allocation13 + $0x110] sm:$0xf]  ;;  %v8073_v57 = vor.u32 %v9524_v50, %v8070_v51 }
 0x29c   :  { %v8521_v53 = vor.u32 %v9636_v19, %v8518_v0  ;;  %v9436_v10 = vld [vmem:[#allocation13 + $0x14c] sm:$0xf0]  ;;  %v9556_v19 = vld [vmem:[#allocation13 + $0x514] sm:$0xf] }
 0x29d   :  { %v8198_v0 = vld [vmem:[#allocation13 + $0x550] sm:$0xf0] }
 0x29f   :  { %4600 = vmatpush.bf16.msra.mxu2 %v7745_v54  ;;  %4613 = vmatpush.bf16.msra.mxu3 %v8257_v40  ;;  %v9492_v54 = vld [vmem:[#allocation13 + $0x314] sm:$0xf] }
 0x2a0   :  { %v7945_v29 = vor.u32 %v9492_v54, %v7942_v28  ;;  %v9412_v54 = vld [vmem:[#allocation13 + $0x94] sm:$0xf] }
 0x2a1   :  { %v7622_v28 = vld [vmem:[#allocation13 + $0xd0] sm:$0xf0] }
 0x2a3   :  { %4601 = vmatpush.bf16.msra.mxu2 %v7681_v5  ;;  %4614 = vmatpush.bf16.msra.mxu3 %v8193_v48  ;;  %v8457_v5 = vor.u32 %v9620_v37, %v8454_v38  ;;  %v8388_v48 = vld [vmem:[#allocation13 + $0x690] sm:$0xf]  ;;  %v9540_v37 = vld [vmem:[#allocation13 + $0x494] sm:$0xf] }
 0x2a4   :  { %v8389_v8 = vor.u32 %v9612_v49, %v8388_v48  ;;  %v8134_v38 = vld [vmem:[#allocation13 + $0x4d0] sm:$0xf0] }
 0x2a5   :  { %v9396_v48 = vld [vmem:[#allocation13 + $0x14] sm:$0xf] }
 0x2a6   :  { %v7558_v49 = vld [vmem:[#allocation13 + $0x50] sm:$0xf0] }
 0x2a7   :  { %4602 = vmatpush.bf16.msra.mxu2 %v7617_v56  ;;  %4615 = vmatpush.bf16.msra.mxu3 %v8129_v32  ;;  %v8393_v56 = vor.u32 %v9604_v45, %v8390_v52  ;;  %v8324_v32 = vld [vmem:[#allocation13 + $0x610] sm:$0xf]  ;;  %v8012_v45 = vld [vmem:[#allocation13 + $0x398] sm:$0xf]  ;;  %v7561_v55 = vor.u32 %v9396_v48, %v7558_v49  ;;  %v9573_v48 = vld [vmem:[#allocation13 + $0x59c] sm:$0xf] }
 0x2a8   :  { %v8325_v25 = vor.u32 %v9596_v59, %v8324_v32  ;;  %v9517_v52 = vld [vmem:[#allocation13 + $0x3d4] sm:$0xf0]  ;;  %v9637_v32 = vld [vmem:[#allocation13 + $0x79c] sm:$0xf] }
 0x2a9   :  { %v8526_v59 = vld [vmem:[#allocation13 + $0x7d8] sm:$0xf0]  ;;  %v8013_v60 = vor.u32 %v9517_v52, %v8012_v45  ;;  %v7692_v45 = vld [vmem:[#allocation13 + $0x118] sm:$0xf] }
 0x2aa   :  { %v8270_v49 = vld [vmem:[#allocation13 + $0x5d8] sm:$0xf0]  ;;  %v9437_v52 = vld [vmem:[#allocation13 + $0x154] sm:$0xf0] }
 0x2ab   :  { %4603 = vmatpush.bf16.msra.mxu2 %v7553_v1  ;;  %4616 = vmatpush.bf16.msra.mxu3 %v8065_v3  ;;  %v9452_v1 = vld [vmem:[#allocation13 + $0x1cc] sm:$0xf0] }
 0x2ac   :  { %v8260_v3 = vld [vmem:[#allocation13 + $0x590] sm:$0xf] }
 0x311   :  { %v2925_v33 = vpop.f32.mrf.mxu2  ;;  %v2938_v12 = vpop.f32.mrf.mxu3 }
 0x312   :  { %v2926_v58 = vadd.f32 %v2925_v33, %v2832_v7  ;;  %v2939_v36 = vadd.f32 %v2938_v12, %v2833_v24  ;;  %v9444_v7 = vld [vmem:[#allocation13 + $0x194] sm:$0xf] }
 0x313   :  { %v7750_v24 = vld [vmem:[#allocation13 + $0x1d0] sm:$0xf0] }
 0x314   :  { %v2942_v27 = vmax.f32 %v2926_v58, 0.0  ;;  %v2943_v16 = vmax.f32 %v2939_v36, 0.0  ;;  %v9572_v33 = vld [vmem:[#allocation13 + $0x594] sm:$0xf]  ;;  %v7749_v58 = vor.u32 %v9452_v1, %v7748_v63  ;;  %v8261_v36 = vor.u32 %v9580_v4, %v8260_v3  ;;  %v9493_v3 = vld [vmem:[#allocation13 + $0x31c] sm:$0xf] }
 0x315   :  { %v8262_v12 = vld [vmem:[#allocation13 + $0x5d0] sm:$0xf0]  ;;  %v7753_v11 = vor.u32 %v9444_v7, %v7750_v24  ;;  %v8529_v1 = vor.u32 %v9637_v32, %v8526_v59  ;;  %v7950_v4 = vld [vmem:[#allocation13 + $0x358] sm:$0xf0] }
 0x316   :  { %v10368_v20 = vpack.c.bf16 %v2942_v27, %v2942_v27  ;;  %v10370_v21 = vpack.c.bf16 %v2943_v16, %v2943_v16  ;;  %v8265_v13 = vor.u32 %v9572_v33, %v8262_v12  ;;  %v9428_v27 = vld [vmem:[#allocation13 + $0x114] sm:$0xf]  ;;  %v9621_v7 = vld [vmem:[#allocation13 + $0x71c] sm:$0xf] }
 0x317   :  { %v7686_v16 = vld [vmem:[#allocation13 + $0x150] sm:$0xf0]  ;;  %v8462_v24 = vld [vmem:[#allocation13 + $0x758] sm:$0xf0] }
 0x318   :  { %4526 = vmatmul.bf16.vlgmr.msrb.gmra.mxu0 %v10368_v20  ;;  %4539 = vmatmul.bf16.vlgmr.msrb.gmra.mxu1 %v10370_v21  ;;  %v9557_v32 = vld [vmem:[#allocation13 + $0x51c] sm:$0xf] }
 0x319   :  { %4552 = vmatmul.bf16.vlgmr.msrb.gmra.mxu2 %v10368_v20  ;;  %4565 = vmatmul.bf16.vlgmr.msrb.gmra.mxu3 %v10370_v21  ;;  %v2927_v40 = vpop.f32.mrf.mxu2  ;;  %v2940_v43 = vpop.f32.mrf.mxu3  ;;  %v8206_v59 = vld [vmem:[#allocation13 + $0x558] sm:$0xf0] }
 0x31a   :  { %4622 = vmatpush.bf16.msrb.mxu0 %v8005_v41  ;;  %4635 = vmatpush.bf16.msrb.mxu1 %v8517_v22  ;;  %v7685_v41 = vor.u32 %v9436_v10, %v7684_v9  ;;  %v8197_v22 = vor.u32 %v9564_v15, %v8196_v14  ;;  %v7556_v40 = vld [vmem:[#allocation13 + $0x10] sm:$0xf]  ;;  %v7621_v43 = vor.u32 %v9420_v30, %v7620_v17  ;;  %v9477_v14 = vld [vmem:[#allocation13 + $0x29c] sm:$0xf] }
 0x31b   :  { %4648 = vmatpush.bf16.msrb.mxu2 %v8009_v31  ;;  %4661 = vmatpush.bf16.msrb.mxu3 %v8521_v53  ;;  %v7689_v31 = vor.u32 %v9428_v27, %v7686_v16  ;;  %v8201_v53 = vor.u32 %v9556_v19, %v8198_v0  ;;  %v7953_v9 = vor.u32 %v9493_v3, %v7950_v4  ;;  %v7886_v15 = vld [vmem:[#allocation13 + $0x2d8] sm:$0xf0] }
 0x31c   :  { %v8465_v10 = vor.u32 %v9621_v7, %v8462_v24  ;;  %v9605_v27 = vld [vmem:[#allocation13 + $0x69c] sm:$0xf]  ;;  %v7889_v17 = vor.u32 %v9477_v14, %v7886_v15  ;;  %v7564_v7 = vld [vmem:[#allocation13 + $0x18] sm:$0xf] }
 0x31d   :  { %v8398_v16 = vld [vmem:[#allocation13 + $0x6d8] sm:$0xf0] }
 0x31e   :  { %4623 = vmatpush.bf16.msrb.mxu0 %v7941_v6  ;;  %4636 = vmatpush.bf16.msrb.mxu1 %v8453_v42  ;;  %v8133_v6 = vor.u32 %v9548_v35, %v8132_v34  ;;  %v9404_v42 = vld [vmem:[#allocation13 + $0x4c] sm:$0xf0]  ;;  %v8401_v30 = vor.u32 %v9605_v27, %v8398_v16  ;;  %v9461_v34 = vld [vmem:[#allocation13 + $0x21c] sm:$0xf]  ;;  %v8020_v27 = vld [vmem:[#allocation13 + $0x3a0] sm:$0xf] }
 0x31f   :  { %4649 = vmatpush.bf16.msrb.mxu2 %v7945_v29  ;;  %4662 = vmatpush.bf16.msrb.mxu3 %v8457_v5  ;;  %v7625_v29 = vor.u32 %v9412_v54, %v7622_v28  ;;  %v8137_v5 = vor.u32 %v9540_v37, %v8134_v38  ;;  %v7557_v23 = vor.u32 %v9404_v42, %v7556_v40  ;;  %v7822_v35 = vld [vmem:[#allocation13 + $0x258] sm:$0xf0]  ;;  %v7756_v40 = vld [vmem:[#allocation13 + $0x198] sm:$0xf]  ;;  %v9518_v16 = vld [vmem:[#allocation13 + $0x3dc] sm:$0xf0] }
 0x320   :  { %v9589_v54 = vld [vmem:[#allocation13 + $0x61c] sm:$0xf] }
 0x321   :  { %v8334_v28 = vld [vmem:[#allocation13 + $0x658] sm:$0xf0] }
 0x322   :  { %4624 = vmatpush.bf16.msrb.mxu0 %v7877_v26  ;;  %4637 = vmatpush.bf16.msrb.mxu1 %v8389_v8  ;;  %v8524_v26 = vld [vmem:[#allocation13 + $0x798] sm:$0xf]  ;;  %v8337_v42 = vor.u32 %v9589_v54, %v8334_v28  ;;  %v9541_v3 = vld [vmem:[#allocation13 + $0x49c] sm:$0xf]  ;;  %v8021_v54 = vor.u32 %v9518_v16, %v8020_v27  ;;  %v7700_v27 = vld [vmem:[#allocation13 + $0x120] sm:$0xf] }
 0x323   :  { %4650 = vmatpush.bf16.msrb.mxu2 %v7881_v18  ;;  %4663 = vmatpush.bf16.msrb.mxu3 %v8393_v56  ;;  %v9645_v8 = vld [vmem:[#allocation13 + $0x7d4] sm:$0xf0]  ;;  %v8069_v18 = vor.u32 %v9532_v47, %v8068_v46  ;;  %v8014_v56 = vld [vmem:[#allocation13 + $0x3d8] sm:$0xf0]  ;;  %v9438_v16 = vld [vmem:[#allocation13 + $0x15c] sm:$0xf0] }
 0x324   :  { %v8525_v62 = vor.u32 %v9645_v8, %v8524_v26  ;;  %v8017_v63 = vor.u32 %v9509_v44, %v8014_v56  ;;  %v8268_v46 = vld [vmem:[#allocation13 + $0x598] sm:$0xf]  ;;  %v8273_v8 = vor.u32 %v9573_v48, %v8270_v49  ;;  %v7694_v56 = vld [vmem:[#allocation13 + $0x158] sm:$0xf0] }
 0x325   :  { %v9581_v47 = vld [vmem:[#allocation13 + $0x5d4] sm:$0xf0]  ;;  %v8142_v4 = vld [vmem:[#allocation13 + $0x4d8] sm:$0xf0] }
 0x326   :  { %4625 = vmatpush.bf16.msrb.mxu0 %v7813_v61  ;;  %4638 = vmatpush.bf16.msrb.mxu1 %v8325_v25  ;;  %v7948_v61 = vld [vmem:[#allocation13 + $0x318] sm:$0xf]  ;;  %v8269_v51 = vor.u32 %v9581_v47, %v8268_v46  ;;  %v9525_v14 = vld [vmem:[#allocation13 + $0x41c] sm:$0xf]  ;;  %v9494_v46 = vld [vmem:[#allocation13 + $0x324] sm:$0xf] }
 0x327   :  { %4651 = vmatpush.bf16.msrb.mxu2 %v7817_v2  ;;  %4664 = vmatpush.bf16.msrb.mxu3 %v8329_v39  ;;  %v9501_v25 = vld [vmem:[#allocation13 + $0x354] sm:$0xf0]  ;;  %v8078_v15 = vld [vmem:[#allocation13 + $0x458] sm:$0xf0]  ;;  %v7958_v47 = vld [vmem:[#allocation13 + $0x360] sm:$0xf0] }
 0x328   :  { %4578 = vmatmul.bf16.vlgmr.msra.gmra.mxu0 %v10368_v20  ;;  %4591 = vmatmul.bf16.vlgmr.msra.gmra.mxu1 %v10370_v21  ;;  %v8460_v2 = vld [vmem:[#allocation13 + $0x718] sm:$0xf]  ;;  %v7949_v33 = vor.u32 %v9501_v25, %v7948_v61  ;;  %v8209_v25 = vor.u32 %v9557_v32, %v8206_v59 }
 0x329   :  { %4604 = vmatmul.bf16.vlgmr.msra.gmra.mxu2 %v10368_v20  ;;  %4617 = vmatmul.bf16.vlgmr.msra.gmra.mxu3 %v10370_v21  ;;  %v9629_v39 = vld [vmem:[#allocation13 + $0x754] sm:$0xf0] }
 0x32a   :  { %4626 = vmatpush.bf16.msrb.mxu0 %v7749_v58  ;;  %4639 = vmatpush.bf16.msrb.mxu1 %v8261_v36  ;;  %v8461_v12 = vor.u32 %v9629_v39, %v8460_v2  ;;  %v7884_v58 = vld [vmem:[#allocation13 + $0x298] sm:$0xf]  ;;  %v9413_v2 = vld [vmem:[#allocation13 + $0x9c] sm:$0xf] }
 0x32b   :  { %4652 = vmatpush.bf16.msrb.mxu2 %v7753_v11  ;;  %4665 = vmatpush.bf16.msrb.mxu3 %v8265_v13  ;;  %v9485_v36 = vld [vmem:[#allocation13 + $0x2d4] sm:$0xf0]  ;;  %v7630_v39 = vld [vmem:[#allocation13 + $0xd8] sm:$0xf0] }
 0x32c   :  { %v8396_v11 = vld [vmem:[#allocation13 + $0x698] sm:$0xf]  ;;  %v7885_v19 = vor.u32 %v9485_v36, %v7884_v58 }
 0x32d   :  { %v9613_v13 = vld [vmem:[#allocation13 + $0x6d4] sm:$0xf0] }
 0x32e   :  { %4627 = vmatpush.bf16.msrb.mxu0 %v7685_v41  ;;  %4640 = vmatpush.bf16.msrb.mxu1 %v8197_v22  ;;  %v8397_v0 = vor.u32 %v9613_v13, %v8396_v11  ;;  %v7820_v41 = vld [vmem:[#allocation13 + $0x218] sm:$0xf]  ;;  %v9397_v11 = vld [vmem:[#allocation13 + $0x1c] sm:$0xf] }
 0x32f   :  { %4653 = vmatpush.bf16.msrb.mxu2 %v7689_v31  ;;  %4666 = vmatpush.bf16.msrb.mxu3 %v8201_v53  ;;  %v9469_v22 = vld [vmem:[#allocation13 + $0x254] sm:$0xf0]  ;;  %v7566_v13 = vld [vmem:[#allocation13 + $0x58] sm:$0xf0] }
 0x330   :  { %v8332_v31 = vld [vmem:[#allocation13 + $0x618] sm:$0xf]  ;;  %v7821_v37 = vor.u32 %v9469_v22, %v7820_v41  ;;  %v9510_v41 = vld [vmem:[#allocation13 + $0x3a4] sm:$0xf] }
 0x331   :  { %v9597_v53 = vld [vmem:[#allocation13 + $0x654] sm:$0xf0] }
 0x332   :  { %4628 = vmatpush.bf16.msrb.mxu0 %v7621_v43  ;;  %4641 = vmatpush.bf16.msrb.mxu1 %v8133_v6  ;;  %v8333_v38 = vor.u32 %v9597_v53, %v8332_v31  ;;  %v9453_v43 = vld [vmem:[#allocation13 + $0x1d4] sm:$0xf0]  ;;  %v7825_v6 = vor.u32 %v9461_v34, %v7822_v35  ;;  %v9638_v31 = vld [vmem:[#allocation13 + $0x7a4] sm:$0xf]  ;;  %v7569_v34 = vor.u32 %v9397_v11, %v7566_v13 }
 0x333   :  { %4654 = vmatpush.bf16.msrb.mxu2 %v7625_v29  ;;  %4667 = vmatpush.bf16.msrb.mxu3 %v8137_v5  ;;  %v9445_v29 = vld [vmem:[#allocation13 + $0x19c] sm:$0xf]  ;;  %v7757_v50 = vor.u32 %v9453_v43, %v7756_v40  ;;  %v8204_v44 = vld [vmem:[#allocation13 + $0x518] sm:$0xf]  ;;  %v8534_v53 = vld [vmem:[#allocation13 + $0x7e0] sm:$0xf0]  ;;  %v8081_v35 = vor.u32 %v9525_v14, %v8078_v15 }
 0x334   :  { %v7758_v5 = vld [vmem:[#allocation13 + $0x1d8] sm:$0xf0]  ;;  %v8076_v58 = vld [vmem:[#allocation13 + $0x418] sm:$0xf]  ;;  %v8537_v43 = vor.u32 %v9638_v31, %v8534_v53  ;;  %v9574_v11 = vld [vmem:[#allocation13 + $0x5a4] sm:$0xf] }
 0x335   :  { %v7761_v26 = vor.u32 %v9445_v29, %v7758_v5  ;;  %v9533_v36 = vld [vmem:[#allocation13 + $0x454] sm:$0xf0]  ;;  %v9622_v29 = vld [vmem:[#allocation13 + $0x724] sm:$0xf] }
 0x336   :  { %4629 = vmatpush.bf16.msrb.mxu0 %v7557_v23  ;;  %4642 = vmatpush.bf16.msrb.mxu1 %v8069_v18  ;;  %v9565_v23 = vld [vmem:[#allocation13 + $0x554] sm:$0xf0]  ;;  %v9429_v18 = vld [vmem:[#allocation13 + $0x11c] sm:$0xf]  ;;  %v8470_v5 = vld [vmem:[#allocation13 + $0x760] sm:$0xf0] }
 0x337   :  { %4655 = vmatpush.bf16.msrb.mxu2 %v7561_v55  ;;  %4668 = vmatpush.bf16.msrb.mxu3 %v8073_v57  ;;  %v7693_v55 = vor.u32 %v9437_v52, %v7692_v45  ;;  %v8205_v57 = vor.u32 %v9565_v23, %v8204_v44  ;;  %v7697_v61 = vor.u32 %v9429_v18, %v7694_v56  ;;  %v9478_v44 = vld [vmem:[#allocation13 + $0x2a4] sm:$0xf] }
 0x338   :  { %v7961_v45 = vor.u32 %v9494_v46, %v7958_v47  ;;  %v8473_v52 = vor.u32 %v9622_v29, %v8470_v5  ;;  %v7894_v23 = vld [vmem:[#allocation13 + $0x2e0] sm:$0xf0]  ;;  %v7572_v29 = vld [vmem:[#allocation13 + $0x20] sm:$0xf] }
 0x339   :  { %4630 = vmatmul.bf16.vlgmr.msrb.gmra.mxu0 %v10368_v20  ;;  %4643 = vmatmul.bf16.vlgmr.msrb.gmra.mxu1 %v10370_v21  ;;  %v9606_v18 = vld [vmem:[#allocation13 + $0x6a4] sm:$0xf] }
 0x33a   :  { %4674 = vmatpush.bf16.msra.mxu0 %v8013_v60  ;;  %4687 = vmatpush.bf16.msra.mxu1 %v8525_v62  ;;  %v7628_v60 = vld [vmem:[#allocation13 + $0x98] sm:$0xf]  ;;  %v8406_v56 = vld [vmem:[#allocation13 + $0x6e0] sm:$0xf0] }
 0x33b   :  { %4700 = vmatpush.bf16.msra.mxu2 %v8017_v63  ;;  %4713 = vmatpush.bf16.msra.mxu3 %v8529_v1  ;;  %v9421_v62 = vld [vmem:[#allocation13 + $0xd4] sm:$0xf0]  ;;  %v8278_v13 = vld [vmem:[#allocation13 + $0x5e0] sm:$0xf0] }
 0x33c   :  { %4656 = vmatmul.bf16.vlgmr.msrb.gmra.mxu2 %v10368_v20  ;;  %4669 = vmatmul.bf16.vlgmr.msrb.gmra.mxu3 %v10370_v21  ;;  %v8140_v63 = vld [vmem:[#allocation13 + $0x498] sm:$0xf]  ;;  %v7629_v24 = vor.u32 %v9421_v62, %v7628_v60  ;;  %v7897_v60 = vor.u32 %v9478_v44, %v7894_v23  ;;  %v8409_v62 = vor.u32 %v9606_v18, %v8406_v56  ;;  %v9558_v31 = vld [vmem:[#allocation13 + $0x524] sm:$0xf]  ;;  %v8028_v18 = vld [vmem:[#allocation13 + $0x3a8] sm:$0xf] }
 0x33d   :  { %v9549_v1 = vld [vmem:[#allocation13 + $0x4d4] sm:$0xf0]  ;;  %v8214_v53 = vld [vmem:[#allocation13 + $0x560] sm:$0xf0]  ;;  %v9519_v56 = vld [vmem:[#allocation13 + $0x3e4] sm:$0xf0] }
 0x33e   :  { %4675 = vmatpush.bf16.msra.mxu0 %v7949_v33  ;;  %4688 = vmatpush.bf16.msra.mxu1 %v8461_v12  ;;  %v8141_v33 = vor.u32 %v9549_v1, %v8140_v63  ;;  %v9405_v12 = vld [vmem:[#allocation13 + $0x54] sm:$0xf0]  ;;  %v9462_v63 = vld [vmem:[#allocation13 + $0x224] sm:$0xf] }
 0x33f   :  { %4701 = vmatpush.bf16.msra.mxu2 %v7953_v9  ;;  %4714 = vmatpush.bf16.msra.mxu3 %v8465_v10  ;;  %v7633_v9 = vor.u32 %v9413_v2, %v7630_v39  ;;  %v8145_v10 = vor.u32 %v9541_v3, %v8142_v4  ;;  %v7565_v22 = vor.u32 %v9405_v12, %v7564_v7  ;;  %v7830_v1 = vld [vmem:[#allocation13 + $0x260] sm:$0xf0]  ;;  %v7764_v7 = vld [vmem:[#allocation13 + $0x1a0] sm:$0xf] }
 0x340   :  { %v9590_v2 = vld [vmem:[#allocation13 + $0x624] sm:$0xf] }
 0x341   :  { %v8342_v39 = vld [vmem:[#allocation13 + $0x660] sm:$0xf0] }
 0x342   :  { %4676 = vmatpush.bf16.msra.mxu0 %v7885_v19  ;;  %4689 = vmatpush.bf16.msra.mxu1 %v8397_v0  ;;  %v8532_v19 = vld [vmem:[#allocation13 + $0x7a0] sm:$0xf]  ;;  %v8345_v12 = vor.u32 %v9590_v2, %v8342_v39  ;;  %v9542_v46 = vld [vmem:[#allocation13 + $0x4a4] sm:$0xf]  ;;  %v8029_v2 = vor.u32 %v9519_v56, %v8028_v18  ;;  %v7708_v18 = vld [vmem:[#allocation13 + $0x128] sm:$0xf] }
 0x343   :  { %4702 = vmatpush.bf16.msra.mxu2 %v7889_v17  ;;  %4715 = vmatpush.bf16.msra.mxu3 %v8401_v30  ;;  %v9646_v0 = vld [vmem:[#allocation13 + $0x7dc] sm:$0xf0]  ;;  %v8077_v17 = vor.u32 %v9533_v36, %v8076_v58  ;;  %v8022_v30 = vld [vmem:[#allocation13 + $0x3e0] sm:$0xf0]  ;;  %v9439_v56 = vld [vmem:[#allocation13 + $0x164] sm:$0xf0] }
 0x344   :  { %v8533_v28 = vor.u32 %v9646_v0, %v8532_v19  ;;  %v8025_v40 = vor.u32 %v9510_v41, %v8022_v30  ;;  %v8276_v58 = vld [vmem:[#allocation13 + $0x5a0] sm:$0xf]  ;;  %v8281_v0 = vor.u32 %v9574_v11, %v8278_v13  ;;  %v7702_v30 = vld [vmem:[#allocation13 + $0x160] sm:$0xf0] }
 0x345   :  { %v9582_v36 = vld [vmem:[#allocation13 + $0x5dc] sm:$0xf0]  ;;  %v8150_v47 = vld [vmem:[#allocation13 + $0x4e0] sm:$0xf0] }
 0x346   :  { %4677 = vmatpush.bf16.msra.mxu0 %v7821_v37  ;;  %4690 = vmatpush.bf16.msra.mxu1 %v8333_v38  ;;  %v7956_v37 = vld [vmem:[#allocation13 + $0x320] sm:$0xf]  ;;  %v8277_v15 = vor.u32 %v9582_v36, %v8276_v58  ;;  %v9526_v44 = vld [vmem:[#allocation13 + $0x424] sm:$0xf]  ;;  %v9495_v58 = vld [vmem:[#allocation13 + $0x32c] sm:$0xf] }
 0x347   :  { %4703 = vmatpush.bf16.msra.mxu2 %v7825_v6  ;;  %4716 = vmatpush.bf16.msra.mxu3 %v8337_v42  ;;  %v9502_v38 = vld [vmem:[#allocation13 + $0x35c] sm:$0xf0]  ;;  %v8086_v23 = vld [vmem:[#allocation13 + $0x460] sm:$0xf0]  ;;  %v7966_v36 = vld [vmem:[#allocation13 + $0x368] sm:$0xf0] }
 0x348   :  { %v8468_v6 = vld [vmem:[#allocation13 + $0x720] sm:$0xf]  ;;  %v7957_v48 = vor.u32 %v9502_v38, %v7956_v37  ;;  %v8217_v38 = vor.u32 %v9558_v31, %v8214_v53 }
 0x349   :  { %v9630_v42 = vld [vmem:[#allocation13 + $0x75c] sm:$0xf0] }
 0x34a   :  { %4678 = vmatpush.bf16.msra.mxu0 %v7757_v50  ;;  %4691 = vmatpush.bf16.msra.mxu1 %v8269_v51  ;;  %v8469_v49 = vor.u32 %v9630_v42, %v8468_v6  ;;  %v7892_v50 = vld [vmem:[#allocation13 + $0x2a0] sm:$0xf]  ;;  %v9414_v6 = vld [vmem:[#allocation13 + $0xa4] sm:$0xf] }
 0x34b   :  { %4704 = vmatpush.bf16.msra.mxu2 %v7761_v26  ;;  %4717 = vmatpush.bf16.msra.mxu3 %v8273_v8  ;;  %v9486_v51 = vld [vmem:[#allocation13 + $0x2dc] sm:$0xf0]  ;;  %v7638_v42 = vld [vmem:[#allocation13 + $0xe0] sm:$0xf0] }
 0x34c   :  { %v8404_v26 = vld [vmem:[#allocation13 + $0x6a0] sm:$0xf]  ;;  %v7893_v32 = vor.u32 %v9486_v51, %v7892_v50 }
 0x34d   :  { %v9614_v8 = vld [vmem:[#allocation13 + $0x6dc] sm:$0xf0] }
 0x34e   :  { %4679 = vmatpush.bf16.msra.mxu0 %v7693_v55  ;;  %4692 = vmatpush.bf16.msra.mxu1 %v8205_v57  ;;  %v8405_v59 = vor.u32 %v9614_v8, %v8404_v26  ;;  %v7828_v55 = vld [vmem:[#allocation13 + $0x220] sm:$0xf]  ;;  %v9398_v26 = vld [vmem:[#allocation13 + $0x24] sm:$0xf] }
 0x34f   :  { %4705 = vmatpush.bf16.msra.mxu2 %v7697_v61  ;;  %4718 = vmatpush.bf16.msra.mxu3 %v8209_v25  ;;  %v9470_v57 = vld [vmem:[#allocation13 + $0x25c] sm:$0xf0]  ;;  %v7574_v8 = vld [vmem:[#allocation13 + $0x60] sm:$0xf0] }
 0x350   :  { %v8340_v61 = vld [vmem:[#allocation13 + $0x620] sm:$0xf]  ;;  %v7829_v3 = vor.u32 %v9470_v57, %v7828_v55  ;;  %v9511_v55 = vld [vmem:[#allocation13 + $0x3ac] sm:$0xf] }
 0x351   :  { %v9598_v25 = vld [vmem:[#allocation13 + $0x65c] sm:$0xf0] }
 0x352   :  { %4680 = vmatpush.bf16.msra.mxu0 %v7629_v24  ;;  %4693 = vmatpush.bf16.msra.mxu1 %v8141_v33  ;;  %v8341_v4 = vor.u32 %v9598_v25, %v8340_v61  ;;  %v9454_v24 = vld [vmem:[#allocation13 + $0x1dc] sm:$0xf0]  ;;  %v7833_v33 = vor.u32 %v9462_v63, %v7830_v1  ;;  %v9639_v61 = vld [vmem:[#allocation13 + $0x7ac] sm:$0xf]  ;;  %v7577_v63 = vor.u32 %v9398_v26, %v7574_v8 }
 0x353   :  { %4706 = vmatpush.bf16.msra.mxu2 %v7633_v9  ;;  %4719 = vmatpush.bf16.msra.mxu3 %v8145_v10  ;;  %v9446_v9 = vld [vmem:[#allocation13 + $0x1a4] sm:$0xf]  ;;  %v7765_v14 = vor.u32 %v9454_v24, %v7764_v7  ;;  %v8212_v41 = vld [vmem:[#allocation13 + $0x520] sm:$0xf]  ;;  %v8542_v25 = vld [vmem:[#allocation13 + $0x7e8] sm:$0xf0]  ;;  %v8089_v1 = vor.u32 %v9526_v44, %v8086_v23 }
 0x354   :  { %v7766_v10 = vld [vmem:[#allocation13 + $0x1e0] sm:$0xf0]  ;;  %v8084_v50 = vld [vmem:[#allocation13 + $0x420] sm:$0xf]  ;;  %v8545_v24 = vor.u32 %v9639_v61, %v8542_v25  ;;  %v9575_v26 = vld [vmem:[#allocation13 + $0x5ac] sm:$0xf] }
 0x355   :  { %v7769_v19 = vor.u32 %v9446_v9, %v7766_v10  ;;  %v9534_v51 = vld [vmem:[#allocation13 + $0x45c] sm:$0xf0]  ;;  %v9623_v9 = vld [vmem:[#allocation13 + $0x72c] sm:$0xf] }
 0x356   :  { %4681 = vmatpush.bf16.msra.mxu0 %v7565_v22  ;;  %4694 = vmatpush.bf16.msra.mxu1 %v8077_v17  ;;  %v9566_v22 = vld [vmem:[#allocation13 + $0x55c] sm:$0xf0]  ;;  %v9430_v17 = vld [vmem:[#allocation13 + $0x124] sm:$0xf]  ;;  %v8478_v10 = vld [vmem:[#allocation13 + $0x768] sm:$0xf0] }
 0x357   :  { %4707 = vmatpush.bf16.msra.mxu2 %v7569_v34  ;;  %4720 = vmatpush.bf16.msra.mxu3 %v8081_v35  ;;  %v7701_v34 = vor.u32 %v9438_v16, %v7700_v27  ;;  %v8213_v35 = vor.u32 %v9566_v22, %v8212_v41  ;;  %v7705_v37 = vor.u32 %v9430_v17, %v7702_v30  ;;  %v9479_v41 = vld [vmem:[#allocation13 + $0x2ac] sm:$0xf] }
 0x358   :  { %v7969_v27 = vor.u32 %v9495_v58, %v7966_v36  ;;  %v8481_v16 = vor.u32 %v9623_v9, %v8478_v10  ;;  %v7902_v22 = vld [vmem:[#allocation13 + $0x2e8] sm:$0xf0]  ;;  %v7580_v9 = vld [vmem:[#allocation13 + $0x28] sm:$0xf] }
 0x359   :  { %4682 = vmatmul.bf16.vlgmr.msra.gmra.mxu0 %v10368_v20  ;;  %4695 = vmatmul.bf16.vlgmr.msra.gmra.mxu1 %v10370_v21  ;;  %v9607_v17 = vld [vmem:[#allocation13 + $0x6ac] sm:$0xf] }
 0x35a   :  { %4726 = vmatpush.bf16.msrb.mxu0 %v8021_v54  ;;  %4739 = vmatpush.bf16.msrb.mxu1 %v8533_v28  ;;  %v7636_v54 = vld [vmem:[#allocation13 + $0xa0] sm:$0xf]  ;;  %v8414_v30 = vld [vmem:[#allocation13 + $0x6e8] sm:$0xf0] }
 0x35b   :  { %4752 = vmatpush.bf16.msrb.mxu2 %v8025_v40  ;;  %4765 = vmatpush.bf16.msrb.mxu3 %v8537_v43  ;;  %v9422_v28 = vld [vmem:[#allocation13 + $0xdc] sm:$0xf0]  ;;  %v8286_v8 = vld [vmem:[#allocation13 + $0x5e8] sm:$0xf0] }
 0x35c   :  { %4708 = vmatmul.bf16.vlgmr.msra.gmra.mxu2 %v10368_v20  ;;  %4721 = vmatmul.bf16.vlgmr.msra.gmra.mxu3 %v10370_v21  ;;  %v8148_v40 = vld [vmem:[#allocation13 + $0x4a0] sm:$0xf]  ;;  %v7637_v5 = vor.u32 %v9422_v28, %v7636_v54  ;;  %v7905_v54 = vor.u32 %v9479_v41, %v7902_v22  ;;  %v8417_v28 = vor.u32 %v9607_v17, %v8414_v30  ;;  %v9559_v61 = vld [vmem:[#allocation13 + $0x52c] sm:$0xf]  ;;  %v8036_v17 = vld [vmem:[#allocation13 + $0x3b0] sm:$0xf] }
 0x35d   :  { %v9550_v43 = vld [vmem:[#allocation13 + $0x4dc] sm:$0xf0]  ;;  %v8222_v25 = vld [vmem:[#allocation13 + $0x568] sm:$0xf0]  ;;  %v9520_v30 = vld [vmem:[#allocation13 + $0x3ec] sm:$0xf0] }
 0x35e   :  { %4727 = vmatpush.bf16.msrb.mxu0 %v7957_v48  ;;  %4740 = vmatpush.bf16.msrb.mxu1 %v8469_v49  ;;  %v8149_v48 = vor.u32 %v9550_v43, %v8148_v40  ;;  %v9406_v49 = vld [vmem:[#allocation13 + $0x5c] sm:$0xf0]  ;;  %v9463_v40 = vld [vmem:[#allocation13 + $0x22c] sm:$0xf] }
 0x35f   :  { %4753 = vmatpush.bf16.msrb.mxu2 %v7961_v45  ;;  %4766 = vmatpush.bf16.msrb.mxu3 %v8473_v52  ;;  %v7641_v45 = vor.u32 %v9414_v6, %v7638_v42  ;;  %v8153_v52 = vor.u32 %v9542_v46, %v8150_v47  ;;  %v7573_v57 = vor.u32 %v9406_v49, %v7572_v29  ;;  %v7838_v43 = vld [vmem:[#allocation13 + $0x268] sm:$0xf0]  ;;  %v7772_v29 = vld [vmem:[#allocation13 + $0x1a8] sm:$0xf] }
 0x360   :  { %v9591_v6 = vld [vmem:[#allocation13 + $0x62c] sm:$0xf] }
 0x361   :  { %v8350_v42 = vld [vmem:[#allocation13 + $0x668] sm:$0xf0] }
 0x362   :  { %4728 = vmatpush.bf16.msrb.mxu0 %v7893_v32  ;;  %4741 = vmatpush.bf16.msrb.mxu1 %v8405_v59  ;;  %v8540_v32 = vld [vmem:[#allocation13 + $0x7a8] sm:$0xf]  ;;  %v8353_v49 = vor.u32 %v9591_v6, %v8350_v42  ;;  %v9543_v58 = vld [vmem:[#allocation13 + $0x4ac] sm:$0xf]  ;;  %v8037_v6 = vor.u32 %v9520_v30, %v8036_v17  ;;  %v9584_v17 = vld [vmem:[#allocation13 + $0x5ec] sm:$0xf0] }
 0x363   :  { %4754 = vmatpush.bf16.msrb.mxu2 %v7897_v60  ;;  %4767 = vmatpush.bf16.msrb.mxu3 %v8409_v62  ;;  %v9647_v59 = vld [vmem:[#allocation13 + $0x7e4] sm:$0xf0]  ;;  %v8085_v60 = vor.u32 %v9534_v51, %v8084_v50  ;;  %v8030_v62 = vld [vmem:[#allocation13 + $0x3e8] sm:$0xf0]  ;;  %v9448_v30 = vld [vmem:[#allocation13 + $0x1b4] sm:$0xf] }
 0x364   :  { %v8541_v39 = vor.u32 %v9647_v59, %v8540_v32  ;;  %v8033_v7 = vor.u32 %v9511_v55, %v8030_v62  ;;  %v8284_v50 = vld [vmem:[#allocation13 + $0x5a8] sm:$0xf]  ;;  %v8289_v59 = vor.u32 %v9575_v26, %v8286_v8  ;;  %v7710_v62 = vld [vmem:[#allocation13 + $0x168] sm:$0xf0]  ;;  %v8486_v26 = vld [vmem:[#allocation13 + $0x770] sm:$0xf0] }
 0x365   :  { %v9583_v51 = vld [vmem:[#allocation13 + $0x5e4] sm:$0xf0]  ;;  %v8158_v36 = vld [vmem:[#allocation13 + $0x4e8] sm:$0xf0] }
 0x366   :  { %4729 = vmatpush.bf16.msrb.mxu0 %v7829_v3  ;;  %4742 = vmatpush.bf16.msrb.mxu1 %v8341_v4  ;;  %v7964_v3 = vld [vmem:[#allocation13 + $0x328] sm:$0xf]  ;;  %v8285_v23 = vor.u32 %v9583_v51, %v8284_v50  ;;  %v9527_v41 = vld [vmem:[#allocation13 + $0x42c] sm:$0xf]  ;;  %v9496_v50 = vld [vmem:[#allocation13 + $0x334] sm:$0xf] }
 0x367   :  { %4755 = vmatpush.bf16.msrb.mxu2 %v7833_v33  ;;  %4768 = vmatpush.bf16.msrb.mxu3 %v8345_v12  ;;  %v9503_v4 = vld [vmem:[#allocation13 + $0x364] sm:$0xf0]  ;;  %v8094_v22 = vld [vmem:[#allocation13 + $0x468] sm:$0xf0]  ;;  %v10392_v51 = vld [vmem:[#allocation14] sm:$0xff] }
 0x368   :  { %v8476_v33 = vld [vmem:[#allocation13 + $0x728] sm:$0xf]  ;;  %v7965_v11 = vor.u32 %v9503_v4, %v7964_v3  ;;  %v8225_v4 = vor.u32 %v9559_v61, %v8222_v25  ;;  %v9608_v61 = vld [vmem:[#allocation13 + $0x6b4] sm:$0xf] }
 0x369   :  { %v9631_v12 = vld [vmem:[#allocation13 + $0x764] sm:$0xf0]  ;;  %v8422_v25 = vld [vmem:[#allocation13 + $0x6f0] sm:$0xf0] }
 0x36a   :  { %4730 = vmatpush.bf16.msrb.mxu0 %v7765_v14  ;;  %4743 = vmatpush.bf16.msrb.mxu1 %v8277_v15  ;;  %v8477_v13 = vor.u32 %v9631_v12, %v8476_v33  ;;  %v7900_v14 = vld [vmem:[#allocation13 + $0x2a8] sm:$0xf]  ;;  %v9415_v33 = vld [vmem:[#allocation13 + $0xac] sm:$0xf] }
 0x36b   :  { %4756 = vmatpush.bf16.msrb.mxu2 %v7769_v19  ;;  %4769 = vmatpush.bf16.msrb.mxu3 %v8281_v0  ;;  %v9487_v15 = vld [vmem:[#allocation13 + $0x2e4] sm:$0xf0]  ;;  %v7646_v12 = vld [vmem:[#allocation13 + $0xe8] sm:$0xf0] }
 0x36c   :  { %v8412_v19 = vld [vmem:[#allocation13 + $0x6a8] sm:$0xf]  ;;  %v7901_v31 = vor.u32 %v9487_v15, %v7900_v14 }
 0x36d   :  { %v9615_v0 = vld [vmem:[#allocation13 + $0x6e4] sm:$0xf0] }
 0x36e   :  { %4731 = vmatpush.bf16.msrb.mxu0 %v7701_v34  ;;  %4744 = vmatpush.bf16.msrb.mxu1 %v8213_v35  ;;  %v8413_v53 = vor.u32 %v9615_v0, %v8412_v19  ;;  %v7836_v34 = vld [vmem:[#allocation13 + $0x228] sm:$0xf]  ;;  %v9399_v19 = vld [vmem:[#allocation13 + $0x2c] sm:$0xf] }
 0x36f   :  { %4757 = vmatpush.bf16.msrb.mxu2 %v7705_v37  ;;  %4770 = vmatpush.bf16.msrb.mxu3 %v8217_v38  ;;  %v9471_v35 = vld [vmem:[#allocation13 + $0x264] sm:$0xf0]  ;;  %v7582_v0 = vld [vmem:[#allocation13 + $0x68] sm:$0xf0] }
 0x370   :  { %v8348_v37 = vld [vmem:[#allocation13 + $0x628] sm:$0xf]  ;;  %v7837_v46 = vor.u32 %v9471_v35, %v7836_v34  ;;  %v9512_v34 = vld [vmem:[#allocation13 + $0x3b4] sm:$0xf] }
 0x371   :  { %v9599_v38 = vld [vmem:[#allocation13 + $0x664] sm:$0xf0] }
 0x372   :  { %4732 = vmatpush.bf16.msrb.mxu0 %v7637_v5  ;;  %4745 = vmatpush.bf16.msrb.mxu1 %v8149_v48  ;;  %v8349_v47 = vor.u32 %v9599_v38, %v8348_v37  ;;  %v9455_v5 = vld [vmem:[#allocation13 + $0x1e4] sm:$0xf0]  ;;  %v7841_v48 = vor.u32 %v9463_v40, %v7838_v43  ;;  %v9640_v37 = vld [vmem:[#allocation13 + $0x7b4] sm:$0xf]  ;;  %v7585_v40 = vor.u32 %v9399_v19, %v7582_v0  ;;  %v9456_v19 = vld [vmem:[#allocation13 + $0x1ec] sm:$0xf0] }
 0x373   :  { %4758 = vmatpush.bf16.msrb.mxu2 %v7641_v45  ;;  %4771 = vmatpush.bf16.msrb.mxu3 %v8153_v52  ;;  %v9447_v45 = vld [vmem:[#allocation13 + $0x1ac] sm:$0xf]  ;;  %v7773_v44 = vor.u32 %v9455_v5, %v7772_v29  ;;  %v8220_v55 = vld [vmem:[#allocation13 + $0x528] sm:$0xf]  ;;  %v8550_v38 = vld [vmem:[#allocation13 + $0x7f0] sm:$0xf0]  ;;  %v8097_v43 = vor.u32 %v9527_v41, %v8094_v22 }
 0x374   :  { %v7774_v52 = vld [vmem:[#allocation13 + $0x1e8] sm:$0xf0]  ;;  %v8092_v14 = vld [vmem:[#allocation13 + $0x428] sm:$0xf]  ;;  %v8484_v29 = vld [vmem:[#allocation13 + $0x730] sm:$0xf] }
 0x375   :  { %v7777_v32 = vor.u32 %v9447_v45, %v7774_v52  ;;  %v9535_v15 = vld [vmem:[#allocation13 + $0x464] sm:$0xf0]  ;;  %v7974_v45 = vld [vmem:[#allocation13 + $0x370] sm:$0xf0]  ;;  %v8292_v22 = vld [vmem:[#allocation13 + $0x5b0] sm:$0xf] }
 0x376   :  { %4733 = vmatpush.bf16.msrb.mxu0 %v7573_v57  ;;  %4746 = vmatpush.bf16.msrb.mxu1 %v8085_v60  ;;  %v9567_v57 = vld [vmem:[#allocation13 + $0x564] sm:$0xf0]  ;;  %v9431_v60 = vld [vmem:[#allocation13 + $0x12c] sm:$0xf]  ;;  %v9624_v52 = vld [vmem:[#allocation13 + $0x734] sm:$0xf] }
 0x377   :  { %4759 = vmatpush.bf16.msrb.mxu2 %v7577_v63  ;;  %4772 = vmatpush.bf16.msrb.mxu3 %v8089_v1  ;;  %v7709_v63 = vor.u32 %v9439_v56, %v7708_v18  ;;  %v8221_v1 = vor.u32 %v9567_v57, %v8220_v55  ;;  %v7713_v3 = vor.u32 %v9431_v60, %v7710_v62  ;;  %v9488_v18 = vld [vmem:[#allocation13 + $0x2ec] sm:$0xf0]  ;;  %v3206_v56 = vperm.slane %v10392_v51, 0  ;;  %v9480_v60 = vld [vmem:[#allocation13 + $0x2b4] sm:$0xf] }
 0x378   :  { %v8420_v55 = vld [vmem:[#allocation13 + $0x6b0] sm:$0xf]  ;;  %v7910_v62 = vld [vmem:[#allocation13 + $0x2f0] sm:$0xf0] }
 0x379   :  { %4734 = vmatmul.bf16.vlgmr.msrb.gmra.mxu0 %v10368_v20  ;;  %4747 = vmatmul.bf16.vlgmr.msrb.gmra.mxu1 %v10370_v21  ;;  %v9616_v57 = vld [vmem:[#allocation13 + $0x6ec] sm:$0xf0] }
 0x37a   :  { %4778 = vmatpush.bf16.msra.mxu0 %v8029_v2  ;;  %4791 = vmatpush.bf16.msra.mxu1 %v8541_v39  ;;  %v7644_v2 = vld [vmem:[#allocation13 + $0xa8] sm:$0xf] }
 0x37b   :  { %4804 = vmatpush.bf16.msra.mxu2 %v8033_v7  ;;  %4817 = vmatpush.bf16.msra.mxu3 %v8545_v24  ;;  %v9423_v39 = vld [vmem:[#allocation13 + $0xe4] sm:$0xf0] }
 0x37c   :  { %4760 = vmatmul.bf16.vlgmr.msrb.gmra.mxu2 %v10368_v20  ;;  %4773 = vmatmul.bf16.vlgmr.msrb.gmra.mxu3 %v10370_v21  ;;  %v8156_v7 = vld [vmem:[#allocation13 + $0x4a8] sm:$0xf]  ;;  %v7645_v10 = vor.u32 %v9423_v39, %v7644_v2  ;;  %v8421_v39 = vor.u32 %v9616_v57, %v8420_v55  ;;  %v9552_v55 = vld [vmem:[#allocation13 + $0x4ec] sm:$0xf0]  ;;  %v9416_v57 = vld [vmem:[#allocation13 + $0xb4] sm:$0xf] }
 0x37d   :  { %v9551_v24 = vld [vmem:[#allocation13 + $0x4e4] sm:$0xf0] }
 0x37e   :  { %4779 = vmatpush.bf16.msra.mxu0 %v7965_v11  ;;  %4792 = vmatpush.bf16.msra.mxu1 %v8477_v13  ;;  %v8157_v11 = vor.u32 %v9551_v24, %v8156_v7  ;;  %v9407_v13 = vld [vmem:[#allocation13 + $0x64] sm:$0xf0]  ;;  %v9472_v7 = vld [vmem:[#allocation13 + $0x26c] sm:$0xf0]  ;;  %v7913_v24 = vor.u32 %v9480_v60, %v7910_v62 }
 0x37f   :  { %4805 = vmatpush.bf16.msra.mxu2 %v7969_v27  ;;  %4818 = vmatpush.bf16.msra.mxu3 %v8481_v16  ;;  %v7649_v27 = vor.u32 %v9415_v33, %v7646_v12  ;;  %v8161_v16 = vor.u32 %v9543_v58, %v8158_v36  ;;  %v7581_v35 = vor.u32 %v9407_v13, %v7580_v9  ;;  %v8356_v12 = vld [vmem:[#allocation13 + $0x630] sm:$0xf]  ;;  %v9464_v36 = vld [vmem:[#allocation13 + $0x234] sm:$0xf] }
 0x380   :  { %v8425_v33 = vor.u32 %v9608_v61, %v8422_v25  ;;  %v9600_v58 = vld [vmem:[#allocation13 + $0x66c] sm:$0xf0]  ;;  %v8358_v13 = vld [vmem:[#allocation13 + $0x670] sm:$0xf0] }
 0x381   :  { %v7654_v61 = vld [vmem:[#allocation13 + $0xf0] sm:$0xf0] }
 0x382   :  { %4780 = vmatpush.bf16.msra.mxu0 %v7901_v31  ;;  %4793 = vmatpush.bf16.msra.mxu1 %v8413_v53  ;;  %v8548_v31 = vld [vmem:[#allocation13 + $0x7b0] sm:$0xf]  ;;  %v9544_v25 = vld [vmem:[#allocation13 + $0x4b4] sm:$0xf] }
 0x383   :  { %4806 = vmatpush.bf16.msra.mxu2 %v7905_v54  ;;  %4819 = vmatpush.bf16.msra.mxu3 %v8417_v28  ;;  %v9648_v53 = vld [vmem:[#allocation13 + $0x7ec] sm:$0xf0]  ;;  %v8093_v54 = vor.u32 %v9535_v15, %v8092_v14  ;;  %v8038_v28 = vld [vmem:[#allocation13 + $0x3f0] sm:$0xf0]  ;;  %v3207_v14 = vperm.slane %v10392_v51, 1 }
 0x384   :  { %v8549_v42 = vor.u32 %v9648_v53, %v8548_v31  ;;  %v8041_v5 = vor.u32 %v9512_v34, %v8038_v28  ;;  %v7782_v34 = vld [vmem:[#allocation13 + $0x1f0] sm:$0xf0] }
 0x386   :  { %4781 = vmatpush.bf16.msra.mxu0 %v7837_v46  ;;  %4794 = vmatpush.bf16.msra.mxu1 %v8349_v47  ;;  %v7972_v46 = vld [vmem:[#allocation13 + $0x330] sm:$0xf] }
 0x387   :  { %4807 = vmatpush.bf16.msra.mxu2 %v7841_v48  ;;  %4820 = vmatpush.bf16.msra.mxu3 %v8353_v49  ;;  %v9504_v47 = vld [vmem:[#allocation13 + $0x36c] sm:$0xf0]  ;;  %v8553_v48 = vor.u32 %v9640_v37, %v8550_v38 }
 0x388   :  { %v9632_v49 = vld [vmem:[#allocation13 + $0x76c] sm:$0xf0]  ;;  %v7973_v8 = vor.u32 %v9504_v47, %v7972_v46  ;;  %v7785_v47 = vor.u32 %v9448_v30, %v7782_v34  ;;  %v8046_v30 = vld [vmem:[#allocation13 + $0x3f8] sm:$0xf0] }
 0x38a   :  { %4782 = vmatpush.bf16.msra.mxu0 %v7773_v44  ;;  %4795 = vmatpush.bf16.msra.mxu1 %v8285_v23  ;;  %v8485_v44 = vor.u32 %v9632_v49, %v8484_v29  ;;  %v7908_v23 = vld [vmem:[#allocation13 + $0x2b0] sm:$0xf]  ;;  %v9432_v49 = vld [vmem:[#allocation13 + $0x134] sm:$0xf] }
 0x38b   :  { %4808 = vmatpush.bf16.msra.mxu2 %v7777_v32  ;;  %4821 = vmatpush.bf16.msra.mxu3 %v8289_v59  ;;  %v7977_v32 = vor.u32 %v9496_v50, %v7974_v45  ;;  %v8489_v59 = vor.u32 %v9624_v52, %v8486_v26  ;;  %v7909_v2 = vor.u32 %v9488_v18, %v7908_v23  ;;  %v7718_v50 = vld [vmem:[#allocation13 + $0x170] sm:$0xf0]  ;;  %v9424_v23 = vld [vmem:[#allocation13 + $0xec] sm:$0xf0]  ;;  %v3208_v18 = vperm.slane %v10392_v51, 2 }
 0x38c   :  { %v9560_v45 = vld [vmem:[#allocation13 + $0x534] sm:$0xf] }
 0x38d   :  { %v8230_v52 = vld [vmem:[#allocation13 + $0x570] sm:$0xf0] }
 0x38e   :  { %4783 = vmatpush.bf16.msra.mxu0 %v7709_v63  ;;  %4796 = vmatpush.bf16.msra.mxu1 %v8221_v1 }
 0x38f   :  { %4809 = vmatpush.bf16.msra.mxu2 %v7713_v3  ;;  %4822 = vmatpush.bf16.msra.mxu3 %v8225_v4  ;;  %v7844_v4 = vld [vmem:[#allocation13 + $0x230] sm:$0xf] }
 0x390   :  { %v7845_v15 = vor.u32 %v9472_v7, %v7844_v4 }
 0x392   :  { %4784 = vmatpush.bf16.msra.mxu0 %v7645_v10  ;;  %4797 = vmatpush.bf16.msra.mxu1 %v8157_v11  ;;  %v7846_v10 = vld [vmem:[#allocation13 + $0x270] sm:$0xf0] }
 0x393   :  { %4810 = vmatpush.bf16.msra.mxu2 %v7649_v27  ;;  %4823 = vmatpush.bf16.msra.mxu3 %v8161_v16  ;;  %v9592_v11 = vld [vmem:[#allocation13 + $0x634] sm:$0xf]  ;;  %v8357_v27 = vor.u32 %v9600_v58, %v8356_v12  ;;  %v7780_v16 = vld [vmem:[#allocation13 + $0x1b0] sm:$0xf]  ;;  %v7849_v0 = vor.u32 %v9464_v36, %v7846_v10  ;;  %v7657_v58 = vor.u32 %v9416_v57, %v7654_v61  ;;  %v7918_v57 = vld [vmem:[#allocation13 + $0x2f8] sm:$0xf0] }
 0x394   :  { %v8361_v41 = vor.u32 %v9592_v11, %v8358_v13  ;;  %v9536_v12 = vld [vmem:[#allocation13 + $0x46c] sm:$0xf0]  ;;  %v9400_v10 = vld [vmem:[#allocation13 + $0x34] sm:$0xf] }
 0x395   :  { %v4527_v63 = vpop.f32.mrf.mxu0  ;;  %v4540_v1 = vpop.f32.mrf.mxu1  ;;  %v7590_v11 = vld [vmem:[#allocation13 + $0x70] sm:$0xf0] }
 0x396   :  { %4785 = vmatpush.bf16.msra.mxu0 %v7581_v35  ;;  %4798 = vmatpush.bf16.msra.mxu1 %v8093_v54  ;;  %v4528_v3 = vadd.f32 %v4527_v63, %v3206_v56  ;;  %v9576_v35 = vld [vmem:[#allocation13 + $0x5b4] sm:$0xf]  ;;  %v7721_v56 = vor.u32 %v9432_v49, %v7718_v50  ;;  %v7593_v34 = vor.u32 %v9400_v10, %v7590_v11  ;;  %v9497_v49 = vld [vmem:[#allocation13 + $0x33c] sm:$0xf] }
 0x397   :  { %4811 = vmatpush.bf16.msra.mxu2 %v7585_v40  ;;  %4824 = vmatpush.bf16.msra.mxu3 %v8097_v43  ;;  %v8294_v54 = vld [vmem:[#allocation13 + $0x5f0] sm:$0xf0]  ;;  %v7781_v40 = vor.u32 %v9456_v19, %v7780_v16  ;;  %v8293_v43 = vor.u32 %v9584_v17, %v8292_v22  ;;  %v9521_v16 = vld [vmem:[#allocation13 + $0x3f4] sm:$0xf0]  ;;  %v7982_v50 = vld [vmem:[#allocation13 + $0x378] sm:$0xf0] }
 0x398   :  { %v10399_v9 = vadd.f32 %v4540_v1, %v4528_v3  ;;  %v8297_v29 = vor.u32 %v9576_v35, %v8294_v54  ;;  %v8166_v63 = vld [vmem:[#allocation13 + $0x4f0] sm:$0xf0]  ;;  %v8556_v19 = vld [vmem:[#allocation13 + $0x7b8] sm:$0xf]  ;;  %v8366_v10 = vld [vmem:[#allocation13 + $0x678] sm:$0xf0] }
 0x399   :  { %4786 = vmatmul.bf16.vlgmr.msra.gmra.mxu0 %v10368_v20  ;;  %4799 = vmatmul.bf16.vlgmr.msra.gmra.mxu1 %v10370_v21  ;;  %v8169_v36 = vor.u32 %v9544_v25, %v8166_v63  ;;  %v9528_v13 = vld [vmem:[#allocation13 + $0x434] sm:$0xf] }
 0x39a   :  { %4830 = vmatpush.bf16.msrb.mxu0 %v8037_v6  ;;  %4843 = vmatpush.bf16.msrb.mxu1 %v8549_v42  ;;  %v7716_v6 = vld [vmem:[#allocation13 + $0x130] sm:$0xf] }
 0x39b   :  { %4856 = vmatpush.bf16.msrb.mxu2 %v8041_v5  ;;  %4869 = vmatpush.bf16.msrb.mxu3 %v8553_v48  ;;  %v9440_v42 = vld [vmem:[#allocation13 + $0x16c] sm:$0xf0] }
 0x39c   :  { %4812 = vmatmul.bf16.vlgmr.msra.gmra.mxu2 %v10368_v20  ;;  %4825 = vmatmul.bf16.vlgmr.msra.gmra.mxu3 %v10370_v21  ;;  %v4553_v31 = vpop.f32.mrf.mxu2  ;;  %v4566_v53 = vpop.f32.mrf.mxu3  ;;  %v8228_v5 = vld [vmem:[#allocation13 + $0x530] sm:$0xf]  ;;  %v7717_v26 = vor.u32 %v9440_v42, %v7716_v6 }
 0x39d   :  { %v4554_v28 = vadd.f32 %v4553_v31, %v3207_v14  ;;  %v4529_v37 = vpop.f32.mrf.mxu0  ;;  %v4542_v38 = vpop.f32.mrf.mxu1  ;;  %v9568_v48 = vld [vmem:[#allocation13 + $0x56c] sm:$0xf0]  ;;  %v9641_v31 = vld [vmem:[#allocation13 + $0x7bc] sm:$0xf] }
 0x39e   :  { %4831 = vmatpush.bf16.msrb.mxu0 %v7973_v8  ;;  %4844 = vmatpush.bf16.msrb.mxu1 %v8485_v44  ;;  %v8229_v8 = vor.u32 %v9568_v48, %v8228_v5  ;;  %v7652_v44 = vld [vmem:[#allocation13 + $0xb0] sm:$0xf]  ;;  %v8492_v5 = vld [vmem:[#allocation13 + $0x738] sm:$0xf] }
 0x39f   :  { %4857 = vmatpush.bf16.msrb.mxu2 %v7977_v32  ;;  %4870 = vmatpush.bf16.msrb.mxu3 %v8489_v59  ;;  %v10402_v46 = vadd.f32 %v4566_v53, %v4554_v28  ;;  %v8233_v32 = vor.u32 %v9560_v45, %v8230_v52  ;;  %v8164_v59 = vld [vmem:[#allocation13 + $0x4b0] sm:$0xf]  ;;  %v7653_v3 = vor.u32 %v9424_v23, %v7652_v44  ;;  %v8558_v53 = vld [vmem:[#allocation13 + $0x7f8] sm:$0xf0]  ;;  %v9633_v48 = vld [vmem:[#allocation13 + $0x774] sm:$0xf0] }
 0x3a0   :  { %v8165_v4 = vor.u32 %v9552_v55, %v8164_v59  ;;  %v8561_v42 = vor.u32 %v9641_v31, %v8558_v53  ;;  %v9625_v45 = vld [vmem:[#allocation13 + $0x73c] sm:$0xf]  ;;  %v7916_v44 = vld [vmem:[#allocation13 + $0x2b8] sm:$0xf] }
 0x3a1   :  { %v8494_v52 = vld [vmem:[#allocation13 + $0x778] sm:$0xf0]  ;;  %v9489_v23 = vld [vmem:[#allocation13 + $0x2f4] sm:$0xf0] }
 0x3a2   :  { %4832 = vmatpush.bf16.msrb.mxu0 %v7909_v2  ;;  %4845 = vmatpush.bf16.msrb.mxu1 %v8421_v39  ;;  %v7588_v39 = vld [vmem:[#allocation13 + $0x30] sm:$0xf]  ;;  %v9617_v59 = vld [vmem:[#allocation13 + $0x6f4] sm:$0xf0]  ;;  %v9481_v55 = vld [vmem:[#allocation13 + $0x2bc] sm:$0xf]  ;;  %v7917_v61 = vor.u32 %v9489_v23, %v7916_v44 }
 0x3a3   :  { %4858 = vmatpush.bf16.msrb.mxu2 %v7913_v24  ;;  %4871 = vmatpush.bf16.msrb.mxu3 %v8425_v33  ;;  %v9408_v24 = vld [vmem:[#allocation13 + $0x6c] sm:$0xf0]  ;;  %v9449_v31 = vld [vmem:[#allocation13 + $0x1bc] sm:$0xf] }
 0x3a4   :  { %v4555_v60 = vpop.f32.mrf.mxu2  ;;  %v4568_v62 = vpop.f32.mrf.mxu3  ;;  %v8100_v33 = vld [vmem:[#allocation13 + $0x430] sm:$0xf]  ;;  %v7589_v22 = vor.u32 %v9408_v24, %v7588_v39  ;;  %v7852_v39 = vld [vmem:[#allocation13 + $0x238] sm:$0xf] }
 0x3a5   :  { %v4579_v1 = vpop.f32.mrf.mxu0  ;;  %v4592_v2 = vpop.f32.mrf.mxu1  ;;  %v8101_v17 = vor.u32 %v9536_v12, %v8100_v33  ;;  %v9609_v60 = vld [vmem:[#allocation13 + $0x6bc] sm:$0xf]  ;;  %v8364_v24 = vld [vmem:[#allocation13 + $0x638] sm:$0xf] }
 0x3a6   :  { %4833 = vmatpush.bf16.msrb.mxu0 %v7845_v15  ;;  %4846 = vmatpush.bf16.msrb.mxu1 %v8357_v27  ;;  %v4580_v7 = vadd.f32 %v4579_v1, %v3208_v18  ;;  %v8102_v15 = vld [vmem:[#allocation13 + $0x470] sm:$0xf0]  ;;  %v8044_v27 = vld [vmem:[#allocation13 + $0x3b8] sm:$0xf]  ;;  %v7985_v18 = vor.u32 %v9497_v49, %v7982_v50  ;;  %v8430_v62 = vld [vmem:[#allocation13 + $0x6f8] sm:$0xf0] }
 0x3a7   :  { %4859 = vmatpush.bf16.msrb.mxu2 %v7849_v0  ;;  %4872 = vmatpush.bf16.msrb.mxu3 %v8361_v41  ;;  %v9649_v0 = vld [vmem:[#allocation13 + $0x7f4] sm:$0xf0]  ;;  %v9513_v41 = vld [vmem:[#allocation13 + $0x3bc] sm:$0xf]  ;;  %v8105_v35 = vor.u32 %v9528_v13, %v8102_v15  ;;  %v8045_v54 = vor.u32 %v9521_v16, %v8044_v27 }
 0x3a8   :  { %v10405_v14 = vadd.f32 %v4592_v2, %v4580_v7  ;;  %v8557_v28 = vor.u32 %v9649_v0, %v8556_v19  ;;  %v8049_v6 = vor.u32 %v9513_v41, %v8046_v30  ;;  %v3210_v2 = vperm.slane %v10392_v51, 4  ;;  %v9601_v33 = vld [vmem:[#allocation13 + $0x674] sm:$0xf0]  ;;  %v9465_v12 = vld [vmem:[#allocation13 + $0x23c] sm:$0xf] }
 0x3a9   :  { %v8433_v7 = vor.u32 %v9609_v60, %v8430_v62  ;;  %v8365_v16 = vor.u32 %v9601_v33, %v8364_v24  ;;  %v7788_v19 = vld [vmem:[#allocation13 + $0x1b8] sm:$0xf]  ;;  %v9433_v49 = vld [vmem:[#allocation13 + $0x13c] sm:$0xf] }
 0x3aa   :  { %4834 = vmatpush.bf16.msrb.mxu0 %v7781_v40  ;;  %4847 = vmatpush.bf16.msrb.mxu1 %v8293_v43  ;;  %v7980_v40 = vld [vmem:[#allocation13 + $0x338] sm:$0xf] }
 0x3ab   :  { %4860 = vmatpush.bf16.msrb.mxu2 %v7785_v47  ;;  %4873 = vmatpush.bf16.msrb.mxu3 %v8297_v29  ;;  %v9505_v43 = vld [vmem:[#allocation13 + $0x374] sm:$0xf0] }
 0x3ac   :  { %v10407_v37 = vpop.f32.mrf.mxu2  ;;  %v10409_v38 = vpop.f32.mrf.mxu3  ;;  %v9457_v0 = vld [vmem:[#allocation13 + $0x1f4] sm:$0xf0] }
 0x3ad   :  { %v4581_v47 = vpop.f32.mrf.mxu0  ;;  %v4594_v29 = vpop.f32.mrf.mxu1  ;;  %v9585_v30 = vld [vmem:[#allocation13 + $0x5f4] sm:$0xf0] }
 0x3ae   :  { %4835 = vmatpush.bf16.msrb.mxu0 %v7717_v26  ;;  %4848 = vmatpush.bf16.msrb.mxu1 %v8229_v8  ;;  %v7981_v26 = vor.u32 %v9505_v43, %v7980_v40  ;;  %v8493_v8 = vor.u32 %v9633_v48, %v8492_v5  ;;  %v7789_v40 = vor.u32 %v9457_v0, %v7788_v19  ;;  %v8236_v5 = vld [vmem:[#allocation13 + $0x538] sm:$0xf] }
 0x3af   :  { %4861 = vmatpush.bf16.msrb.mxu2 %v7721_v56  ;;  %4874 = vmatpush.bf16.msrb.mxu3 %v8233_v32  ;;  %v8497_v56 = vor.u32 %v9625_v45, %v8494_v52  ;;  %v8428_v32 = vld [vmem:[#allocation13 + $0x6b8] sm:$0xf]  ;;  %v7726_v52 = vld [vmem:[#allocation13 + $0x178] sm:$0xf0] }
 0x3b0   :  { %v8429_v25 = vor.u32 %v9617_v59, %v8428_v32  ;;  %v9569_v48 = vld [vmem:[#allocation13 + $0x574] sm:$0xf0]  ;;  %v7729_v60 = vor.u32 %v9433_v49, %v7726_v52  ;;  %v9662_v49 = vld [vmem:[#allocation16 + $0x60] sm:$0xff]  ;;  %v9669_v52 = vld [vmem:[#allocation16 + $0x98] sm:$0xff] }
 0x3b1   :  { %v8237_v32 = vor.u32 %v9569_v48, %v8236_v5  ;;  %v7660_v59 = vld [vmem:[#allocation13 + $0xb8] sm:$0xf]  ;;  %v9654_v48 = vld [vmem:[#allocation16 + $0x20] sm:$0xff] }
 0x3b2   :  { %4836 = vmatpush.bf16.msrb.mxu0 %v7653_v3  ;;  %4849 = vmatpush.bf16.msrb.mxu1 %v8165_v4  ;;  %v9473_v3 = vld [vmem:[#allocation13 + $0x274] sm:$0xf0]  ;;  %v7921_v4 = vor.u32 %v9481_v55, %v7918_v57 }
 0x3b3   :  { %4862 = vmatpush.bf16.msrb.mxu2 %v7657_v58  ;;  %4875 = vmatpush.bf16.msrb.mxu3 %v8169_v36  ;;  %v7854_v58 = vld [vmem:[#allocation13 + $0x278] sm:$0xf0]  ;;  %v7853_v27 = vor.u32 %v9473_v3, %v7852_v39  ;;  %v9425_v55 = vld [vmem:[#allocation13 + $0xf4] sm:$0xf0] }
 0x3b4   :  { %v4607_v63 = vpop.f32.mrf.mxu2  ;;  %v4620_v1 = vpop.f32.mrf.mxu3  ;;  %v9593_v36 = vld [vmem:[#allocation13 + $0x63c] sm:$0xf]  ;;  %v7857_v41 = vor.u32 %v9465_v12, %v7854_v58  ;;  %v7661_v3 = vor.u32 %v9425_v55, %v7660_v59  ;;  %v9409_v24 = vld [vmem:[#allocation13 + $0x74] sm:$0xf0]  ;;  %v9660_v59 = vld [vmem:[#allocation16 + $0x50] sm:$0xff] }
 0x3b5   :  { %v9417_v63 = vld [vmem:[#allocation13 + $0xbc] sm:$0xf]  ;;  %v8108_v58 = vld [vmem:[#allocation13 + $0x438] sm:$0xf]  ;;  %v9668_v55 = vld [vmem:[#allocation16 + $0x90] sm:$0xff] }
 0x3b6   :  { %4837 = vmatpush.bf16.msrb.mxu0 %v7589_v22  ;;  %4850 = vmatpush.bf16.msrb.mxu1 %v8101_v17  ;;  %v4631_v11 = vpop.f32.mrf.mxu0  ;;  %v4644_v13 = vpop.f32.mrf.mxu1  ;;  %v8369_v22 = vor.u32 %v9593_v36, %v8366_v10  ;;  %v8300_v17 = vld [vmem:[#allocation13 + $0x5b8] sm:$0xf]  ;;  %v7662_v1 = vld [vmem:[#allocation13 + $0xf8] sm:$0xf0] }
 0x3b7   :  { %4863 = vmatpush.bf16.msrb.mxu2 %v7593_v34  ;;  %4876 = vmatpush.bf16.msrb.mxu3 %v8105_v35  ;;  %v4632_v15 = vadd.f32 %v4631_v11, %v3210_v2  ;;  %v7790_v34 = vld [vmem:[#allocation13 + $0x1f8] sm:$0xf0]  ;;  %v8301_v43 = vor.u32 %v9585_v30, %v8300_v17  ;;  %v7665_v33 = vor.u32 %v9417_v63, %v7662_v1  ;;  %v9537_v36 = vld [vmem:[#allocation13 + $0x474] sm:$0xf0]  ;;  %v9657_v17 = vld [vmem:[#allocation16 + $0x38] sm:$0xff] }
 0x3b8   :  { %v9577_v35 = vld [vmem:[#allocation13 + $0x5bc] sm:$0xf]  ;;  %v7793_v47 = vor.u32 %v9449_v31, %v7790_v34  ;;  %v8109_v0 = vor.u32 %v9537_v36, %v8108_v58  ;;  %v9665_v30 = vld [vmem:[#allocation16 + $0x78] sm:$0xff] }
 0x3b9   :  { %4838 = vmatmul.bf16.vlgmr.msrb.gmra.mxu0 %v10368_v20  ;;  %4851 = vmatmul.bf16.vlgmr.msrb.gmra.mxu1 %v10370_v21  ;;  %v10416_v53 = vadd.f32 %v4644_v13, %v4632_v15  ;;  %v9545_v2 = vld [vmem:[#allocation13 + $0x4bc] sm:$0xf]  ;;  %v9673_v31 = vld [vmem:[#allocation16 + $0xb8] sm:$0xff] }
 0x3ba   :  { %4882 = vmatpush.bf16.msra.mxu0 %v8045_v54  ;;  %4895 = vmatpush.bf16.msra.mxu1 %v8557_v28  ;;  %v8302_v54 = vld [vmem:[#allocation13 + $0x5f8] sm:$0xf0]  ;;  %v3211_v28 = vperm.slane %v10392_v51, 5  ;;  %v9681_v34 = vld [vmem:[#allocation16 + $0xf8] sm:$0xff] }
 0x3bb   :  { %4908 = vmatpush.bf16.msra.mxu2 %v8049_v6  ;;  %4921 = vmatpush.bf16.msra.mxu3 %v8561_v42  ;;  %v7724_v6 = vld [vmem:[#allocation13 + $0x138] sm:$0xf]  ;;  %v8305_v29 = vor.u32 %v9577_v35, %v8302_v54  ;;  %v8174_v39 = vld [vmem:[#allocation13 + $0x4f8] sm:$0xf0]  ;;  %v9656_v35 = vld [vmem:[#allocation16 + $0x30] sm:$0xff] }
 0x3bc   :  { %4864 = vmatmul.bf16.vlgmr.msrb.gmra.mxu2 %v10368_v20  ;;  %4877 = vmatmul.bf16.vlgmr.msrb.gmra.mxu3 %v10370_v21  ;;  %v9441_v42 = vld [vmem:[#allocation13 + $0x174] sm:$0xf0]  ;;  %v8177_v12 = vor.u32 %v9545_v2, %v8174_v39  ;;  %v9401_v10 = vld [vmem:[#allocation13 + $0x3c] sm:$0xf]  ;;  %v9664_v54 = vld [vmem:[#allocation16 + $0x70] sm:$0xff] }
 0x3bd   :  { %v7598_v15 = vld [vmem:[#allocation13 + $0x78] sm:$0xf0]  ;;  %v9689_v58 = vld [vmem:[#allocation16 + $0x138] sm:$0xff] }
 0x3be   :  { %4883 = vmatpush.bf16.msra.mxu0 %v7981_v26  ;;  %4896 = vmatpush.bf16.msra.mxu1 %v8493_v8  ;;  %v9561_v26 = vld [vmem:[#allocation13 + $0x53c] sm:$0xf]  ;;  %v4633_v23 = vpop.f32.mrf.mxu0  ;;  %v9697_v36 = vld [vmem:[#allocation16 + $0x178] sm:$0xff] }
 0x3bf   :  { %4909 = vmatpush.bf16.msra.mxu2 %v7985_v18  ;;  %4922 = vmatpush.bf16.msra.mxu3 %v8497_v56  ;;  %v4657_v50 = vpop.f32.mrf.mxu2  ;;  %v4670_v45 = vpop.f32.mrf.mxu3  ;;  %v8238_v8 = vld [vmem:[#allocation13 + $0x578] sm:$0xf0]  ;;  %v7725_v56 = vor.u32 %v9441_v42, %v7724_v6  ;;  %v3209_v23 = vperm.slane %v10392_v51, 3 }
 0x3c0   :  { %v4658_v44 = vadd.f32 %v4657_v50, %v3211_v28  ;;  %v4646_v18 = vpop.f32.mrf.mxu1  ;;  %v8241_v62 = vor.u32 %v9561_v26, %v8238_v8  ;;  %v9672_v28 = vld [vmem:[#allocation16 + $0xb0] sm:$0xff]  ;;  %v9663_v6 = vld [vmem:[#allocation16 + $0x68] sm:$0xff]  ;;  %v9653_v50 = vld [vmem:[#allocation16 + $0x18] sm:$0xff] }
 0x3c1   :  { %v9671_v42 = vld [vmem:[#allocation16 + $0xa8] sm:$0xff]  ;;  %v9677_v26 = vld [vmem:[#allocation16 + $0xd8] sm:$0xff] }
 0x3c2   :  { %4884 = vmatpush.bf16.msra.mxu0 %v7917_v61  ;;  %4897 = vmatpush.bf16.msra.mxu1 %v8429_v25  ;;  %v10419_v57 = vadd.f32 %v4670_v45, %v4658_v44  ;;  %v8172_v61 = vld [vmem:[#allocation13 + $0x4b8] sm:$0xf]  ;;  %v9661_v45 = vld [vmem:[#allocation16 + $0x58] sm:$0xff] }
 0x3c3   :  { %4910 = vmatpush.bf16.msra.mxu2 %v7921_v4  ;;  %4923 = vmatpush.bf16.msra.mxu3 %v8433_v7  ;;  %v9553_v25 = vld [vmem:[#allocation13 + $0x4f4] sm:$0xf0] }
 0x3c4   :  { %v8173_v4 = vor.u32 %v9553_v25, %v8172_v61  ;;  %v7596_v7 = vld [vmem:[#allocation13 + $0x38] sm:$0xf] }
 0x3c5   :  { %v7597_v19 = vor.u32 %v9409_v24, %v7596_v7  ;;  %v9651_v61 = vld [vmem:[#allocation16 + $0x8] sm:$0xff]  ;;  %v9658_v7 = vld [vmem:[#allocation16 + $0x40] sm:$0xff] }
 0x3c6   :  { %4885 = vmatpush.bf16.msra.mxu0 %v7853_v27  ;;  %4898 = vmatpush.bf16.msra.mxu1 %v8365_v16  ;;  %v9529_v27 = vld [vmem:[#allocation13 + $0x43c] sm:$0xf]  ;;  %v9666_v24 = vld [vmem:[#allocation16 + $0x80] sm:$0xff] }
 0x3c7   :  { %4911 = vmatpush.bf16.msra.mxu2 %v7857_v41  ;;  %4924 = vmatpush.bf16.msra.mxu3 %v8369_v22  ;;  %v4659_v11 = vpop.f32.mrf.mxu2  ;;  %v4672_v13 = vpop.f32.mrf.mxu3  ;;  %v8110_v16 = vld [vmem:[#allocation13 + $0x478] sm:$0xf0]  ;;  %v7601_v41 = vor.u32 %v9401_v10, %v7598_v15  ;;  %v4936_v10 = vmax.f32 %v10405_v14, 0.0  ;;  %v9713_v15 = vld [vmem:[#allocation16 + $0x1f8] sm:$0xff] }
 0x3c8   :  { %v8113_v22 = vor.u32 %v9529_v27, %v8110_v16  ;;  %v9659_v25 = vld [vmem:[#allocation16 + $0x48] sm:$0xff]  ;;  %v9705_v13 = vld [vmem:[#allocation16 + $0x1b8] sm:$0xff]  ;;  %v9688_v16 = vld [vmem:[#allocation16 + $0x130] sm:$0xff] }
 0x3c9   :  { %v9667_v63 = vld [vmem:[#allocation16 + $0x88] sm:$0xff] }
 0x3ca   :  { %4886 = vmatpush.bf16.msra.mxu0 %v7789_v40  ;;  %4899 = vmatpush.bf16.msra.mxu1 %v8301_v43  ;;  %v9680_v40 = vld [vmem:[#allocation16 + $0xf0] sm:$0xff]  ;;  %v9655_v43 = vld [vmem:[#allocation16 + $0x28] sm:$0xff] }
 0x3cb   :  { %4912 = vmatpush.bf16.msra.mxu2 %v7793_v47  ;;  %4925 = vmatpush.bf16.msra.mxu3 %v8305_v29  ;;  %v9679_v47 = vld [vmem:[#allocation16 + $0xe8] sm:$0xff] }
 0x3cc   :  { %v9675_v1 = vld [vmem:[#allocation16 + $0xc8] sm:$0xff] }
 0x3cd   :  { %v9687_v14 = vld [vmem:[#allocation16 + $0x128] sm:$0xff] }
 0x3ce   :  { %4887 = vmatpush.bf16.msra.mxu0 %v7725_v56  ;;  %4900 = vmatpush.bf16.msra.mxu1 %v8237_v32  ;;  %v9652_v32 = vld [vmem:[#allocation16 + $0x10] sm:$0xff] }
 0x3cf   :  { %4913 = vmatpush.bf16.msra.mxu2 %v7729_v60  ;;  %4926 = vmatpush.bf16.msra.mxu3 %v8241_v62  ;;  %v9676_v60 = vld [vmem:[#allocation16 + $0xd0] sm:$0xff]  ;;  %v4606_v62 = vadd.f32 %v10407_v37, %v3209_v23  ;;  %v9674_v37 = vld [vmem:[#allocation16 + $0xc0] sm:$0xff] }
 0x3d0   :  { %v9700_v23 = vld [vmem:[#allocation16 + $0x190] sm:$0xff] }
 0x3d2   :  { %4888 = vmatpush.bf16.msra.mxu0 %v7661_v3  ;;  %4901 = vmatpush.bf16.msra.mxu1 %v8173_v4  ;;  %v4619_v3 = vadd.f32 %v10409_v38, %v4606_v62  ;;  %v9650_v4 = vld [vmem:[#allocation16] sm:$0xff] }
 0x3d3   :  { %4914 = vmatpush.bf16.msra.mxu2 %v7665_v33  ;;  %4927 = vmatpush.bf16.msra.mxu3 %v8177_v12  ;;  %v4934_v33 = vmax.f32 %v10399_v9, 0.0  ;;  %v4935_v12 = vmax.f32 %v10402_v46, 0.0  ;;  %v4952_v9 = vpack.c.bf16 %v4936_v10, %v4936_v10  ;;  %v9704_v46 = vld [vmem:[#allocation16 + $0x1b0] sm:$0xff] }
 0x3d4   :  { %v4937_v11 = vmax.f32 %v4619_v3, 0.0  ;;  %v4939_v3 = vmax.f32 %v10419_v57, 0.0  ;;  %v9736_v57 = vld [vmem:[#allocation16 + $0x2b0] sm:$0xff] }
 0x3d5   :  { %v4950_v38 = vpack.c.bf16 %v4934_v33, %v4934_v33  ;;  %v4951_v27 = vpack.c.bf16 %v4935_v12, %v4935_v12  ;;  %v9737_v33 = vld [vmem:[#allocation16 + $0x2b8] sm:$0xff] }
 0x3d6   :  { %4889 = vmatpush.bf16.msra.mxu0 %v7597_v19  ;;  %4902 = vmatpush.bf16.msra.mxu1 %v8109_v0  ;;  %v10425_v29 = vpop.f32.mrf.mxu0  ;;  %v10427_v5 = vpop.f32.mrf.mxu1  ;;  %v9696_v19 = vld [vmem:[#allocation16 + $0x170] sm:$0xff]  ;;  %v4953_v0 = vpack.c.bf16 %v4937_v11, %v4937_v11  ;;  %v4955_v12 = vpack.c.bf16 %v4939_v3, %v4939_v3  ;;  %v9753_v3 = vld [vmem:[#allocation16 + $0x338] sm:$0xff] }
 0x3d7   :  { %4915 = vmatpush.bf16.msra.mxu2 %v7601_v41  ;;  %4928 = vmatpush.bf16.msra.mxu3 %v8113_v22  ;;  %v9712_v41 = vld [vmem:[#allocation16 + $0x1f0] sm:$0xff]  ;;  %v9695_v22 = vld [vmem:[#allocation16 + $0x168] sm:$0xff] }
 0x3d8   :  { %v9744_v11 = vld [vmem:[#allocation16 + $0x2f0] sm:$0xff] }
 0x3d9   :  { %4890 = vmatmul.bf16.vlgmr.msra.gmra.mxu0 %v10368_v20  ;;  %4903 = vmatmul.bf16.vlgmr.msra.gmra.mxu1 %v10370_v21 }
 0x3da   :  { %5994 = vmatpush.bf16.msrb.mxu0 %v9657_v17  ;;  %6007 = vmatpush.bf16.msrb.mxu1 %v9665_v30  ;;  %v9703_v17 = vld [vmem:[#allocation16 + $0x1a8] sm:$0xff] }
 0x3db   :  { %6020 = vmatpush.bf16.msrb.mxu2 %v9673_v31  ;;  %6033 = vmatpush.bf16.msrb.mxu3 %v9681_v34  ;;  %v9711_v30 = vld [vmem:[#allocation16 + $0x1e8] sm:$0xff] }
 0x3dc   :  { %4916 = vmatmul.bf16.vlgmr.msra.gmra.mxu2 %v10368_v20  ;;  %4929 = vmatmul.bf16.vlgmr.msra.gmra.mxu3 %v10370_v21  ;;  %v9670_v20 = vld [vmem:[#allocation16 + $0xa0] sm:$0xff] }
 0x3dd   :  { %v9678_v21 = vld [vmem:[#allocation16 + $0xe0] sm:$0xff] }
 0x3de   :  { %5995 = vmatpush.bf16.msrb.mxu0 %v9656_v35  ;;  %6008 = vmatpush.bf16.msrb.mxu1 %v9664_v54  ;;  %v4685_v18 = vpop.f32.mrf.mxu0  ;;  %v4698_v56 = vpop.f32.mrf.mxu1  ;;  %v9686_v35 = vld [vmem:[#allocation16 + $0x120] sm:$0xff] }
 0x3df   :  { %6021 = vmatpush.bf16.msrb.mxu2 %v9672_v28  ;;  %6034 = vmatpush.bf16.msrb.mxu3 %v9680_v40  ;;  %v10429_v8 = vpop.f32.mrf.mxu2  ;;  %v10431_v44 = vpop.f32.mrf.mxu3  ;;  %v9694_v54 = vld [vmem:[#allocation16 + $0x160] sm:$0xff]  ;;  %v9708_v18 = vld [vmem:[#allocation16 + $0x1d0] sm:$0xff] }
 0x3e0   :  { %v9702_v28 = vld [vmem:[#allocation16 + $0x1a0] sm:$0xff] }
 0x3e1   :  { %v9710_v40 = vld [vmem:[#allocation16 + $0x1e0] sm:$0xff] }
 0x3e2   :  { %5996 = vmatpush.bf16.msrb.mxu0 %v9655_v43  ;;  %6009 = vmatpush.bf16.msrb.mxu1 %v9663_v6  ;;  %v9685_v43 = vld [vmem:[#allocation16 + $0x118] sm:$0xff] }
 0x3e3   :  { %6022 = vmatpush.bf16.msrb.mxu2 %v9671_v42  ;;  %6035 = vmatpush.bf16.msrb.mxu3 %v9679_v47  ;;  %v9693_v6 = vld [vmem:[#allocation16 + $0x158] sm:$0xff] }
 0x3e4   :  { %v9701_v42 = vld [vmem:[#allocation16 + $0x198] sm:$0xff] }
 0x3e5   :  { %v9709_v47 = vld [vmem:[#allocation16 + $0x1d8] sm:$0xff] }
 0x3e6   :  { %5997 = vmatpush.bf16.msrb.mxu0 %v9654_v48  ;;  %6010 = vmatpush.bf16.msrb.mxu1 %v9662_v49 }
 0x3e7   :  { %6023 = vmatpush.bf16.msrb.mxu2 %v9670_v20  ;;  %6036 = vmatpush.bf16.msrb.mxu3 %v9678_v21  ;;  %v4711_v2 = vpop.f32.mrf.mxu2  ;;  %v4724_v39 = vpop.f32.mrf.mxu3  ;;  %v3212_v20 = vperm.slane %v10392_v51, 6  ;;  %v3213_v21 = vperm.slane %v10392_v51, 7  ;;  %v9699_v51 = vld [vmem:[#allocation16 + $0x188] sm:$0xff] }
 0x3e8   :  { %v9706_v2 = vld [vmem:[#allocation16 + $0x1c0] sm:$0xff]  ;;  %v4938_v39 = vmax.f32 %v10416_v53, 0.0 }
 0x3e9   :  { %v4684_v56 = vadd.f32 %v10425_v29, %v3212_v20  ;;  %v9690_v29 = vld [vmem:[#allocation16 + $0x140] sm:$0xff] }
 0x3ea   :  { %5998 = vmatpush.bf16.msrb.mxu0 %v9653_v50  ;;  %6011 = vmatpush.bf16.msrb.mxu1 %v9661_v45 }
 0x3eb   :  { %6024 = vmatpush.bf16.msrb.mxu2 %v9669_v52  ;;  %6037 = vmatpush.bf16.msrb.mxu3 %v9677_v26  ;;  %v9684_v52 = vld [vmem:[#allocation16 + $0x110] sm:$0xff] }
 0x3ec   :  { %v9692_v26 = vld [vmem:[#allocation16 + $0x150] sm:$0xff] }
 0x3ee   :  { %5999 = vmatpush.bf16.msrb.mxu0 %v9652_v32  ;;  %6012 = vmatpush.bf16.msrb.mxu1 %v9660_v59  ;;  %v4710_v32 = vadd.f32 %v10429_v8, %v3213_v21  ;;  %v9683_v59 = vld [vmem:[#allocation16 + $0x108] sm:$0xff]  ;;  %v9698_v8 = vld [vmem:[#allocation16 + $0x180] sm:$0xff]  ;;  %v9716_v21 = vld [vmem:[#allocation16 + $0x210] sm:$0xff] }
 0x3ef   :  { %6025 = vmatpush.bf16.msrb.mxu2 %v9668_v55  ;;  %6038 = vmatpush.bf16.msrb.mxu3 %v9676_v60  ;;  %v9691_v55 = vld [vmem:[#allocation16 + $0x148] sm:$0xff] }
 0x3f0   :  { %v9707_v60 = vld [vmem:[#allocation16 + $0x1c8] sm:$0xff] }
 0x3f2   :  { %6000 = vmatpush.bf16.msrb.mxu0 %v9651_v61  ;;  %6013 = vmatpush.bf16.msrb.mxu1 %v9659_v25  ;;  %v4697_v25 = vadd.f32 %v10427_v5, %v4684_v56  ;;  %v9745_v5 = vld [vmem:[#allocation16 + $0x2f8] sm:$0xff] }
 0x3f3   :  { %6026 = vmatpush.bf16.msrb.mxu2 %v9667_v63  ;;  %6039 = vmatpush.bf16.msrb.mxu3 %v9675_v1  ;;  %v4723_v63 = vadd.f32 %v10431_v44, %v4710_v32  ;;  %v9682_v1 = vld [vmem:[#allocation16 + $0x100] sm:$0xff]  ;;  %v4954_v44 = vpack.c.bf16 %v4938_v39, %v4938_v39  ;;  %v9715_v32 = vld [vmem:[#allocation16 + $0x208] sm:$0xff] }
 0x3f6   :  { %6001 = vmatpush.bf16.msrb.mxu0 %v9650_v4  ;;  %6014 = vmatpush.bf16.msrb.mxu1 %v9658_v7  ;;  %v10439_v31 = vpop.f32.mrf.mxu0  ;;  %v10441_v34 = vpop.f32.mrf.mxu1  ;;  %v9721_v4 = vld [vmem:[#allocation16 + $0x238] sm:$0xff] }
 0x3f7   :  { %6027 = vmatpush.bf16.msrb.mxu2 %v9666_v24  ;;  %6040 = vmatpush.bf16.msrb.mxu3 %v9674_v37  ;;  %v9729_v7 = vld [vmem:[#allocation16 + $0x278] sm:$0xff]  ;;  %v4940_v24 = vmax.f32 %v4697_v25, 0.0  ;;  %v4941_v37 = vmax.f32 %v4723_v63, 0.0  ;;  %v9714_v63 = vld [vmem:[#allocation16 + $0x200] sm:$0xff] }
 0x3f9   :  { %6002 = vmatmul.bf16.vlgmr.msrb.gmra.mxu0 %v4950_v38  ;;  %6015 = vmatmul.bf16.vlgmr.msrb.gmra.mxu1 %v4951_v27  ;;  %v4956_v10 = vpack.c.bf16 %v4940_v24, %v4940_v24  ;;  %v4957_v53 = vpack.c.bf16 %v4941_v37, %v4941_v37  ;;  %v9735_v38 = vld [vmem:[#allocation16 + $0x2a8] sm:$0xff]  ;;  %v9769_v37 = vld [vmem:[#allocation16 + $0x3b8] sm:$0xff] }
 0x3fa   :  { %6046 = vmatpush.bf16.msra.mxu0 %v9689_v58  ;;  %6059 = vmatpush.bf16.msra.mxu1 %v9697_v36  ;;  %v9720_v58 = vld [vmem:[#allocation16 + $0x230] sm:$0xff]  ;;  %v9743_v27 = vld [vmem:[#allocation16 + $0x2e8] sm:$0xff] }
 0x3fb   :  { %6072 = vmatpush.bf16.msra.mxu2 %v9705_v13  ;;  %6085 = vmatpush.bf16.msra.mxu3 %v9713_v15  ;;  %v9728_v36 = vld [vmem:[#allocation16 + $0x270] sm:$0xff]  ;;  %v9719_v13 = vld [vmem:[#allocation16 + $0x228] sm:$0xff] }
 0x3fc   :  { %6028 = vmatmul.bf16.vlgmr.msrb.gmra.mxu2 %v4952_v9  ;;  %6041 = vmatmul.bf16.vlgmr.msrb.gmra.mxu3 %v4953_v0  ;;  %v9727_v15 = vld [vmem:[#allocation16 + $0x268] sm:$0xff]  ;;  %v9718_v9 = vld [vmem:[#allocation16 + $0x220] sm:$0xff] }
 0x3fd   :  { %v9726_v0 = vld [vmem:[#allocation16 + $0x260] sm:$0xff] }
 0x3fe   :  { %6047 = vmatpush.bf16.msra.mxu0 %v9688_v16  ;;  %6060 = vmatpush.bf16.msra.mxu1 %v9696_v19  ;;  %v4737_v50 = vpop.f32.mrf.mxu0  ;;  %v4750_v45 = vpop.f32.mrf.mxu1 }
 0x3ff   :  { %6073 = vmatpush.bf16.msra.mxu2 %v9704_v46  ;;  %6086 = vmatpush.bf16.msra.mxu3 %v9712_v41  ;;  %v10443_v48 = vpop.f32.mrf.mxu2  ;;  %v10445_v49 = vpop.f32.mrf.mxu3  ;;  %v9734_v46 = vld [vmem:[#allocation16 + $0x2a0] sm:$0xff]  ;;  %v9724_v50 = vld [vmem:[#allocation16 + $0x250] sm:$0xff] }
 0x400   :  { %v9742_v41 = vld [vmem:[#allocation16 + $0x2e0] sm:$0xff] }
 0x402   :  { %6048 = vmatpush.bf16.msra.mxu0 %v9687_v14  ;;  %6061 = vmatpush.bf16.msra.mxu1 %v9695_v22  ;;  %v10455_v14 = vld [vmem:[#allocation14 + $0x8] sm:$0xff] }
 0x403   :  { %6074 = vmatpush.bf16.msra.mxu2 %v9703_v17  ;;  %6087 = vmatpush.bf16.msra.mxu3 %v9711_v30  ;;  %v9717_v22 = vld [vmem:[#allocation16 + $0x218] sm:$0xff]  ;;  %v3214_v30 = vperm.slane %v10455_v14, 0 }
 0x404   :  { %v9725_v17 = vld [vmem:[#allocation16 + $0x258] sm:$0xff] }
 0x405   :  { %v4736_v45 = vadd.f32 %v10439_v31, %v3214_v30  ;;  %v9739_v31 = vld [vmem:[#allocation16 + $0x2c8] sm:$0xff] }
 0x406   :  { %6049 = vmatpush.bf16.msra.mxu0 %v9686_v35  ;;  %6062 = vmatpush.bf16.msra.mxu1 %v9694_v54  ;;  %v3215_v35 = vperm.slane %v10455_v14, 1  ;;  %v9733_v54 = vld [vmem:[#allocation16 + $0x298] sm:$0xff] }
 0x407   :  { %6075 = vmatpush.bf16.msra.mxu2 %v9702_v28  ;;  %6088 = vmatpush.bf16.msra.mxu3 %v9710_v40  ;;  %v4763_v62 = vpop.f32.mrf.mxu2  ;;  %v4776_v61 = vpop.f32.mrf.mxu3  ;;  %v9741_v28 = vld [vmem:[#allocation16 + $0x2d8] sm:$0xff]  ;;  %v3216_v40 = vperm.slane %v10455_v14, 2 }
 0x40a   :  { %6050 = vmatpush.bf16.msra.mxu0 %v9685_v43  ;;  %6063 = vmatpush.bf16.msra.mxu1 %v9693_v6  ;;  %v3217_v43 = vperm.slane %v10455_v14, 3 }
 0x40b   :  { %6076 = vmatpush.bf16.msra.mxu2 %v9701_v42  ;;  %6089 = vmatpush.bf16.msra.mxu3 %v9709_v47 }
 0x40e   :  { %6051 = vmatpush.bf16.msra.mxu0 %v9684_v52  ;;  %6064 = vmatpush.bf16.msra.mxu1 %v9692_v26  ;;  %v4762_v52 = vadd.f32 %v10443_v48, %v3215_v35  ;;  %v9732_v26 = vld [vmem:[#allocation16 + $0x290] sm:$0xff] }
 0x40f   :  { %6077 = vmatpush.bf16.msra.mxu2 %v9700_v23  ;;  %6090 = vmatpush.bf16.msra.mxu3 %v9708_v18  ;;  %v9740_v23 = vld [vmem:[#allocation16 + $0x2d0] sm:$0xff] }
 0x412   :  { %6052 = vmatpush.bf16.msra.mxu0 %v9683_v59  ;;  %6065 = vmatpush.bf16.msra.mxu1 %v9691_v55  ;;  %v9723_v59 = vld [vmem:[#allocation16 + $0x248] sm:$0xff]  ;;  %v4749_v55 = vadd.f32 %v10441_v34, %v4736_v45  ;;  %v9738_v34 = vld [vmem:[#allocation16 + $0x2c0] sm:$0xff] }
 0x413   :  { %6078 = vmatpush.bf16.msra.mxu2 %v9699_v51  ;;  %6091 = vmatpush.bf16.msra.mxu3 %v9707_v60  ;;  %v4775_v51 = vadd.f32 %v10445_v49, %v4762_v52  ;;  %v9731_v60 = vld [vmem:[#allocation16 + $0x288] sm:$0xff] }
 0x414   :  { %v9755_v45 = vld [vmem:[#allocation16 + $0x348] sm:$0xff] }
 0x416   :  { %6053 = vmatpush.bf16.msra.mxu0 %v9682_v1  ;;  %6066 = vmatpush.bf16.msra.mxu1 %v9690_v29  ;;  %v4787_v16 = vpop.f32.mrf.mxu0  ;;  %v4800_v19 = vpop.f32.mrf.mxu1  ;;  %v9722_v1 = vld [vmem:[#allocation16 + $0x240] sm:$0xff]  ;;  %v4942_v29 = vmax.f32 %v4749_v55, 0.0 }
 0x417   :  { %6079 = vmatpush.bf16.msra.mxu2 %v9698_v8  ;;  %6092 = vmatpush.bf16.msra.mxu3 %v9706_v2  ;;  %v4788_v18 = vadd.f32 %v4787_v16, %v3216_v40  ;;  %v4943_v8 = vmax.f32 %v4775_v51, 0.0  ;;  %v9730_v2 = vld [vmem:[#allocation16 + $0x280] sm:$0xff]  ;;  %v9773_v40 = vld [vmem:[#allocation16 + $0x3d8] sm:$0xff] }
 0x418   :  { %v9758_v16 = vld [vmem:[#allocation16 + $0x360] sm:$0xff] }
 0x419   :  { %6054 = vmatmul.bf16.vlgmr.msra.gmra.mxu0 %v4954_v44  ;;  %6067 = vmatmul.bf16.vlgmr.msra.gmra.mxu1 %v4955_v12  ;;  %v4801_v62 = vadd.f32 %v4800_v19, %v4788_v18  ;;  %v4959_v24 = vpack.c.bf16 %v4943_v8, %v4943_v8  ;;  %v9752_v12 = vld [vmem:[#allocation16 + $0x330] sm:$0xff]  ;;  %v9766_v19 = vld [vmem:[#allocation16 + $0x3a0] sm:$0xff] }
 0x41a   :  { %6098 = vmatpush.bf16.msrb.mxu0 %v9721_v4  ;;  %6111 = vmatpush.bf16.msrb.mxu1 %v9729_v7  ;;  %v9761_v4 = vld [vmem:[#allocation16 + $0x378] sm:$0xff]  ;;  %v4958_v7 = vpack.c.bf16 %v4942_v29, %v4942_v29  ;;  %v9754_v55 = vld [vmem:[#allocation16 + $0x340] sm:$0xff] }
 0x41b   :  { %6124 = vmatpush.bf16.msrb.mxu2 %v9737_v33  ;;  %6137 = vmatpush.bf16.msrb.mxu3 %v9745_v5  ;;  %v4944_v39 = vmax.f32 %v4801_v62, 0.0  ;;  %v9777_v33 = vld [vmem:[#allocation16 + $0x3f8] sm:$0xff]  ;;  %v9770_v62 = vld [vmem:[#allocation16 + $0x3c0] sm:$0xff] }
 0x41c   :  { %6080 = vmatmul.bf16.vlgmr.msra.gmra.mxu2 %v4956_v10  ;;  %6093 = vmatmul.bf16.vlgmr.msra.gmra.mxu3 %v4957_v53  ;;  %v9776_v10 = vld [vmem:[#allocation16 + $0x3f0] sm:$0xff]  ;;  %v9751_v53 = vld [vmem:[#allocation16 + $0x328] sm:$0xff] }
 0x41d   :  { %v4960_v5 = vpack.c.bf16 %v4944_v39, %v4944_v39 }
 0x41e   :  { %6099 = vmatpush.bf16.msrb.mxu0 %v9720_v58  ;;  %6112 = vmatpush.bf16.msrb.mxu1 %v9728_v36  ;;  %v4789_v47 = vpop.f32.mrf.mxu0  ;;  %v4802_v20 = vpop.f32.mrf.mxu1  ;;  %v9760_v58 = vld [vmem:[#allocation16 + $0x370] sm:$0xff] }
 0x41f   :  { %6125 = vmatpush.bf16.msrb.mxu2 %v9736_v57  ;;  %6138 = vmatpush.bf16.msrb.mxu3 %v9744_v11  ;;  %v4813_v6 = vpop.f32.mrf.mxu2  ;;  %v4826_v42 = vpop.f32.mrf.mxu3  ;;  %v9768_v36 = vld [vmem:[#allocation16 + $0x3b0] sm:$0xff]  ;;  %v9759_v57 = vld [vmem:[#allocation16 + $0x368] sm:$0xff] }
 0x420   :  { %v4814_v56 = vadd.f32 %v4813_v6, %v3217_v43  ;;  %v9748_v43 = vld [vmem:[#allocation16 + $0x310] sm:$0xff] }
 0x421   :  { %v9756_v6 = vld [vmem:[#allocation16 + $0x350] sm:$0xff] }
 0x422   :  { %6100 = vmatpush.bf16.msrb.mxu0 %v9719_v13  ;;  %6113 = vmatpush.bf16.msrb.mxu1 %v9727_v15  ;;  %v4827_v48 = vadd.f32 %v4826_v42, %v4814_v56  ;;  %v9767_v15 = vld [vmem:[#allocation16 + $0x3a8] sm:$0xff]  ;;  %v9764_v20 = vld [vmem:[#allocation16 + $0x390] sm:$0xff] }
 0x423   :  { %6126 = vmatpush.bf16.msrb.mxu2 %v9735_v38  ;;  %6139 = vmatpush.bf16.msrb.mxu3 %v9743_v27  ;;  %v9775_v38 = vld [vmem:[#allocation16 + $0x3e8] sm:$0xff]  ;;  %v9750_v27 = vld [vmem:[#allocation16 + $0x320] sm:$0xff] }
 0x424   :  { %v4945_v49 = vmax.f32 %v4827_v48, 0.0  ;;  %v9763_v56 = vld [vmem:[#allocation16 + $0x388] sm:$0xff] }
 0x426   :  { %6101 = vmatpush.bf16.msrb.mxu0 %v9718_v9  ;;  %6114 = vmatpush.bf16.msrb.mxu1 %v9726_v0  ;;  %v4961_v44 = vpack.c.bf16 %v4945_v49, %v4945_v49  ;;  %v9774_v9 = vld [vmem:[#allocation16 + $0x3e0] sm:$0xff]  ;;  %v9749_v0 = vld [vmem:[#allocation16 + $0x318] sm:$0xff] }
 0x427   :  { %6127 = vmatpush.bf16.msrb.mxu2 %v9734_v46  ;;  %6140 = vmatpush.bf16.msrb.mxu3 %v9742_v41  ;;  %v4815_v61 = vpop.f32.mrf.mxu2  ;;  %v4828_v25 = vpop.f32.mrf.mxu3  ;;  %v9757_v46 = vld [vmem:[#allocation16 + $0x358] sm:$0xff]  ;;  %v3218_v41 = vperm.slane %v10455_v14, 4 }
 0x428   :  { %v3220_v25 = vperm.slane %v10455_v14, 6 }
 0x42a   :  { %6102 = vmatpush.bf16.msrb.mxu0 %v9717_v22  ;;  %6115 = vmatpush.bf16.msrb.mxu1 %v9725_v17  ;;  %v3219_v22 = vperm.slane %v10455_v14, 5 }
 0x42b   :  { %6128 = vmatpush.bf16.msrb.mxu2 %v9733_v54  ;;  %6141 = vmatpush.bf16.msrb.mxu3 %v9741_v28  ;;  %v9765_v28 = vld [vmem:[#allocation16 + $0x398] sm:$0xff] }
 0x42e   :  { %6103 = vmatpush.bf16.msrb.mxu0 %v9716_v21  ;;  %6116 = vmatpush.bf16.msrb.mxu1 %v9724_v50  ;;  %v9772_v21 = vld [vmem:[#allocation16 + $0x3d0] sm:$0xff]  ;;  %v9747_v50 = vld [vmem:[#allocation16 + $0x308] sm:$0xff] }
 0x42f   :  { %6129 = vmatpush.bf16.msrb.mxu2 %v9732_v26  ;;  %6142 = vmatpush.bf16.msrb.mxu3 %v9740_v23 }
 0x432   :  { %6104 = vmatpush.bf16.msrb.mxu0 %v9715_v32  ;;  %6117 = vmatpush.bf16.msrb.mxu1 %v9723_v59  ;;  %v9771_v32 = vld [vmem:[#allocation16 + $0x3c8] sm:$0xff]  ;;  %v9746_v59 = vld [vmem:[#allocation16 + $0x300] sm:$0xff] }
 0x433   :  { %6130 = vmatpush.bf16.msrb.mxu2 %v9731_v60  ;;  %6143 = vmatpush.bf16.msrb.mxu3 %v9739_v31  ;;  %v9762_v31 = vld [vmem:[#allocation16 + $0x380] sm:$0xff] }
 0x436   :  { %6105 = vmatpush.bf16.msrb.mxu0 %v9714_v63  ;;  %6118 = vmatpush.bf16.msrb.mxu1 %v9722_v1  ;;  %v4839_v11 = vpop.f32.mrf.mxu0  ;;  %v4852_v13 = vpop.f32.mrf.mxu1 }
 0x437   :  { %6131 = vmatpush.bf16.msrb.mxu2 %v9730_v2  ;;  %6144 = vmatpush.bf16.msrb.mxu3 %v9738_v34  ;;  %v4840_v42 = vadd.f32 %v4839_v11, %v3218_v41  ;;  %v3221_v2 = vperm.slane %v10455_v14, 7 }
 0x439   :  { %6106 = vmatmul.bf16.vlgmr.msrb.gmra.mxu0 %v4958_v7  ;;  %6119 = vmatmul.bf16.vlgmr.msrb.gmra.mxu1 %v4959_v24  ;;  %v4853_v52 = vadd.f32 %v4852_v13, %v4840_v42 }
 0x43a   :  { %6150 = vmatpush.bf16.msra.mxu0 %v9753_v3  ;;  %6163 = vmatpush.bf16.msra.mxu1 %v9761_v4 }
 0x43b   :  { %6132 = vmatmul.bf16.vlgmr.msrb.gmra.mxu2 %v4960_v5  ;;  %6145 = vmatmul.bf16.vlgmr.msrb.gmra.mxu3 %v4961_v44  ;;  %v4946_v51 = vmax.f32 %v4853_v52, 0.0 }
 0x43c   :  { %6176 = vmatpush.bf16.msra.mxu2 %v9769_v37  ;;  %6189 = vmatpush.bf16.msra.mxu3 %v9777_v33 }
 0x43d   :  { %v4962_v48 = vpack.c.bf16 %v4946_v51, %v4946_v51 }
 0x43e   :  { %6151 = vmatpush.bf16.msra.mxu0 %v9752_v12  ;;  %6164 = vmatpush.bf16.msra.mxu1 %v9760_v58  ;;  %v4841_v35 = vpop.f32.mrf.mxu0  ;;  %v4854_v54 = vpop.f32.mrf.mxu1  ;;  %v9795_v58 = vld [vmem:[%s10490_s12] ss:$0 sm:$0xff]  ;;  %s10089_s12 = smov [#allocation18]  }
 0x43f   :  { %v4865_v17 = vpop.f32.mrf.mxu2  ;;  %v4878_v30 = vpop.f32.mrf.mxu3  ;;  %s6221_s13 = sshll.u32 %s10089_s12, 4  ;;  %s6222_s13 = int_to_ptr.vmem [resolvable:$true] %s6221_s13 }
 0x440   :  { %6177 = vmatpush.bf16.msra.mxu2 %v9768_v36  ;;  %6190 = vmatpush.bf16.msra.mxu3 %v9776_v10  ;;  %v4866_v47 = vadd.f32 %v4865_v17, %v3219_v22 }
 0x442   :  { %6152 = vmatpush.bf16.msra.mxu0 %v9751_v53  ;;  %6165 = vmatpush.bf16.msra.mxu1 %v9759_v57  ;;  %v4879_v26 = vadd.f32 %v4878_v30, %v4866_v47 }
 0x444   :  { %6178 = vmatpush.bf16.msra.mxu2 %v9767_v15  ;;  %6191 = vmatpush.bf16.msra.mxu3 %v9775_v38  ;;  %v4947_v60 = vmax.f32 %v4879_v26, 0.0 }
 0x446   :  { %6153 = vmatpush.bf16.msra.mxu0 %v9750_v27  ;;  %6166 = vmatpush.bf16.msra.mxu1 %v9758_v16  ;;  %v4963_v61 = vpack.c.bf16 %v4947_v60, %v4947_v60 }
 0x447   :  { %v4867_v23 = vpop.f32.mrf.mxu2  ;;  %v4880_v18 = vpop.f32.mrf.mxu3 }
 0x448   :  { %6179 = vmatpush.bf16.msra.mxu2 %v9766_v19  ;;  %6192 = vmatpush.bf16.msra.mxu3 %v9774_v9 }
 0x44a   :  { %6154 = vmatpush.bf16.msra.mxu0 %v9749_v0  ;;  %6167 = vmatpush.bf16.msra.mxu1 %v9757_v46 }
 0x44c   :  { %6180 = vmatpush.bf16.msra.mxu2 %v9765_v28  ;;  %6193 = vmatpush.bf16.msra.mxu3 %v9773_v40 }
 0x44e   :  { %6155 = vmatpush.bf16.msra.mxu0 %v9748_v43  ;;  %6168 = vmatpush.bf16.msra.mxu1 %v9756_v6 }
 0x450   :  { %6181 = vmatpush.bf16.msra.mxu2 %v9764_v20  ;;  %6194 = vmatpush.bf16.msra.mxu3 %v9772_v21 }
 0x452   :  { %6156 = vmatpush.bf16.msra.mxu0 %v9747_v50  ;;  %6169 = vmatpush.bf16.msra.mxu1 %v9755_v45 }
 0x454   :  { %6182 = vmatpush.bf16.msra.mxu2 %v9763_v56  ;;  %6195 = vmatpush.bf16.msra.mxu3 %v9771_v32 }
 0x456   :  { %6157 = vmatpush.bf16.msra.mxu0 %v9746_v59  ;;  %6170 = vmatpush.bf16.msra.mxu1 %v9754_v55  ;;  %v4891_v63 = vpop.f32.mrf.mxu0  ;;  %v4904_v1 = vpop.f32.mrf.mxu1 }
 0x457   :  { %v4892_v29 = vadd.f32 %v4891_v63, %v3220_v25 }
 0x458   :  { %6183 = vmatpush.bf16.msra.mxu2 %v9762_v31  ;;  %6196 = vmatpush.bf16.msra.mxu3 %v9770_v62 }
 0x459   :  { %6158 = vmatmul.bf16.vlgmr.msra.gmra.mxu0 %v4962_v48  ;;  %6171 = vmatmul.bf16.vlgmr.msra.gmra.mxu1 %v4963_v61  ;;  %v4905_v8 = vadd.f32 %v4904_v1, %v4892_v29 }
 0x45b   :  { %v4948_v34 = vmax.f32 %v4905_v8, 0.0 }
 0x45d   :  { %v4964_v39 = vpack.c.bf16 %v4948_v34, %v4948_v34 }
 0x45e   :  { %v4893_v7 = vpop.f32.mrf.mxu0  ;;  %v4906_v24 = vpop.f32.mrf.mxu1 }
 0x45f   :  { %v4917_v49 = vpop.f32.mrf.mxu2  ;;  %v4930_v3 = vpop.f32.mrf.mxu3  ;;  %6184 = vmatmul.bf16.vlgmr.msra.gmra.mxu2 %v4964_v39 }
 0x460   :  { %v4918_v4 = vadd.f32 %v4917_v49, %v3221_v2 }
 0x462   :  { %v4931_v37 = vadd.f32 %v4930_v3, %v4918_v4 }
 0x464   :  { %v4949_v33 = vmax.f32 %v4931_v37, 0.0 }
 0x466   :  { %v4965_v5 = vpack.c.bf16 %v4949_v33, %v4949_v33 }
 0x467   :  { %v4919_v44 = vpop.f32.mrf.mxu2  ;;  %v4932_v12 = vpop.f32.mrf.mxu3 }
 0x468   :  { %6197 = vmatmul.bf16.vlgmr.msra.gmra.mxu3 %v4965_v5 }
 0x476   :  { %v6003_v14 = vpop.f32.mrf.mxu0  ;;  %v6016_v36 = vpop.f32.mrf.mxu1 }
 0x477   :  { %v6004_v10 = vadd.f32 %v9795_v58, %v6003_v14 }
 0x479   :  { %v6017_v53 = vadd.f32 %v6016_v36, %v6004_v10 }
 0x47e   :  { %v6005_v15 = vpop.f32.mrf.mxu0  ;;  %v6018_v38 = vpop.f32.mrf.mxu1 }
 0x47f   :  { %v6029_v57 = vpop.f32.mrf.mxu2  ;;  %v6042_v11 = vpop.f32.mrf.mxu3 }
 0x480   :  { %v6030_v13 = vadd.f32 %v6029_v57, %v6017_v53 }
 0x482   :  { %v6043_v27 = vadd.f32 %v6042_v11, %v6030_v13 }
 0x487   :  { %v6031_v16 = vpop.f32.mrf.mxu2  ;;  %v6044_v19 = vpop.f32.mrf.mxu3 }
 0x496   :  { %v6055_v9 = vpop.f32.mrf.mxu0  ;;  %v6068_v0 = vpop.f32.mrf.mxu1 }
 0x497   :  { %v6056_v46 = vadd.f32 %v6055_v9, %v6043_v27 }
 0x499   :  { %v6069_v41 = vadd.f32 %v6068_v0, %v6056_v46 }
 0x49e   :  { %v6057_v35 = vpop.f32.mrf.mxu0  ;;  %v6070_v54 = vpop.f32.mrf.mxu1 }
 0x49f   :  { %v6081_v22 = vpop.f32.mrf.mxu2  ;;  %v6094_v17 = vpop.f32.mrf.mxu3 }
 0x4a0   :  { %v6082_v30 = vadd.f32 %v6081_v22, %v6069_v41 }
 0x4a2   :  { %v6095_v28 = vadd.f32 %v6094_v17, %v6082_v30 }
 0x4a7   :  { %v6083_v40 = vpop.f32.mrf.mxu2  ;;  %v6096_v43 = vpop.f32.mrf.mxu3 }
 0x4b6   :  { %v6107_v6 = vpop.f32.mrf.mxu0  ;;  %v6120_v42 = vpop.f32.mrf.mxu1 }
 0x4b7   :  { %v6108_v32 = vadd.f32 %v6107_v6, %v6095_v28 }
 0x4b9   :  { %v6121_v59 = vadd.f32 %v6120_v42, %v6108_v32 }
 0x4be   :  { %v6133_v47 = vpop.f32.mrf.mxu2  ;;  %v6146_v20 = vpop.f32.mrf.mxu3 }
 0x4bf   :  { %v6109_v21 = vpop.f32.mrf.mxu0  ;;  %v6122_v50 = vpop.f32.mrf.mxu1  ;;  %v6134_v55 = vadd.f32 %v6133_v47, %v6121_v59 }
 0x4c1   :  { %v6147_v51 = vadd.f32 %v6146_v20, %v6134_v55 }
 0x4c6   :  { %v6135_v45 = vpop.f32.mrf.mxu2  ;;  %v6148_v52 = vpop.f32.mrf.mxu3 }
 0x4d6   :  { %v6159_v26 = vpop.f32.mrf.mxu0  ;;  %v6172_v23 = vpop.f32.mrf.mxu1 }
 0x4d7   :  { %v6160_v60 = vadd.f32 %v6159_v26, %v6147_v51 }
 0x4d9   :  { %v6173_v62 = vadd.f32 %v6172_v23, %v6160_v60 }
 0x4de   :  { %v6161_v18 = vpop.f32.mrf.mxu0  ;;  %v6174_v56 = vpop.f32.mrf.mxu1 }
 0x4e2   :  { %v6185_v31 = vpop.f32.mrf.mxu2 }
 0x4e3   :  { %v6186_v48 = vadd.f32 %v6185_v31, %v6173_v62 }
 0x4ea   :  { %v6187_v63 = vpop.f32.mrf.mxu2 }
 0x4eb   :  { %v6198_v61 = vpop.f32.mrf.mxu3 }
 0x4ec   :  { %v6199_v25 = vadd.f32 %v6198_v61, %v6186_v48 }
 0x4ee   :  { %v6202_v1 = vmax.f32 %v6199_v25, 0.0 }
 0x4f0   :  { %6204 = vst [vmem:[#allocation18] sm:$0xff] %v6202_v1 }
 0x4f1   :  { %6226 = dma.vmem_to_hbm [thread:$0]  %s6222_s13, 128, %s6224_s0, [#allocation19]  }
 0x4f3   :  { %v6200_v29 = vpop.f32.mrf.mxu3 }
 0x4f4   :  { %10070 = dma.done.wait [#allocation4], 128  }
 0x4f5   :  { %10071 = vsyncadd [#allocation4], 4294967168 }
 0x4f6   :  { %10072 = dma.done.wait [#allocation19], 128  }
 0x4f7   :  { %10073 = vsyncadd [#allocation19], 4294967168 }
 0x4f8   :  { %6235 = vsyncpa [#allocation3], 1 }
 0x4f9   :  { %6236 = vsyncpa [#allocation6], 1 }
 0x4fa   :  { %6237 = vsyncpa [#allocation9], 1 }
 0x4fb   :  { %6238 = vsyncpa [#allocation12], 1 }
 0x4fc   :  { %6239 = vsyncpa [#allocation15], 1 }
 0x4fd   :  { %6240 = vsyncpa [#allocation4], 1 }
 0x4fe   :  { %6241 = vsyncpa [#allocation19], 1 }

</bundles_post_ra>
